<compile_context>
chip_gen: v7x
topology: tpu7x:2x2x1
jax: 0.10.0
libtpu: 0.0.40
codegen_flags: <defaults>
</compile_context>

<pallas_src>
import jax
import jax.numpy as jnp
from jax.experimental import pallas as pl
from jax.experimental.pallas import tpu as pltpu

NEG_SLOPE = 0.2                 # LeakyReLU slope
BN_EPS = 1e-5                   # PyTorch BatchNorm2d default eps
COMPUTE_DTYPE = jnp.bfloat16    # MXU operand dtype (accumulation is f32)
VMEM_LIMIT = 32 * 1024 * 1024   # v7x-safe scoped-VMEM request (usage is ~KBs)


# ----------------------------------------------------------------------------
# Host-side helpers (plain JAX layout glue; no data duplication)
# ----------------------------------------------------------------------------
def _w_taps(w_oihw):
    """PyTorch [Cout, Cin, 4, 4] -> per-tap matrices [16, Cout, Cin], t=ki*4+kj."""
    cout, cin, kh, kw = w_oihw.shape
    return (jnp.transpose(w_oihw, (2, 3, 0, 1))
            .reshape(kh * kw, cout, cin).astype(COMPUTE_DTYPE))


def _to_parity_planes(act_nchw, dtype):
    """Zero-pad H/W by 1, split into 2x2 parity planes, flatten spatially.

    Returns [B, 4, C, S] with plane p = row_parity*2 + col_parity and
    S = Hq*Wq + Wq (Hq = H/2+1, Wq = W/2+1; the Wq extra zero rows keep every
    in-kernel tap slice of length Ho*Wq in bounds).  Pure 1x-byte relayout —
    replaces the previous host-side im2col (~4x patch materialisation).
    Padding entries MUST be zero: they feed the conv taps directly and (for BN
    layers) the pre-BN stats mask only excludes the garbage output column.
    """
    b, c, h, w = act_nchw.shape
    hq, wq = h // 2 + 1, w // 2 + 1
    p = jnp.pad(act_nchw, ((0, 0), (0, 0), (1, 1), (1, 1)))
    planes = [p[:, :, pr::2, pc::2].reshape(b, c, hq * wq)
              for pr in (0, 1) for pc in (0, 1)]
    planes = jnp.stack(planes, axis=1)                       # [B, 4, C, Hq*Wq]
    planes = jnp.pad(planes, ((0, 0), (0, 0), (0, 0), (0, wq)))
    return planes.astype(dtype)


def _from_conv_out(y, cout, ho, wo):
    """Kernel output [B, Cout, Ho*Wq] -> NCHW [B, Cout, Ho, Wo] (drop garbage col)."""
    b = y.shape[0]
    return y.reshape(b, cout, ho, wo + 1)[:, :, :, :wo]


def _bn_scale_shift(stats, count, gamma, beta):
    """Per-image (sum, sumsq) -> per-channel affine (scale, shift) of training BN."""
    tot = jnp.sum(stats, axis=0)                             # [Cout, 2]
    mean = tot[:, 0] / count
    var = tot[:, 1] / count - mean * mean                    # biased variance
    inv_std = jax.lax.rsqrt(var + BN_EPS)
    scale = gamma * inv_std
    shift = beta - mean * scale
    return scale, shift


# ----------------------------------------------------------------------------
# Pallas kernels
# ----------------------------------------------------------------------------
def _make_conv_kernel(ho, wo, cout, apply_lrelu, emit_stats):
    """4x4 / stride-2 / pad-1 conv for ONE image, computed as 16 per-tap dots
    against the VMEM-resident parity planes (im2col fused into the kernel).

    Output rows are indexed m = i*Wq + j (Wq = Wo+1); the column j == Wo is a
    throwaway "garbage" column that makes every tap a contiguous slice.  It is
    masked out of the BN statistics and dropped host-side.
    """
    wq = wo + 1
    L = ho * wq

    def kernel(x_ref, w_ref, *out_refs):
        # x_ref: (1, 4, Cin, S) bf16 parity planes; w_ref: (16, Cout, Cin) bf16.
        acc = jnp.zeros((cout, L), jnp.float32)
        for pr in range(2):
            for pc in range(2):
                plane = x_ref[0, 2 * pr + pc]                # (Cin, S) value
                for di in range(2):
                    for dj in range(2):
                        off = di * wq + dj
                        tap = plane[:, off:off + L]          # (Cin, L), unit-stride
                        wt = w_ref[(2 * di + pr) * 4 + (2 * dj + pc)]  # (Cout, Cin)
                        acc = acc + jnp.dot(
                            wt, tap, preferred_element_type=jnp.float32)

        o_ref = out_refs[0]
        if apply_lrelu:
            y = jnp.where(acc >= 0, acc, NEG_SLOPE * acc)
        else:
            y = acc                                          # pre-BN output
        o_ref[0] = y.astype(o_ref.dtype)

        if emit_stats:
            s_ref = out_refs[1]
            lane = jax.lax.broadcasted_iota(jnp.int32, (1, L), 1)
            valid = (lane % wq) < wo                         # mask garbage column
            av = jnp.where(valid, acc, 0.0)
            s = jnp.sum(av, axis=1, keepdims=True)           # (Cout, 1)
            q = jnp.sum(av * av, axis=1, keepdims=True)      # (Cout, 1)
            s_ref[0] = jnp.concatenate([s, q], axis=1)       # (Cout, 2)

    return kernel


def _conv4x4s2(planes, w_taps, *, ho, wo, apply_lrelu, emit_stats, out_dtype):
    """pallas_call wrapper: grid over batch ('parallel' -> v7x megacore)."""
    b, nplanes, cin, s = planes.shape
    nt, cout, _ = w_taps.shape
    L = ho * (wo + 1)

    out_shape = [jax.ShapeDtypeStruct((b, cout, L), out_dtype)]
    out_specs = [pl.BlockSpec((1, cout, L), lambda i: (i, 0, 0))]
    if emit_stats:
        out_shape.append(jax.ShapeDtypeStruct((b, cout, 2), jnp.float32))
        out_specs.append(pl.BlockSpec((1, cout, 2), lambda i: (i, 0, 0)))

    return pl.pallas_call(
        _make_conv_kernel(ho, wo, cout, apply_lrelu, emit_stats),
        out_shape=tuple(out_shape),
        grid_spec=pltpu.PrefetchScalarGridSpec(
            num_scalar_prefetch=0,
            grid=(b,),
            in_specs=[
                # per-image parity-plane slab (full last-two dims -> no 8/128 rule)
                pl.BlockSpec((1, nplanes, cin, s), lambda i: (i, 0, 0, 0)),
                # per-tap weights, constant index_map -> VMEM-resident across grid
                pl.BlockSpec((nt, cout, cin), lambda i: (0, 0, 0)),
            ],
            out_specs=tuple(out_specs),
        ),
        compiler_params=pltpu.CompilerParams(
            dimension_semantics=("parallel",),
            vmem_limit_bytes=VMEM_LIMIT,
        ),
    )(planes, w_taps)


def _final_kernel(x_ref, w_ref, o_ref):
    acc = jnp.dot(x_ref[...], w_ref[...], preferred_element_type=jnp.float32)
    o_ref[...] = (1.0 / (1.0 + jnp.exp(-acc))).astype(o_ref.dtype)


def _final_dense_sigmoid(x, w):
    """Conv5 (4x4/s1/p0 -> 1x1) == dense over the flattened map, + Sigmoid."""
    b, k = x.shape
    n = w.shape[1]
    return pl.pallas_call(
        _final_kernel,
        out_shape=jax.ShapeDtypeStruct((b, n), jnp.float32),
        grid_spec=pltpu.PrefetchScalarGridSpec(
            num_scalar_prefetch=0,
            grid=(1,),
            in_specs=[pl.BlockSpec((b, k), lambda i: (0, 0)),
                      pl.BlockSpec((k, n), lambda i: (0, 0))],
            out_specs=pl.BlockSpec((b, n), lambda i: (0, 0)),
        ),
        compiler_params=pltpu.CompilerParams(
            dimension_semantics=("arbitrary",),
            vmem_limit_bytes=VMEM_LIMIT,
        ),
    )(x, w)


# ----------------------------------------------------------------------------
# Full forward pass
# ----------------------------------------------------------------------------
def discriminator_forward(x_nchw, params):
    """DCGAN Discriminator forward. Input NCHW f32, output [B, 1, 1, 1] f32."""
    b, _, h, _ = x_nchw.shape
    ndf = params["w1"].shape[0]

    # Layer 1: Conv(C->ndf, 4,2,1) + LeakyReLU (fused in-kernel; no BN).
    ho = h // 2
    planes = _to_parity_planes(x_nchw, COMPUTE_DTYPE)
    y = _conv4x4s2(planes, _w_taps(params["w1"]), ho=ho, wo=ho,
                   apply_lrelu=True, emit_stats=False,
                   out_dtype=COMPUTE_DTYPE)[0]
    act = _from_conv_out(y, ndf, ho, ho)                     # [B, ndf, 32, 32]

    # Layers 2-4: conv kernel emits pre-BN output (f32) + per-image channel
    # sum/sumsq; batch-global BN + LeakyReLU are applied as cheap elementwise
    # ops fused by XLA into the inter-layer parity relayout (single pass, no
    # patch re-reads, no second matmul pass).
    for wn, gn, bn in (("w2", "g2", "b2"),
                       ("w3", "g3", "b3"),
                       ("w4", "g4", "b4")):
        cout = params[wn].shape[0]
        ho //= 2
        planes = _to_parity_planes(act, COMPUTE_DTYPE)
        res = _conv4x4s2(planes, _w_taps(params[wn]), ho=ho, wo=ho,
                         apply_lrelu=False, emit_stats=True,
                         out_dtype=jnp.float32)
        pre, stats = res[0], res[1]
        scale, shift = _bn_scale_shift(stats, float(b * ho * ho),
                                       params[gn], params[bn])
        z = (_from_conv_out(pre, cout, ho, ho)
             * scale.reshape(1, -1, 1, 1) + shift.reshape(1, -1, 1, 1))
        act = jnp.where(z >= 0, z, NEG_SLOPE * z)            # [B, cout, ho, ho]

    # Layer 5: Conv(8ndf->1, 4,1,0) + Sigmoid. Its "im2col" is a pure reshape.
    x5 = act.reshape(b, -1).astype(COMPUTE_DTYPE)            # [B, 8ndf*4*4], (c,h,w)
    w5 = params["w5"].reshape(1, -1).T                       # [8ndf*4*4, 1], (c,h,w)
    w5 = jnp.pad(w5, ((0, 0), (0, 127))).astype(COMPUTE_DTYPE)
    out = _final_dense_sigmoid(x5, w5)                       # [B, 128] f32
    return out[:, :1].reshape(b, 1, 1, 1)                    # NCHW [B,1,1,1]


# ----------------------------------------------------------------------------
# Parameters (DCGAN init; BN affine at PyTorch defaults: weight=1, bias=0)
# ----------------------------------------------------------------------------
def init_params(key, image_channels=3, ndf=8):
    ks = jax.random.split(key, 5)

    def w(k, cout, cin):
        return 0.02 * jax.random.normal(k, (cout, cin, 4, 4), jnp.float32)

    return {
        "w1": w(ks[0], ndf, image_channels),
        "w2": w(ks[1], ndf * 2, ndf),
        "g2": jnp.ones((ndf * 2,), jnp.float32),
        "b2": jnp.zeros((ndf * 2,), jnp.float32),
        "w3": w(ks[2], ndf * 4, ndf * 2),
        "g3": jnp.ones((ndf * 4,), jnp.float32),
        "b3": jnp.zeros((ndf * 4,), jnp.float32),
        "w4": w(ks[3], ndf * 8, ndf * 4),
        "g4": jnp.ones((ndf * 8,), jnp.float32),
        "b4": jnp.zeros((ndf * 8,), jnp.float32),
        "w5": w(ks[4], 1, ndf * 8),
    }


# ----------------------------------------------------------------------------
# Pure-JAX (f32) reference for a sanity check
# ----------------------------------------------------------------------------
def reference_forward(x_nchw, params):
    def conv(x, w, stride, pad):
        return jax.lax.conv_general_dilated(
            x, w, (stride, stride), [(pad, pad), (pad, pad)],
            dimension_numbers=("NCHW", "OIHW", "NCHW"))

    def bn(x, g, b):
        mean = x.mean(axis=(0, 2, 3), keepdims=True)
        var = ((x - mean) ** 2).mean(axis=(0, 2, 3), keepdims=True)
        return ((x - mean) * jax.lax.rsqrt(var + BN_EPS)
                * g.reshape(1, -1, 1, 1) + b.reshape(1, -1, 1, 1))

    def lrelu(x):
        return jnp.where(x >= 0, x, NEG_SLOPE * x)

    x = x_nchw
    x = lrelu(conv(x, params["w1"], 2, 1))
    x = lrelu(bn(conv(x, params["w2"], 2, 1), params["g2"], params["b2"]))
    x = lrelu(bn(conv(x, params["w3"], 2, 1), params["g3"], params["b3"]))
    x = lrelu(bn(conv(x, params["w4"], 2, 1), params["g4"], params["b4"]))
    x = jax.nn.sigmoid(conv(x, params["w5"], 1, 0))
    return x


# ----------------------------------------------------------------------------
if __name__ == "__main__":
    key = jax.random.PRNGKey(0)
    k_x, k_p = jax.random.split(key)

    # DCGAN discriminator expects 64x64 images (so the final 4x4/s1/p0 conv
    # reduces exactly to 1x1).  Small batch, image_channels=3, ndf=8.
    B, C, H, W = 4, 3, 64, 64
    x = jax.random.normal(k_x, (B, C, H, W), jnp.float32)
    params = init_params(k_p, image_channels=C, ndf=8)

    fwd = jax.jit(discriminator_forward)
    out = jax.block_until_ready(fwd(x, params))

    ref = jax.block_until_ready(jax.jit(reference_forward)(x, params))

    assert out.shape == (B, 1, 1, 1)
    assert bool(jnp.all(jnp.isfinite(out)))
    max_err = float(jnp.max(jnp.abs(out.astype(jnp.float32) - ref)))
    assert max_err < 5e-2, f"max abs error vs f32 reference: {max_err}"
    print("KERNEL_OK")
</pallas_src>

<mosaic_0001>
module attributes {stable_mosaic.version = 11 : i64} {
  func.func @kernel(%arg0: i32, %arg1: memref<1x4x3x1122xbf16, #tpu.memory_space<vmem>>, %arg2: memref<16x8x3xbf16, #tpu.memory_space<vmem>>, %arg3: memref<1x8x1056xbf16, #tpu.memory_space<vmem>>) attributes {dimension_semantics = [#tpu.dimension_semantics<parallel>], iteration_bounds = array<i64: 4>, scalar_prefetch = 0 : i64, scratch_operands = 0 : i64, tpu.core_type = #tpu.core_type<tc>, window_params = [{transform_indices = @transform_0, window_bounds = array<i64: 1, 4, 3, 1122>}, {pipeline_mode = #tpu.pipeline_mode<synchronous>, transform_indices = @transform_1, window_bounds = array<i64: 16, 8, 3>}, {transform_indices = @transform_2, window_bounds = array<i64: 1, 8, 1056>}]} {
    %cst = arith.constant 0.000000e+00 : f32
    %0 = vector.broadcast %cst : f32 to vector<8x1056xf32>
    %c0 = arith.constant 0 : index
    %c0_0 = arith.constant 0 : index
    %c0_1 = arith.constant 0 : index
    %c0_2 = arith.constant 0 : index
    %1 = vector.load %arg1[%c0, %c0_0, %c0_1, %c0_2] : memref<1x4x3x1122xbf16, #tpu.memory_space<vmem>>, vector<1x1x3x1122xbf16>
    %2 = vector.shape_cast %1 : vector<1x1x3x1122xbf16> to vector<3x1122xbf16>
    %3 = vector.extract_strided_slice %2 {offsets = [0, 0], sizes = [3, 1056], strides = [1, 1]} : vector<3x1122xbf16> to vector<3x1056xbf16>
    %c0_3 = arith.constant 0 : index
    %c0_4 = arith.constant 0 : index
    %c0_5 = arith.constant 0 : index
    %4 = vector.load %arg2[%c0_3, %c0_4, %c0_5] : memref<16x8x3xbf16, #tpu.memory_space<vmem>>, vector<1x8x3xbf16>
    %5 = vector.shape_cast %4 : vector<1x8x3xbf16> to vector<8x3xbf16>
    %cst_6 = arith.constant dense<0.000000e+00> : vector<8x1056xf32>
    %6 = tpu.matmul %5, %3, %cst_6 {dimension_numbers = #tpu.dot_dimension_numbers<[1], [0], [0], [1], [0, 0, 1, 1], [], []>} : vector<8x3xbf16>, vector<3x1056xbf16>, vector<8x1056xf32> -> vector<8x1056xf32>
    %7 = arith.addf %0, %6 : vector<8x1056xf32>
    %8 = vector.extract_strided_slice %2 {offsets = [0, 1], sizes = [3, 1056], strides = [1, 1]} : vector<3x1122xbf16> to vector<3x1056xbf16>
    %c2 = arith.constant 2 : index
    %c0_7 = arith.constant 0 : index
    %c0_8 = arith.constant 0 : index
    %9 = vector.load %arg2[%c2, %c0_7, %c0_8] : memref<16x8x3xbf16, #tpu.memory_space<vmem>>, vector<1x8x3xbf16>
    %10 = vector.shape_cast %9 : vector<1x8x3xbf16> to vector<8x3xbf16>
    %cst_9 = arith.constant dense<0.000000e+00> : vector<8x1056xf32>
    %11 = tpu.matmul %10, %8, %cst_9 {dimension_numbers = #tpu.dot_dimension_numbers<[1], [0], [0], [1], [0, 0, 1, 1], [], []>} : vector<8x3xbf16>, vector<3x1056xbf16>, vector<8x1056xf32> -> vector<8x1056xf32>
    %12 = arith.addf %7, %11 : vector<8x1056xf32>
    %13 = vector.extract_strided_slice %2 {offsets = [0, 33], sizes = [3, 1056], strides = [1, 1]} : vector<3x1122xbf16> to vector<3x1056xbf16>
    %c8 = arith.constant 8 : index
    %c0_10 = arith.constant 0 : index
    %c0_11 = arith.constant 0 : index
    %14 = vector.load %arg2[%c8, %c0_10, %c0_11] : memref<16x8x3xbf16, #tpu.memory_space<vmem>>, vector<1x8x3xbf16>
    %15 = vector.shape_cast %14 : vector<1x8x3xbf16> to vector<8x3xbf16>
    %cst_12 = arith.constant dense<0.000000e+00> : vector<8x1056xf32>
    %16 = tpu.matmul %15, %13, %cst_12 {dimension_numbers = #tpu.dot_dimension_numbers<[1], [0], [0], [1], [0, 0, 1, 1], [], []>} : vector<8x3xbf16>, vector<3x1056xbf16>, vector<8x1056xf32> -> vector<8x1056xf32>
    %17 = arith.addf %12, %16 : vector<8x1056xf32>
    %18 = vector.extract_strided_slice %2 {offsets = [0, 34], sizes = [3, 1056], strides = [1, 1]} : vector<3x1122xbf16> to vector<3x1056xbf16>
    %c10 = arith.constant 10 : index
    %c0_13 = arith.constant 0 : index
    %c0_14 = arith.constant 0 : index
    %19 = vector.load %arg2[%c10, %c0_13, %c0_14] : memref<16x8x3xbf16, #tpu.memory_space<vmem>>, vector<1x8x3xbf16>
    %20 = vector.shape_cast %19 : vector<1x8x3xbf16> to vector<8x3xbf16>
    %cst_15 = arith.constant dense<0.000000e+00> : vector<8x1056xf32>
    %21 = tpu.matmul %20, %18, %cst_15 {dimension_numbers = #tpu.dot_dimension_numbers<[1], [0], [0], [1], [0, 0, 1, 1], [], []>} : vector<8x3xbf16>, vector<3x1056xbf16>, vector<8x1056xf32> -> vector<8x1056xf32>
    %22 = arith.addf %17, %21 : vector<8x1056xf32>
    %c0_16 = arith.constant 0 : index
    %c1 = arith.constant 1 : index
    %c0_17 = arith.constant 0 : index
    %c0_18 = arith.constant 0 : index
    %23 = vector.load %arg1[%c0_16, %c1, %c0_17, %c0_18] : memref<1x4x3x1122xbf16, #tpu.memory_space<vmem>>, vector<1x1x3x1122xbf16>
    %24 = vector.shape_cast %23 : vector<1x1x3x1122xbf16> to vector<3x1122xbf16>
    %25 = vector.extract_strided_slice %24 {offsets = [0, 0], sizes = [3, 1056], strides = [1, 1]} : vector<3x1122xbf16> to vector<3x1056xbf16>
    %c1_19 = arith.constant 1 : index
    %c0_20 = arith.constant 0 : index
    %c0_21 = arith.constant 0 : index
    %26 = vector.load %arg2[%c1_19, %c0_20, %c0_21] : memref<16x8x3xbf16, #tpu.memory_space<vmem>>, vector<1x8x3xbf16>
    %27 = vector.shape_cast %26 : vector<1x8x3xbf16> to vector<8x3xbf16>
    %cst_22 = arith.constant dense<0.000000e+00> : vector<8x1056xf32>
    %28 = tpu.matmul %27, %25, %cst_22 {dimension_numbers = #tpu.dot_dimension_numbers<[1], [0], [0], [1], [0, 0, 1, 1], [], []>} : vector<8x3xbf16>, vector<3x1056xbf16>, vector<8x1056xf32> -> vector<8x1056xf32>
    %29 = arith.addf %22, %28 : vector<8x1056xf32>
    %30 = vector.extract_strided_slice %24 {offsets = [0, 1], sizes = [3, 1056], strides = [1, 1]} : vector<3x1122xbf16> to vector<3x1056xbf16>
    %c3 = arith.constant 3 : index
    %c0_23 = arith.constant 0 : index
    %c0_24 = arith.constant 0 : index
    %31 = vector.load %arg2[%c3, %c0_23, %c0_24] : memref<16x8x3xbf16, #tpu.memory_space<vmem>>, vector<1x8x3xbf16>
    %32 = vector.shape_cast %31 : vector<1x8x3xbf16> to vector<8x3xbf16>
    %cst_25 = arith.constant dense<0.000000e+00> : vector<8x1056xf32>
    %33 = tpu.matmul %32, %30, %cst_25 {dimension_numbers = #tpu.dot_dimension_numbers<[1], [0], [0], [1], [0, 0, 1, 1], [], []>} : vector<8x3xbf16>, vector<3x1056xbf16>, vector<8x1056xf32> -> vector<8x1056xf32>
    %34 = arith.addf %29, %33 : vector<8x1056xf32>
    %35 = vector.extract_strided_slice %24 {offsets = [0, 33], sizes = [3, 1056], strides = [1, 1]} : vector<3x1122xbf16> to vector<3x1056xbf16>
    %c9 = arith.constant 9 : index
    %c0_26 = arith.constant 0 : index
    %c0_27 = arith.constant 0 : index
    %36 = vector.load %arg2[%c9, %c0_26, %c0_27] : memref<16x8x3xbf16, #tpu.memory_space<vmem>>, vector<1x8x3xbf16>
    %37 = vector.shape_cast %36 : vector<1x8x3xbf16> to vector<8x3xbf16>
    %cst_28 = arith.constant dense<0.000000e+00> : vector<8x1056xf32>
    %38 = tpu.matmul %37, %35, %cst_28 {dimension_numbers = #tpu.dot_dimension_numbers<[1], [0], [0], [1], [0, 0, 1, 1], [], []>} : vector<8x3xbf16>, vector<3x1056xbf16>, vector<8x1056xf32> -> vector<8x1056xf32>
    %39 = arith.addf %34, %38 : vector<8x1056xf32>
    %40 = vector.extract_strided_slice %24 {offsets = [0, 34], sizes = [3, 1056], strides = [1, 1]} : vector<3x1122xbf16> to vector<3x1056xbf16>
    %c11 = arith.constant 11 : index
    %c0_29 = arith.constant 0 : index
    %c0_30 = arith.constant 0 : index
    %41 = vector.load %arg2[%c11, %c0_29, %c0_30] : memref<16x8x3xbf16, #tpu.memory_space<vmem>>, vector<1x8x3xbf16>
    %42 = vector.shape_cast %41 : vector<1x8x3xbf16> to vector<8x3xbf16>
    %cst_31 = arith.constant dense<0.000000e+00> : vector<8x1056xf32>
    %43 = tpu.matmul %42, %40, %cst_31 {dimension_numbers = #tpu.dot_dimension_numbers<[1], [0], [0], [1], [0, 0, 1, 1], [], []>} : vector<8x3xbf16>, vector<3x1056xbf16>, vector<8x1056xf32> -> vector<8x1056xf32>
    %44 = arith.addf %39, %43 : vector<8x1056xf32>
    %c0_32 = arith.constant 0 : index
    %c2_33 = arith.constant 2 : index
    %c0_34 = arith.constant 0 : index
    %c0_35 = arith.constant 0 : index
    %45 = vector.load %arg1[%c0_32, %c2_33, %c0_34, %c0_35] : memref<1x4x3x1122xbf16, #tpu.memory_space<vmem>>, vector<1x1x3x1122xbf16>
    %46 = vector.shape_cast %45 : vector<1x1x3x1122xbf16> to vector<3x1122xbf16>
    %47 = vector.extract_strided_slice %46 {offsets = [0, 0], sizes = [3, 1056], strides = [1, 1]} : vector<3x1122xbf16> to vector<3x1056xbf16>
    %c4 = arith.constant 4 : index
    %c0_36 = arith.constant 0 : index
    %c0_37 = arith.constant 0 : index
    %48 = vector.load %arg2[%c4, %c0_36, %c0_37] : memref<16x8x3xbf16, #tpu.memory_space<vmem>>, vector<1x8x3xbf16>
    %49 = vector.shape_cast %48 : vector<1x8x3xbf16> to vector<8x3xbf16>
    %cst_38 = arith.constant dense<0.000000e+00> : vector<8x1056xf32>
    %50 = tpu.matmul %49, %47, %cst_38 {dimension_numbers = #tpu.dot_dimension_numbers<[1], [0], [0], [1], [0, 0, 1, 1], [], []>} : vector<8x3xbf16>, vector<3x1056xbf16>, vector<8x1056xf32> -> vector<8x1056xf32>
    %51 = arith.addf %44, %50 : vector<8x1056xf32>
    %52 = vector.extract_strided_slice %46 {offsets = [0, 1], sizes = [3, 1056], strides = [1, 1]} : vector<3x1122xbf16> to vector<3x1056xbf16>
    %c6 = arith.constant 6 : index
    %c0_39 = arith.constant 0 : index
    %c0_40 = arith.constant 0 : index
    %53 = vector.load %arg2[%c6, %c0_39, %c0_40] : memref<16x8x3xbf16, #tpu.memory_space<vmem>>, vector<1x8x3xbf16>
    %54 = vector.shape_cast %53 : vector<1x8x3xbf16> to vector<8x3xbf16>
    %cst_41 = arith.constant dense<0.000000e+00> : vector<8x1056xf32>
    %55 = tpu.matmul %54, %52, %cst_41 {dimension_numbers = #tpu.dot_dimension_numbers<[1], [0], [0], [1], [0, 0, 1, 1], [], []>} : vector<8x3xbf16>, vector<3x1056xbf16>, vector<8x1056xf32> -> vector<8x1056xf32>
    %56 = arith.addf %51, %55 : vector<8x1056xf32>
    %57 = vector.extract_strided_slice %46 {offsets = [0, 33], sizes = [3, 1056], strides = [1, 1]} : vector<3x1122xbf16> to vector<3x1056xbf16>
    %c12 = arith.constant 12 : index
    %c0_42 = arith.constant 0 : index
    %c0_43 = arith.constant 0 : index
    %58 = vector.load %arg2[%c12, %c0_42, %c0_43] : memref<16x8x3xbf16, #tpu.memory_space<vmem>>, vector<1x8x3xbf16>
    %59 = vector.shape_cast %58 : vector<1x8x3xbf16> to vector<8x3xbf16>
    %cst_44 = arith.constant dense<0.000000e+00> : vector<8x1056xf32>
    %60 = tpu.matmul %59, %57, %cst_44 {dimension_numbers = #tpu.dot_dimension_numbers<[1], [0], [0], [1], [0, 0, 1, 1], [], []>} : vector<8x3xbf16>, vector<3x1056xbf16>, vector<8x1056xf32> -> vector<8x1056xf32>
    %61 = arith.addf %56, %60 : vector<8x1056xf32>
    %62 = vector.extract_strided_slice %46 {offsets = [0, 34], sizes = [3, 1056], strides = [1, 1]} : vector<3x1122xbf16> to vector<3x1056xbf16>
    %c14 = arith.constant 14 : index
    %c0_45 = arith.constant 0 : index
    %c0_46 = arith.constant 0 : index
    %63 = vector.load %arg2[%c14, %c0_45, %c0_46] : memref<16x8x3xbf16, #tpu.memory_space<vmem>>, vector<1x8x3xbf16>
    %64 = vector.shape_cast %63 : vector<1x8x3xbf16> to vector<8x3xbf16>
    %cst_47 = arith.constant dense<0.000000e+00> : vector<8x1056xf32>
    %65 = tpu.matmul %64, %62, %cst_47 {dimension_numbers = #tpu.dot_dimension_numbers<[1], [0], [0], [1], [0, 0, 1, 1], [], []>} : vector<8x3xbf16>, vector<3x1056xbf16>, vector<8x1056xf32> -> vector<8x1056xf32>
    %66 = arith.addf %61, %65 : vector<8x1056xf32>
    %c0_48 = arith.constant 0 : index
    %c3_49 = arith.constant 3 : index
    %c0_50 = arith.constant 0 : index
    %c0_51 = arith.constant 0 : index
    %67 = vector.load %arg1[%c0_48, %c3_49, %c0_50, %c0_51] : memref<1x4x3x1122xbf16, #tpu.memory_space<vmem>>, vector<1x1x3x1122xbf16>
    %68 = vector.shape_cast %67 : vector<1x1x3x1122xbf16> to vector<3x1122xbf16>
    %69 = vector.extract_strided_slice %68 {offsets = [0, 0], sizes = [3, 1056], strides = [1, 1]} : vector<3x1122xbf16> to vector<3x1056xbf16>
    %c5 = arith.constant 5 : index
    %c0_52 = arith.constant 0 : index
    %c0_53 = arith.constant 0 : index
    %70 = vector.load %arg2[%c5, %c0_52, %c0_53] : memref<16x8x3xbf16, #tpu.memory_space<vmem>>, vector<1x8x3xbf16>
    %71 = vector.shape_cast %70 : vector<1x8x3xbf16> to vector<8x3xbf16>
    %cst_54 = arith.constant dense<0.000000e+00> : vector<8x1056xf32>
    %72 = tpu.matmul %71, %69, %cst_54 {dimension_numbers = #tpu.dot_dimension_numbers<[1], [0], [0], [1], [0, 0, 1, 1], [], []>} : vector<8x3xbf16>, vector<3x1056xbf16>, vector<8x1056xf32> -> vector<8x1056xf32>
    %73 = arith.addf %66, %72 : vector<8x1056xf32>
    %74 = vector.extract_strided_slice %68 {offsets = [0, 1], sizes = [3, 1056], strides = [1, 1]} : vector<3x1122xbf16> to vector<3x1056xbf16>
    %c7 = arith.constant 7 : index
    %c0_55 = arith.constant 0 : index
    %c0_56 = arith.constant 0 : index
    %75 = vector.load %arg2[%c7, %c0_55, %c0_56] : memref<16x8x3xbf16, #tpu.memory_space<vmem>>, vector<1x8x3xbf16>
    %76 = vector.shape_cast %75 : vector<1x8x3xbf16> to vector<8x3xbf16>
    %cst_57 = arith.constant dense<0.000000e+00> : vector<8x1056xf32>
    %77 = tpu.matmul %76, %74, %cst_57 {dimension_numbers = #tpu.dot_dimension_numbers<[1], [0], [0], [1], [0, 0, 1, 1], [], []>} : vector<8x3xbf16>, vector<3x1056xbf16>, vector<8x1056xf32> -> vector<8x1056xf32>
    %78 = arith.addf %73, %77 : vector<8x1056xf32>
    %79 = vector.extract_strided_slice %68 {offsets = [0, 33], sizes = [3, 1056], strides = [1, 1]} : vector<3x1122xbf16> to vector<3x1056xbf16>
    %c13 = arith.constant 13 : index
    %c0_58 = arith.constant 0 : index
    %c0_59 = arith.constant 0 : index
    %80 = vector.load %arg2[%c13, %c0_58, %c0_59] : memref<16x8x3xbf16, #tpu.memory_space<vmem>>, vector<1x8x3xbf16>
    %81 = vector.shape_cast %80 : vector<1x8x3xbf16> to vector<8x3xbf16>
    %cst_60 = arith.constant dense<0.000000e+00> : vector<8x1056xf32>
    %82 = tpu.matmul %81, %79, %cst_60 {dimension_numbers = #tpu.dot_dimension_numbers<[1], [0], [0], [1], [0, 0, 1, 1], [], []>} : vector<8x3xbf16>, vector<3x1056xbf16>, vector<8x1056xf32> -> vector<8x1056xf32>
    %83 = arith.addf %78, %82 : vector<8x1056xf32>
    %84 = vector.extract_strided_slice %68 {offsets = [0, 34], sizes = [3, 1056], strides = [1, 1]} : vector<3x1122xbf16> to vector<3x1056xbf16>
    %c15 = arith.constant 15 : index
    %c0_61 = arith.constant 0 : index
    %c0_62 = arith.constant 0 : index
    %85 = vector.load %arg2[%c15, %c0_61, %c0_62] : memref<16x8x3xbf16, #tpu.memory_space<vmem>>, vector<1x8x3xbf16>
    %86 = vector.shape_cast %85 : vector<1x8x3xbf16> to vector<8x3xbf16>
    %cst_63 = arith.constant dense<0.000000e+00> : vector<8x1056xf32>
    %87 = tpu.matmul %86, %84, %cst_63 {dimension_numbers = #tpu.dot_dimension_numbers<[1], [0], [0], [1], [0, 0, 1, 1], [], []>} : vector<8x3xbf16>, vector<3x1056xbf16>, vector<8x1056xf32> -> vector<8x1056xf32>
    %88 = arith.addf %83, %87 : vector<8x1056xf32>
    %cst_64 = arith.constant 0.000000e+00 : f32
    %89 = vector.broadcast %cst_64 : f32 to vector<8x1056xf32>
    %90 = arith.cmpf oge, %88, %89 : vector<8x1056xf32>
    %cst_65 = arith.constant 2.000000e-01 : f32
    %91 = vector.broadcast %cst_65 : f32 to vector<8x1056xf32>
    %92 = arith.mulf %91, %88 : vector<8x1056xf32>
    %93 = arith.select %90, %88, %92 : vector<8x1056xi1>, vector<8x1056xf32>
    %94 = arith.truncf %93 : vector<8x1056xf32> to vector<8x1056xbf16>
    %c0_66 = arith.constant 0 : index
    %c0_67 = arith.constant 0 : index
    %c0_68 = arith.constant 0 : index
    %95 = vector.load %arg3[%c0_66, %c0_67, %c0_68] : memref<1x8x1056xbf16, #tpu.memory_space<vmem>>, vector<1x8x1056xbf16>
    %96 = vector.shape_cast %95 : vector<1x8x1056xbf16> to vector<8x1056xbf16>
    %97 = vector.shape_cast %94 : vector<8x1056xbf16> to vector<1x8x1056xbf16>
    tpu.vector_store %arg3[%c0_66, %c0_67, %c0_68], %97 {strides = array<i32>} : memref<1x8x1056xbf16, #tpu.memory_space<vmem>>, vector<1x8x1056xbf16>,
    return
  }
  func.func @transform_0(%arg0: i32) -> (i32, i32, i32, i32) {
    %c0_i32 = arith.constant 0 : i32
    %c0_i32_0 = arith.constant 0 : i32
    %c0_i32_1 = arith.constant 0 : i32
    %c0_i32_2 = arith.constant 0 : i32
    return %arg0, %c0_i32, %c0_i32_0, %c0_i32_1 : i32, i32, i32, i32
  }
  func.func @transform_1(%arg0: i32) -> (i32, i32, i32) {
    %c0_i32 = arith.constant 0 : i32
    %c0_i32_0 = arith.constant 0 : i32
    %c0_i32_1 = arith.constant 0 : i32
    %c0_i32_2 = arith.constant 0 : i32
    return %c0_i32, %c0_i32_0, %c0_i32_1 : i32, i32, i32
  }
  func.func @transform_2(%arg0: i32) -> (i32, i32, i32) {
    %c0_i32 = arith.constant 0 : i32
    %c0_i32_0 = arith.constant 0 : i32
    %c0_i32_1 = arith.constant 0 : i32
    return %arg0, %c0_i32, %c0_i32_0 : i32, i32, i32
  }
}

module attributes {stable_mosaic.version = 11 : i64} {
  func.func @kernel(%arg0: i32, %arg1: memref<1x4x8x306xbf16, #tpu.memory_space<vmem>>, %arg2: memref<16x16x8xbf16, #tpu.memory_space<vmem>>, %arg3: memref<1x16x272xf32, #tpu.memory_space<vmem>>, %arg4: memref<1x16x2xf32, #tpu.memory_space<vmem>>) attributes {dimension_semantics = [#tpu.dimension_semantics<parallel>], iteration_bounds = array<i64: 4>, scalar_prefetch = 0 : i64, scratch_operands = 0 : i64, tpu.core_type = #tpu.core_type<tc>, window_params = [{transform_indices = @transform_0, window_bounds = array<i64: 1, 4, 8, 306>}, {pipeline_mode = #tpu.pipeline_mode<synchronous>, transform_indices = @transform_1, window_bounds = array<i64: 16, 16, 8>}, {transform_indices = @transform_2, window_bounds = array<i64: 1, 16, 272>}, {transform_indices = @transform_3, window_bounds = array<i64: 1, 16, 2>}]} {
    %cst = arith.constant 0.000000e+00 : f32
    %0 = vector.broadcast %cst : f32 to vector<16x272xf32>
    %c0 = arith.constant 0 : index
    %c0_0 = arith.constant 0 : index
    %c0_1 = arith.constant 0 : index
    %c0_2 = arith.constant 0 : index
    %1 = vector.load %arg1[%c0, %c0_0, %c0_1, %c0_2] : memref<1x4x8x306xbf16, #tpu.memory_space<vmem>>, vector<1x1x8x306xbf16>
    %2 = vector.shape_cast %1 : vector<1x1x8x306xbf16> to vector<8x306xbf16>
    %3 = vector.extract_strided_slice %2 {offsets = [0, 0], sizes = [8, 272], strides = [1, 1]} : vector<8x306xbf16> to vector<8x272xbf16>
    %c0_3 = arith.constant 0 : index
    %c0_4 = arith.constant 0 : index
    %c0_5 = arith.constant 0 : index
    %4 = vector.load %arg2[%c0_3, %c0_4, %c0_5] : memref<16x16x8xbf16, #tpu.memory_space<vmem>>, vector<1x16x8xbf16>
    %5 = vector.shape_cast %4 : vector<1x16x8xbf16> to vector<16x8xbf16>
    %cst_6 = arith.constant dense<0.000000e+00> : vector<16x272xf32>
    %6 = tpu.matmul %5, %3, %cst_6 {dimension_numbers = #tpu.dot_dimension_numbers<[1], [0], [0], [1], [0, 0, 1, 1], [], []>} : vector<16x8xbf16>, vector<8x272xbf16>, vector<16x272xf32> -> vector<16x272xf32>
    %7 = arith.addf %0, %6 : vector<16x272xf32>
    %8 = vector.extract_strided_slice %2 {offsets = [0, 1], sizes = [8, 272], strides = [1, 1]} : vector<8x306xbf16> to vector<8x272xbf16>
    %c2 = arith.constant 2 : index
    %c0_7 = arith.constant 0 : index
    %c0_8 = arith.constant 0 : index
    %9 = vector.load %arg2[%c2, %c0_7, %c0_8] : memref<16x16x8xbf16, #tpu.memory_space<vmem>>, vector<1x16x8xbf16>
    %10 = vector.shape_cast %9 : vector<1x16x8xbf16> to vector<16x8xbf16>
    %cst_9 = arith.constant dense<0.000000e+00> : vector<16x272xf32>
    %11 = tpu.matmul %10, %8, %cst_9 {dimension_numbers = #tpu.dot_dimension_numbers<[1], [0], [0], [1], [0, 0, 1, 1], [], []>} : vector<16x8xbf16>, vector<8x272xbf16>, vector<16x272xf32> -> vector<16x272xf32>
    %12 = arith.addf %7, %11 : vector<16x272xf32>
    %13 = vector.extract_strided_slice %2 {offsets = [0, 17], sizes = [8, 272], strides = [1, 1]} : vector<8x306xbf16> to vector<8x272xbf16>
    %c8 = arith.constant 8 : index
    %c0_10 = arith.constant 0 : index
    %c0_11 = arith.constant 0 : index
    %14 = vector.load %arg2[%c8, %c0_10, %c0_11] : memref<16x16x8xbf16, #tpu.memory_space<vmem>>, vector<1x16x8xbf16>
    %15 = vector.shape_cast %14 : vector<1x16x8xbf16> to vector<16x8xbf16>
    %cst_12 = arith.constant dense<0.000000e+00> : vector<16x272xf32>
    %16 = tpu.matmul %15, %13, %cst_12 {dimension_numbers = #tpu.dot_dimension_numbers<[1], [0], [0], [1], [0, 0, 1, 1], [], []>} : vector<16x8xbf16>, vector<8x272xbf16>, vector<16x272xf32> -> vector<16x272xf32>
    %17 = arith.addf %12, %16 : vector<16x272xf32>
    %18 = vector.extract_strided_slice %2 {offsets = [0, 18], sizes = [8, 272], strides = [1, 1]} : vector<8x306xbf16> to vector<8x272xbf16>
    %c10 = arith.constant 10 : index
    %c0_13 = arith.constant 0 : index
    %c0_14 = arith.constant 0 : index
    %19 = vector.load %arg2[%c10, %c0_13, %c0_14] : memref<16x16x8xbf16, #tpu.memory_space<vmem>>, vector<1x16x8xbf16>
    %20 = vector.shape_cast %19 : vector<1x16x8xbf16> to vector<16x8xbf16>
    %cst_15 = arith.constant dense<0.000000e+00> : vector<16x272xf32>
    %21 = tpu.matmul %20, %18, %cst_15 {dimension_numbers = #tpu.dot_dimension_numbers<[1], [0], [0], [1], [0, 0, 1, 1], [], []>} : vector<16x8xbf16>, vector<8x272xbf16>, vector<16x272xf32> -> vector<16x272xf32>
    %22 = arith.addf %17, %21 : vector<16x272xf32>
    %c0_16 = arith.constant 0 : index
    %c1 = arith.constant 1 : index
    %c0_17 = arith.constant 0 : index
    %c0_18 = arith.constant 0 : index
    %23 = vector.load %arg1[%c0_16, %c1, %c0_17, %c0_18] : memref<1x4x8x306xbf16, #tpu.memory_space<vmem>>, vector<1x1x8x306xbf16>
    %24 = vector.shape_cast %23 : vector<1x1x8x306xbf16> to vector<8x306xbf16>
    %25 = vector.extract_strided_slice %24 {offsets = [0, 0], sizes = [8, 272], strides = [1, 1]} : vector<8x306xbf16> to vector<8x272xbf16>
    %c1_19 = arith.constant 1 : index
    %c0_20 = arith.constant 0 : index
    %c0_21 = arith.constant 0 : index
    %26 = vector.load %arg2[%c1_19, %c0_20, %c0_21] : memref<16x16x8xbf16, #tpu.memory_space<vmem>>, vector<1x16x8xbf16>
    %27 = vector.shape_cast %26 : vector<1x16x8xbf16> to vector<16x8xbf16>
    %cst_22 = arith.constant dense<0.000000e+00> : vector<16x272xf32>
    %28 = tpu.matmul %27, %25, %cst_22 {dimension_numbers = #tpu.dot_dimension_numbers<[1], [0], [0], [1], [0, 0, 1, 1], [], []>} : vector<16x8xbf16>, vector<8x272xbf16>, vector<16x272xf32> -> vector<16x272xf32>
    %29 = arith.addf %22, %28 : vector<16x272xf32>
    %30 = vector.extract_strided_slice %24 {offsets = [0, 1], sizes = [8, 272], strides = [1, 1]} : vector<8x306xbf16> to vector<8x272xbf16>
    %c3 = arith.constant 3 : index
    %c0_23 = arith.constant 0 : index
    %c0_24 = arith.constant 0 : index
    %31 = vector.load %arg2[%c3, %c0_23, %c0_24] : memref<16x16x8xbf16, #tpu.memory_space<vmem>>, vector<1x16x8xbf16>
    %32 = vector.shape_cast %31 : vector<1x16x8xbf16> to vector<16x8xbf16>
    %cst_25 = arith.constant dense<0.000000e+00> : vector<16x272xf32>
    %33 = tpu.matmul %32, %30, %cst_25 {dimension_numbers = #tpu.dot_dimension_numbers<[1], [0], [0], [1], [0, 0, 1, 1], [], []>} : vector<16x8xbf16>, vector<8x272xbf16>, vector<16x272xf32> -> vector<16x272xf32>
    %34 = arith.addf %29, %33 : vector<16x272xf32>
    %35 = vector.extract_strided_slice %24 {offsets = [0, 17], sizes = [8, 272], strides = [1, 1]} : vector<8x306xbf16> to vector<8x272xbf16>
    %c9 = arith.constant 9 : index
    %c0_26 = arith.constant 0 : index
    %c0_27 = arith.constant 0 : index
    %36 = vector.load %arg2[%c9, %c0_26, %c0_27] : memref<16x16x8xbf16, #tpu.memory_space<vmem>>, vector<1x16x8xbf16>
    %37 = vector.shape_cast %36 : vector<1x16x8xbf16> to vector<16x8xbf16>
    %cst_28 = arith.constant dense<0.000000e+00> : vector<16x272xf32>
    %38 = tpu.matmul %37, %35, %cst_28 {dimension_numbers = #tpu.dot_dimension_numbers<[1], [0], [0], [1], [0, 0, 1, 1], [], []>} : vector<16x8xbf16>, vector<8x272xbf16>, vector<16x272xf32> -> vector<16x272xf32>
    %39 = arith.addf %34, %38 : vector<16x272xf32>
    %40 = vector.extract_strided_slice %24 {offsets = [0, 18], sizes = [8, 272], strides = [1, 1]} : vector<8x306xbf16> to vector<8x272xbf16>
    %c11 = arith.constant 11 : index
    %c0_29 = arith.constant 0 : index
    %c0_30 = arith.constant 0 : index
    %41 = vector.load %arg2[%c11, %c0_29, %c0_30] : memref<16x16x8xbf16, #tpu.memory_space<vmem>>, vector<1x16x8xbf16>
    %42 = vector.shape_cast %41 : vector<1x16x8xbf16> to vector<16x8xbf16>
    %cst_31 = arith.constant dense<0.000000e+00> : vector<16x272xf32>
    %43 = tpu.matmul %42, %40, %cst_31 {dimension_numbers = #tpu.dot_dimension_numbers<[1], [0], [0], [1], [0, 0, 1, 1], [], []>} : vector<16x8xbf16>, vector<8x272xbf16>, vector<16x272xf32> -> vector<16x272xf32>
    %44 = arith.addf %39, %43 : vector<16x272xf32>
    %c0_32 = arith.constant 0 : index
    %c2_33 = arith.constant 2 : index
    %c0_34 = arith.constant 0 : index
    %c0_35 = arith.constant 0 : index
    %45 = vector.load %arg1[%c0_32, %c2_33, %c0_34, %c0_35] : memref<1x4x8x306xbf16, #tpu.memory_space<vmem>>, vector<1x1x8x306xbf16>
    %46 = vector.shape_cast %45 : vector<1x1x8x306xbf16> to vector<8x306xbf16>
    %47 = vector.extract_strided_slice %46 {offsets = [0, 0], sizes = [8, 272], strides = [1, 1]} : vector<8x306xbf16> to vector<8x272xbf16>
    %c4 = arith.constant 4 : index
    %c0_36 = arith.constant 0 : index
    %c0_37 = arith.constant 0 : index
    %48 = vector.load %arg2[%c4, %c0_36, %c0_37] : memref<16x16x8xbf16, #tpu.memory_space<vmem>>, vector<1x16x8xbf16>
    %49 = vector.shape_cast %48 : vector<1x16x8xbf16> to vector<16x8xbf16>
    %cst_38 = arith.constant dense<0.000000e+00> : vector<16x272xf32>
    %50 = tpu.matmul %49, %47, %cst_38 {dimension_numbers = #tpu.dot_dimension_numbers<[1], [0], [0], [1], [0, 0, 1, 1], [], []>} : vector<16x8xbf16>, vector<8x272xbf16>, vector<16x272xf32> -> vector<16x272xf32>
    %51 = arith.addf %44, %50 : vector<16x272xf32>
    %52 = vector.extract_strided_slice %46 {offsets = [0, 1], sizes = [8, 272], strides = [1, 1]} : vector<8x306xbf16> to vector<8x272xbf16>
    %c6 = arith.constant 6 : index
    %c0_39 = arith.constant 0 : index
    %c0_40 = arith.constant 0 : index
    %53 = vector.load %arg2[%c6, %c0_39, %c0_40] : memref<16x16x8xbf16, #tpu.memory_space<vmem>>, vector<1x16x8xbf16>
    %54 = vector.shape_cast %53 : vector<1x16x8xbf16> to vector<16x8xbf16>
    %cst_41 = arith.constant dense<0.000000e+00> : vector<16x272xf32>
    %55 = tpu.matmul %54, %52, %cst_41 {dimension_numbers = #tpu.dot_dimension_numbers<[1], [0], [0], [1], [0, 0, 1, 1], [], []>} : vector<16x8xbf16>, vector<8x272xbf16>, vector<16x272xf32> -> vector<16x272xf32>
    %56 = arith.addf %51, %55 : vector<16x272xf32>
    %57 = vector.extract_strided_slice %46 {offsets = [0, 17], sizes = [8, 272], strides = [1, 1]} : vector<8x306xbf16> to vector<8x272xbf16>
    %c12 = arith.constant 12 : index
    %c0_42 = arith.constant 0 : index
    %c0_43 = arith.constant 0 : index
    %58 = vector.load %arg2[%c12, %c0_42, %c0_43] : memref<16x16x8xbf16, #tpu.memory_space<vmem>>, vector<1x16x8xbf16>
    %59 = vector.shape_cast %58 : vector<1x16x8xbf16> to vector<16x8xbf16>
    %cst_44 = arith.constant dense<0.000000e+00> : vector<16x272xf32>
    %60 = tpu.matmul %59, %57, %cst_44 {dimension_numbers = #tpu.dot_dimension_numbers<[1], [0], [0], [1], [0, 0, 1, 1], [], []>} : vector<16x8xbf16>, vector<8x272xbf16>, vector<16x272xf32> -> vector<16x272xf32>
    %61 = arith.addf %56, %60 : vector<16x272xf32>
    %62 = vector.extract_strided_slice %46 {offsets = [0, 18], sizes = [8, 272], strides = [1, 1]} : vector<8x306xbf16> to vector<8x272xbf16>
    %c14 = arith.constant 14 : index
    %c0_45 = arith.constant 0 : index
    %c0_46 = arith.constant 0 : index
    %63 = vector.load %arg2[%c14, %c0_45, %c0_46] : memref<16x16x8xbf16, #tpu.memory_space<vmem>>, vector<1x16x8xbf16>
    %64 = vector.shape_cast %63 : vector<1x16x8xbf16> to vector<16x8xbf16>
    %cst_47 = arith.constant dense<0.000000e+00> : vector<16x272xf32>
    %65 = tpu.matmul %64, %62, %cst_47 {dimension_numbers = #tpu.dot_dimension_numbers<[1], [0], [0], [1], [0, 0, 1, 1], [], []>} : vector<16x8xbf16>, vector<8x272xbf16>, vector<16x272xf32> -> vector<16x272xf32>
    %66 = arith.addf %61, %65 : vector<16x272xf32>
    %c0_48 = arith.constant 0 : index
    %c3_49 = arith.constant 3 : index
    %c0_50 = arith.constant 0 : index
    %c0_51 = arith.constant 0 : index
    %67 = vector.load %arg1[%c0_48, %c3_49, %c0_50, %c0_51] : memref<1x4x8x306xbf16, #tpu.memory_space<vmem>>, vector<1x1x8x306xbf16>
    %68 = vector.shape_cast %67 : vector<1x1x8x306xbf16> to vector<8x306xbf16>
    %69 = vector.extract_strided_slice %68 {offsets = [0, 0], sizes = [8, 272], strides = [1, 1]} : vector<8x306xbf16> to vector<8x272xbf16>
    %c5 = arith.constant 5 : index
    %c0_52 = arith.constant 0 : index
    %c0_53 = arith.constant 0 : index
    %70 = vector.load %arg2[%c5, %c0_52, %c0_53] : memref<16x16x8xbf16, #tpu.memory_space<vmem>>, vector<1x16x8xbf16>
    %71 = vector.shape_cast %70 : vector<1x16x8xbf16> to vector<16x8xbf16>
    %cst_54 = arith.constant dense<0.000000e+00> : vector<16x272xf32>
    %72 = tpu.matmul %71, %69, %cst_54 {dimension_numbers = #tpu.dot_dimension_numbers<[1], [0], [0], [1], [0, 0, 1, 1], [], []>} : vector<16x8xbf16>, vector<8x272xbf16>, vector<16x272xf32> -> vector<16x272xf32>
    %73 = arith.addf %66, %72 : vector<16x272xf32>
    %74 = vector.extract_strided_slice %68 {offsets = [0, 1], sizes = [8, 272], strides = [1, 1]} : vector<8x306xbf16> to vector<8x272xbf16>
    %c7 = arith.constant 7 : index
    %c0_55 = arith.constant 0 : index
    %c0_56 = arith.constant 0 : index
    %75 = vector.load %arg2[%c7, %c0_55, %c0_56] : memref<16x16x8xbf16, #tpu.memory_space<vmem>>, vector<1x16x8xbf16>
    %76 = vector.shape_cast %75 : vector<1x16x8xbf16> to vector<16x8xbf16>
    %cst_57 = arith.constant dense<0.000000e+00> : vector<16x272xf32>
    %77 = tpu.matmul %76, %74, %cst_57 {dimension_numbers = #tpu.dot_dimension_numbers<[1], [0], [0], [1], [0, 0, 1, 1], [], []>} : vector<16x8xbf16>, vector<8x272xbf16>, vector<16x272xf32> -> vector<16x272xf32>
    %78 = arith.addf %73, %77 : vector<16x272xf32>
    %79 = vector.extract_strided_slice %68 {offsets = [0, 17], sizes = [8, 272], strides = [1, 1]} : vector<8x306xbf16> to vector<8x272xbf16>
    %c13 = arith.constant 13 : index
    %c0_58 = arith.constant 0 : index
    %c0_59 = arith.constant 0 : index
    %80 = vector.load %arg2[%c13, %c0_58, %c0_59] : memref<16x16x8xbf16, #tpu.memory_space<vmem>>, vector<1x16x8xbf16>
    %81 = vector.shape_cast %80 : vector<1x16x8xbf16> to vector<16x8xbf16>
    %cst_60 = arith.constant dense<0.000000e+00> : vector<16x272xf32>
    %82 = tpu.matmul %81, %79, %cst_60 {dimension_numbers = #tpu.dot_dimension_numbers<[1], [0], [0], [1], [0, 0, 1, 1], [], []>} : vector<16x8xbf16>, vector<8x272xbf16>, vector<16x272xf32> -> vector<16x272xf32>
    %83 = arith.addf %78, %82 : vector<16x272xf32>
    %84 = vector.extract_strided_slice %68 {offsets = [0, 18], sizes = [8, 272], strides = [1, 1]} : vector<8x306xbf16> to vector<8x272xbf16>
    %c15 = arith.constant 15 : index
    %c0_61 = arith.constant 0 : index
    %c0_62 = arith.constant 0 : index
    %85 = vector.load %arg2[%c15, %c0_61, %c0_62] : memref<16x16x8xbf16, #tpu.memory_space<vmem>>, vector<1x16x8xbf16>
    %86 = vector.shape_cast %85 : vector<1x16x8xbf16> to vector<16x8xbf16>
    %cst_63 = arith.constant dense<0.000000e+00> : vector<16x272xf32>
    %87 = tpu.matmul %86, %84, %cst_63 {dimension_numbers = #tpu.dot_dimension_numbers<[1], [0], [0], [1], [0, 0, 1, 1], [], []>} : vector<16x8xbf16>, vector<8x272xbf16>, vector<16x272xf32> -> vector<16x272xf32>
    %88 = arith.addf %83, %87 : vector<16x272xf32>
    %c0_64 = arith.constant 0 : index
    %c0_65 = arith.constant 0 : index
    %c0_66 = arith.constant 0 : index
    %89 = vector.load %arg3[%c0_64, %c0_65, %c0_66] : memref<1x16x272xf32, #tpu.memory_space<vmem>>, vector<1x16x272xf32>
    %90 = vector.shape_cast %89 : vector<1x16x272xf32> to vector<16x272xf32>
    %91 = vector.shape_cast %88 : vector<16x272xf32> to vector<1x16x272xf32>
    tpu.vector_store %arg3[%c0_64, %c0_65, %c0_66], %91 {strides = array<i32>} : memref<1x16x272xf32, #tpu.memory_space<vmem>>, vector<1x16x272xf32>,
    %92 = tpu.iota {dimensions = array<i32: 1>} : vector<1x272xi32>
    %c17_i32 = arith.constant 17 : i32
    %c0_i32 = arith.constant 0 : i32
    %93 = arith.cmpi eq, %c17_i32, %c0_i32 : i32
    %c1_i32 = arith.constant 1 : i32
    %94 = arith.select %93, %c1_i32, %c17_i32 : i32
    %95 = vector.broadcast %94 : i32 to vector<1x272xi32>
    %96 = arith.remsi %92, %95 : vector<1x272xi32>
    %c0_i32_67 = arith.constant 0 : i32
    %97 = vector.broadcast %c0_i32_67 : i32 to vector<1x272xi32>
    %98 = arith.cmpi ne, %96, %97 : vector<1x272xi32>
    %c0_i32_68 = arith.constant 0 : i32
    %99 = vector.broadcast %c0_i32_68 : i32 to vector<1x272xi32>
    %100 = arith.cmpi slt, %96, %99 : vector<1x272xi32>
    %c0_i32_69 = arith.constant 0 : i32
    %101 = arith.cmpi slt, %94, %c0_i32_69 : i32
    %102 = vector.broadcast %101 : i1 to vector<1x272xi1>
    %103 = vector.broadcast %102 : vector<1x272xi1> to vector<1x272xi1>
    %104 = arith.xori %100, %103 : vector<1x272xi1>
    %105 = arith.andi %104, %98 : vector<1x272xi1>
    %106 = vector.broadcast %94 : i32 to vector<1x272xi32>
    %107 = arith.addi %96, %106 : vector<1x272xi32>
    %108 = arith.select %105, %107, %96 : vector<1x272xi1>, vector<1x272xi32>
    %c16_i32 = arith.constant 16 : i32
    %109 = vector.broadcast %c16_i32 : i32 to vector<1x272xi32>
    %110 = arith.cmpi slt, %108, %109 : vector<1x272xi32>
    %cst_70 = arith.constant 0.000000e+00 : f32
    %111 = vector.shape_cast %110 : vector<1x272xi1> to vector<1x272xi1>
    %112 = vector.broadcast %111 : vector<1x272xi1> to vector<16x272xi1>
    %113 = vector.broadcast %cst_70 : f32 to vector<16x272xf32>
    %114 = arith.select %112, %88, %113 : vector<16x272xi1>, vector<16x272xf32>
    %cst_71 = arith.constant dense<0.000000e+00> : vector<16xf32>
    %115 = vector.multi_reduction <add>, %114, %cst_71 [1] : vector<16x272xf32> to vector<16xf32>
    %116 = vector.shape_cast %115 : vector<16xf32> to vector<16x1xf32>
    %117 = arith.mulf %114, %114 : vector<16x272xf32>
    %cst_72 = arith.constant dense<0.000000e+00> : vector<16xf32>
    %118 = vector.multi_reduction <add>, %117, %cst_72 [1] : vector<16x272xf32> to vector<16xf32>
    %119 = vector.shape_cast %118 : vector<16xf32> to vector<16x1xf32>
    %120 = tpu.concatenate %116, %119 in 1 : vector<16x1xf32>, vector<16x1xf32> -> vector<16x2xf32>
    %c0_73 = arith.constant 0 : index
    %c0_74 = arith.constant 0 : index
    %c0_75 = arith.constant 0 : index
    %121 = vector.load %arg4[%c0_73, %c0_74, %c0_75] : memref<1x16x2xf32, #tpu.memory_space<vmem>>, vector<1x16x2xf32>
    %122 = vector.shape_cast %121 : vector<1x16x2xf32> to vector<16x2xf32>
    %123 = vector.shape_cast %120 : vector<16x2xf32> to vector<1x16x2xf32>
    tpu.vector_store %arg4[%c0_73, %c0_74, %c0_75], %123 {strides = array<i32>} : memref<1x16x2xf32, #tpu.memory_space<vmem>>, vector<1x16x2xf32>,
    return
  }
  func.func @transform_0(%arg0: i32) -> (i32, i32, i32, i32) {
    %c0_i32 = arith.constant 0 : i32
    %c0_i32_0 = arith.constant 0 : i32
    %c0_i32_1 = arith.constant 0 : i32
    %c0_i32_2 = arith.constant 0 : i32
    return %arg0, %c0_i32, %c0_i32_0, %c0_i32_1 : i32, i32, i32, i32
  }
  func.func @transform_1(%arg0: i32) -> (i32, i32, i32) {
    %c0_i32 = arith.constant 0 : i32
    %c0_i32_0 = arith.constant 0 : i32
    %c0_i32_1 = arith.constant 0 : i32
    %c0_i32_2 = arith.constant 0 : i32
    return %c0_i32, %c0_i32_0, %c0_i32_1 : i32, i32, i32
  }
  func.func @transform_2(%arg0: i32) -> (i32, i32, i32) {
    %c0_i32 = arith.constant 0 : i32
    %c0_i32_0 = arith.constant 0 : i32
    %c0_i32_1 = arith.constant 0 : i32
    return %arg0, %c0_i32, %c0_i32_0 : i32, i32, i32
  }
  func.func @transform_3(%arg0: i32) -> (i32, i32, i32) {
    %c0_i32 = arith.constant 0 : i32
    %c0_i32_0 = arith.constant 0 : i32
    %c0_i32_1 = arith.constant 0 : i32
    return %arg0, %c0_i32, %c0_i32_0 : i32, i32, i32
  }
}

module attributes {stable_mosaic.version = 11 : i64} {
  func.func @kernel(%arg0: i32, %arg1: memref<1x4x16x90xbf16, #tpu.memory_space<vmem>>, %arg2: memref<16x32x16xbf16, #tpu.memory_space<vmem>>, %arg3: memref<1x32x72xf32, #tpu.memory_space<vmem>>, %arg4: memref<1x32x2xf32, #tpu.memory_space<vmem>>) attributes {dimension_semantics = [#tpu.dimension_semantics<parallel>], iteration_bounds = array<i64: 4>, scalar_prefetch = 0 : i64, scratch_operands = 0 : i64, tpu.core_type = #tpu.core_type<tc>, window_params = [{transform_indices = @transform_0, window_bounds = array<i64: 1, 4, 16, 90>}, {pipeline_mode = #tpu.pipeline_mode<synchronous>, transform_indices = @transform_1, window_bounds = array<i64: 16, 32, 16>}, {transform_indices = @transform_2, window_bounds = array<i64: 1, 32, 72>}, {transform_indices = @transform_3, window_bounds = array<i64: 1, 32, 2>}]} {
    %cst = arith.constant 0.000000e+00 : f32
    %0 = vector.broadcast %cst : f32 to vector<32x72xf32>
    %c0 = arith.constant 0 : index
    %c0_0 = arith.constant 0 : index
    %c0_1 = arith.constant 0 : index
    %c0_2 = arith.constant 0 : index
    %1 = vector.load %arg1[%c0, %c0_0, %c0_1, %c0_2] : memref<1x4x16x90xbf16, #tpu.memory_space<vmem>>, vector<1x1x16x90xbf16>
    %2 = vector.shape_cast %1 : vector<1x1x16x90xbf16> to vector<16x90xbf16>
    %3 = vector.extract_strided_slice %2 {offsets = [0, 0], sizes = [16, 72], strides = [1, 1]} : vector<16x90xbf16> to vector<16x72xbf16>
    %c0_3 = arith.constant 0 : index
    %c0_4 = arith.constant 0 : index
    %c0_5 = arith.constant 0 : index
    %4 = vector.load %arg2[%c0_3, %c0_4, %c0_5] : memref<16x32x16xbf16, #tpu.memory_space<vmem>>, vector<1x32x16xbf16>
    %5 = vector.shape_cast %4 : vector<1x32x16xbf16> to vector<32x16xbf16>
    %cst_6 = arith.constant dense<0.000000e+00> : vector<32x72xf32>
    %6 = tpu.matmul %5, %3, %cst_6 {dimension_numbers = #tpu.dot_dimension_numbers<[1], [0], [0], [1], [0, 0, 1, 1], [], []>} : vector<32x16xbf16>, vector<16x72xbf16>, vector<32x72xf32> -> vector<32x72xf32>
    %7 = arith.addf %0, %6 : vector<32x72xf32>
    %8 = vector.extract_strided_slice %2 {offsets = [0, 1], sizes = [16, 72], strides = [1, 1]} : vector<16x90xbf16> to vector<16x72xbf16>
    %c2 = arith.constant 2 : index
    %c0_7 = arith.constant 0 : index
    %c0_8 = arith.constant 0 : index
    %9 = vector.load %arg2[%c2, %c0_7, %c0_8] : memref<16x32x16xbf16, #tpu.memory_space<vmem>>, vector<1x32x16xbf16>
    %10 = vector.shape_cast %9 : vector<1x32x16xbf16> to vector<32x16xbf16>
    %cst_9 = arith.constant dense<0.000000e+00> : vector<32x72xf32>
    %11 = tpu.matmul %10, %8, %cst_9 {dimension_numbers = #tpu.dot_dimension_numbers<[1], [0], [0], [1], [0, 0, 1, 1], [], []>} : vector<32x16xbf16>, vector<16x72xbf16>, vector<32x72xf32> -> vector<32x72xf32>
    %12 = arith.addf %7, %11 : vector<32x72xf32>
    %13 = vector.extract_strided_slice %2 {offsets = [0, 9], sizes = [16, 72], strides = [1, 1]} : vector<16x90xbf16> to vector<16x72xbf16>
    %c8 = arith.constant 8 : index
    %c0_10 = arith.constant 0 : index
    %c0_11 = arith.constant 0 : index
    %14 = vector.load %arg2[%c8, %c0_10, %c0_11] : memref<16x32x16xbf16, #tpu.memory_space<vmem>>, vector<1x32x16xbf16>
    %15 = vector.shape_cast %14 : vector<1x32x16xbf16> to vector<32x16xbf16>
    %cst_12 = arith.constant dense<0.000000e+00> : vector<32x72xf32>
    %16 = tpu.matmul %15, %13, %cst_12 {dimension_numbers = #tpu.dot_dimension_numbers<[1], [0], [0], [1], [0, 0, 1, 1], [], []>} : vector<32x16xbf16>, vector<16x72xbf16>, vector<32x72xf32> -> vector<32x72xf32>
    %17 = arith.addf %12, %16 : vector<32x72xf32>
    %18 = vector.extract_strided_slice %2 {offsets = [0, 10], sizes = [16, 72], strides = [1, 1]} : vector<16x90xbf16> to vector<16x72xbf16>
    %c10 = arith.constant 10 : index
    %c0_13 = arith.constant 0 : index
    %c0_14 = arith.constant 0 : index
    %19 = vector.load %arg2[%c10, %c0_13, %c0_14] : memref<16x32x16xbf16, #tpu.memory_space<vmem>>, vector<1x32x16xbf16>
    %20 = vector.shape_cast %19 : vector<1x32x16xbf16> to vector<32x16xbf16>
    %cst_15 = arith.constant dense<0.000000e+00> : vector<32x72xf32>
    %21 = tpu.matmul %20, %18, %cst_15 {dimension_numbers = #tpu.dot_dimension_numbers<[1], [0], [0], [1], [0, 0, 1, 1], [], []>} : vector<32x16xbf16>, vector<16x72xbf16>, vector<32x72xf32> -> vector<32x72xf32>
    %22 = arith.addf %17, %21 : vector<32x72xf32>
    %c0_16 = arith.constant 0 : index
    %c1 = arith.constant 1 : index
    %c0_17 = arith.constant 0 : index
    %c0_18 = arith.constant 0 : index
    %23 = vector.load %arg1[%c0_16, %c1, %c0_17, %c0_18] : memref<1x4x16x90xbf16, #tpu.memory_space<vmem>>, vector<1x1x16x90xbf16>
    %24 = vector.shape_cast %23 : vector<1x1x16x90xbf16> to vector<16x90xbf16>
    %25 = vector.extract_strided_slice %24 {offsets = [0, 0], sizes = [16, 72], strides = [1, 1]} : vector<16x90xbf16> to vector<16x72xbf16>
    %c1_19 = arith.constant 1 : index
    %c0_20 = arith.constant 0 : index
    %c0_21 = arith.constant 0 : index
    %26 = vector.load %arg2[%c1_19, %c0_20, %c0_21] : memref<16x32x16xbf16, #tpu.memory_space<vmem>>, vector<1x32x16xbf16>
    %27 = vector.shape_cast %26 : vector<1x32x16xbf16> to vector<32x16xbf16>
    %cst_22 = arith.constant dense<0.000000e+00> : vector<32x72xf32>
    %28 = tpu.matmul %27, %25, %cst_22 {dimension_numbers = #tpu.dot_dimension_numbers<[1], [0], [0], [1], [0, 0, 1, 1], [], []>} : vector<32x16xbf16>, vector<16x72xbf16>, vector<32x72xf32> -> vector<32x72xf32>
    %29 = arith.addf %22, %28 : vector<32x72xf32>
    %30 = vector.extract_strided_slice %24 {offsets = [0, 1], sizes = [16, 72], strides = [1, 1]} : vector<16x90xbf16> to vector<16x72xbf16>
    %c3 = arith.constant 3 : index
    %c0_23 = arith.constant 0 : index
    %c0_24 = arith.constant 0 : index
    %31 = vector.load %arg2[%c3, %c0_23, %c0_24] : memref<16x32x16xbf16, #tpu.memory_space<vmem>>, vector<1x32x16xbf16>
    %32 = vector.shape_cast %31 : vector<1x32x16xbf16> to vector<32x16xbf16>
    %cst_25 = arith.constant dense<0.000000e+00> : vector<32x72xf32>
    %33 = tpu.matmul %32, %30, %cst_25 {dimension_numbers = #tpu.dot_dimension_numbers<[1], [0], [0], [1], [0, 0, 1, 1], [], []>} : vector<32x16xbf16>, vector<16x72xbf16>, vector<32x72xf32> -> vector<32x72xf32>
    %34 = arith.addf %29, %33 : vector<32x72xf32>
    %35 = vector.extract_strided_slice %24 {offsets = [0, 9], sizes = [16, 72], strides = [1, 1]} : vector<16x90xbf16> to vector<16x72xbf16>
    %c9 = arith.constant 9 : index
    %c0_26 = arith.constant 0 : index
    %c0_27 = arith.constant 0 : index
    %36 = vector.load %arg2[%c9, %c0_26, %c0_27] : memref<16x32x16xbf16, #tpu.memory_space<vmem>>, vector<1x32x16xbf16>
    %37 = vector.shape_cast %36 : vector<1x32x16xbf16> to vector<32x16xbf16>
    %cst_28 = arith.constant dense<0.000000e+00> : vector<32x72xf32>
    %38 = tpu.matmul %37, %35, %cst_28 {dimension_numbers = #tpu.dot_dimension_numbers<[1], [0], [0], [1], [0, 0, 1, 1], [], []>} : vector<32x16xbf16>, vector<16x72xbf16>, vector<32x72xf32> -> vector<32x72xf32>
    %39 = arith.addf %34, %38 : vector<32x72xf32>
    %40 = vector.extract_strided_slice %24 {offsets = [0, 10], sizes = [16, 72], strides = [1, 1]} : vector<16x90xbf16> to vector<16x72xbf16>
    %c11 = arith.constant 11 : index
    %c0_29 = arith.constant 0 : index
    %c0_30 = arith.constant 0 : index
    %41 = vector.load %arg2[%c11, %c0_29, %c0_30] : memref<16x32x16xbf16, #tpu.memory_space<vmem>>, vector<1x32x16xbf16>
    %42 = vector.shape_cast %41 : vector<1x32x16xbf16> to vector<32x16xbf16>
    %cst_31 = arith.constant dense<0.000000e+00> : vector<32x72xf32>
    %43 = tpu.matmul %42, %40, %cst_31 {dimension_numbers = #tpu.dot_dimension_numbers<[1], [0], [0], [1], [0, 0, 1, 1], [], []>} : vector<32x16xbf16>, vector<16x72xbf16>, vector<32x72xf32> -> vector<32x72xf32>
    %44 = arith.addf %39, %43 : vector<32x72xf32>
    %c0_32 = arith.constant 0 : index
    %c2_33 = arith.constant 2 : index
    %c0_34 = arith.constant 0 : index
    %c0_35 = arith.constant 0 : index
    %45 = vector.load %arg1[%c0_32, %c2_33, %c0_34, %c0_35] : memref<1x4x16x90xbf16, #tpu.memory_space<vmem>>, vector<1x1x16x90xbf16>
    %46 = vector.shape_cast %45 : vector<1x1x16x90xbf16> to vector<16x90xbf16>
    %47 = vector.extract_strided_slice %46 {offsets = [0, 0], sizes = [16, 72], strides = [1, 1]} : vector<16x90xbf16> to vector<16x72xbf16>
    %c4 = arith.constant 4 : index
    %c0_36 = arith.constant 0 : index
    %c0_37 = arith.constant 0 : index
    %48 = vector.load %arg2[%c4, %c0_36, %c0_37] : memref<16x32x16xbf16, #tpu.memory_space<vmem>>, vector<1x32x16xbf16>
    %49 = vector.shape_cast %48 : vector<1x32x16xbf16> to vector<32x16xbf16>
    %cst_38 = arith.constant dense<0.000000e+00> : vector<32x72xf32>
    %50 = tpu.matmul %49, %47, %cst_38 {dimension_numbers = #tpu.dot_dimension_numbers<[1], [0], [0], [1], [0, 0, 1, 1], [], []>} : vector<32x16xbf16>, vector<16x72xbf16>, vector<32x72xf32> -> vector<32x72xf32>
    %51 = arith.addf %44, %50 : vector<32x72xf32>
    %52 = vector.extract_strided_slice %46 {offsets = [0, 1], sizes = [16, 72], strides = [1, 1]} : vector<16x90xbf16> to vector<16x72xbf16>
    %c6 = arith.constant 6 : index
    %c0_39 = arith.constant 0 : index
    %c0_40 = arith.constant 0 : index
    %53 = vector.load %arg2[%c6, %c0_39, %c0_40] : memref<16x32x16xbf16, #tpu.memory_space<vmem>>, vector<1x32x16xbf16>
    %54 = vector.shape_cast %53 : vector<1x32x16xbf16> to vector<32x16xbf16>
    %cst_41 = arith.constant dense<0.000000e+00> : vector<32x72xf32>
    %55 = tpu.matmul %54, %52, %cst_41 {dimension_numbers = #tpu.dot_dimension_numbers<[1], [0], [0], [1], [0, 0, 1, 1], [], []>} : vector<32x16xbf16>, vector<16x72xbf16>, vector<32x72xf32> -> vector<32x72xf32>
    %56 = arith.addf %51, %55 : vector<32x72xf32>
    %57 = vector.extract_strided_slice %46 {offsets = [0, 9], sizes = [16, 72], strides = [1, 1]} : vector<16x90xbf16> to vector<16x72xbf16>
    %c12 = arith.constant 12 : index
    %c0_42 = arith.constant 0 : index
    %c0_43 = arith.constant 0 : index
    %58 = vector.load %arg2[%c12, %c0_42, %c0_43] : memref<16x32x16xbf16, #tpu.memory_space<vmem>>, vector<1x32x16xbf16>
    %59 = vector.shape_cast %58 : vector<1x32x16xbf16> to vector<32x16xbf16>
    %cst_44 = arith.constant dense<0.000000e+00> : vector<32x72xf32>
    %60 = tpu.matmul %59, %57, %cst_44 {dimension_numbers = #tpu.dot_dimension_numbers<[1], [0], [0], [1], [0, 0, 1, 1], [], []>} : vector<32x16xbf16>, vector<16x72xbf16>, vector<32x72xf32> -> vector<32x72xf32>
    %61 = arith.addf %56, %60 : vector<32x72xf32>
    %62 = vector.extract_strided_slice %46 {offsets = [0, 10], sizes = [16, 72], strides = [1, 1]} : vector<16x90xbf16> to vector<16x72xbf16>
    %c14 = arith.constant 14 : index
    %c0_45 = arith.constant 0 : index
    %c0_46 = arith.constant 0 : index
    %63 = vector.load %arg2[%c14, %c0_45, %c0_46] : memref<16x32x16xbf16, #tpu.memory_space<vmem>>, vector<1x32x16xbf16>
    %64 = vector.shape_cast %63 : vector<1x32x16xbf16> to vector<32x16xbf16>
    %cst_47 = arith.constant dense<0.000000e+00> : vector<32x72xf32>
    %65 = tpu.matmul %64, %62, %cst_47 {dimension_numbers = #tpu.dot_dimension_numbers<[1], [0], [0], [1], [0, 0, 1, 1], [], []>} : vector<32x16xbf16>, vector<16x72xbf16>, vector<32x72xf32> -> vector<32x72xf32>
    %66 = arith.addf %61, %65 : vector<32x72xf32>
    %c0_48 = arith.constant 0 : index
    %c3_49 = arith.constant 3 : index
    %c0_50 = arith.constant 0 : index
    %c0_51 = arith.constant 0 : index
    %67 = vector.load %arg1[%c0_48, %c3_49, %c0_50, %c0_51] : memref<1x4x16x90xbf16, #tpu.memory_space<vmem>>, vector<1x1x16x90xbf16>
    %68 = vector.shape_cast %67 : vector<1x1x16x90xbf16> to vector<16x90xbf16>
    %69 = vector.extract_strided_slice %68 {offsets = [0, 0], sizes = [16, 72], strides = [1, 1]} : vector<16x90xbf16> to vector<16x72xbf16>
    %c5 = arith.constant 5 : index
    %c0_52 = arith.constant 0 : index
    %c0_53 = arith.constant 0 : index
    %70 = vector.load %arg2[%c5, %c0_52, %c0_53] : memref<16x32x16xbf16, #tpu.memory_space<vmem>>, vector<1x32x16xbf16>
    %71 = vector.shape_cast %70 : vector<1x32x16xbf16> to vector<32x16xbf16>
    %cst_54 = arith.constant dense<0.000000e+00> : vector<32x72xf32>
    %72 = tpu.matmul %71, %69, %cst_54 {dimension_numbers = #tpu.dot_dimension_numbers<[1], [0], [0], [1], [0, 0, 1, 1], [], []>} : vector<32x16xbf16>, vector<16x72xbf16>, vector<32x72xf32> -> vector<32x72xf32>
    %73 = arith.addf %66, %72 : vector<32x72xf32>
    %74 = vector.extract_strided_slice %68 {offsets = [0, 1], sizes = [16, 72], strides = [1, 1]} : vector<16x90xbf16> to vector<16x72xbf16>
    %c7 = arith.constant 7 : index
    %c0_55 = arith.constant 0 : index
    %c0_56 = arith.constant 0 : index
    %75 = vector.load %arg2[%c7, %c0_55, %c0_56] : memref<16x32x16xbf16, #tpu.memory_space<vmem>>, vector<1x32x16xbf16>
    %76 = vector.shape_cast %75 : vector<1x32x16xbf16> to vector<32x16xbf16>
    %cst_57 = arith.constant dense<0.000000e+00> : vector<32x72xf32>
    %77 = tpu.matmul %76, %74, %cst_57 {dimension_numbers = #tpu.dot_dimension_numbers<[1], [0], [0], [1], [0, 0, 1, 1], [], []>} : vector<32x16xbf16>, vector<16x72xbf16>, vector<32x72xf32> -> vector<32x72xf32>
    %78 = arith.addf %73, %77 : vector<32x72xf32>
    %79 = vector.extract_strided_slice %68 {offsets = [0, 9], sizes = [16, 72], strides = [1, 1]} : vector<16x90xbf16> to vector<16x72xbf16>
    %c13 = arith.constant 13 : index
    %c0_58 = arith.constant 0 : index
    %c0_59 = arith.constant 0 : index
    %80 = vector.load %arg2[%c13, %c0_58, %c0_59] : memref<16x32x16xbf16, #tpu.memory_space<vmem>>, vector<1x32x16xbf16>
    %81 = vector.shape_cast %80 : vector<1x32x16xbf16> to vector<32x16xbf16>
    %cst_60 = arith.constant dense<0.000000e+00> : vector<32x72xf32>
    %82 = tpu.matmul %81, %79, %cst_60 {dimension_numbers = #tpu.dot_dimension_numbers<[1], [0], [0], [1], [0, 0, 1, 1], [], []>} : vector<32x16xbf16>, vector<16x72xbf16>, vector<32x72xf32> -> vector<32x72xf32>
    %83 = arith.addf %78, %82 : vector<32x72xf32>
    %84 = vector.extract_strided_slice %68 {offsets = [0, 10], sizes = [16, 72], strides = [1, 1]} : vector<16x90xbf16> to vector<16x72xbf16>
    %c15 = arith.constant 15 : index
    %c0_61 = arith.constant 0 : index
    %c0_62 = arith.constant 0 : index
    %85 = vector.load %arg2[%c15, %c0_61, %c0_62] : memref<16x32x16xbf16, #tpu.memory_space<vmem>>, vector<1x32x16xbf16>
    %86 = vector.shape_cast %85 : vector<1x32x16xbf16> to vector<32x16xbf16>
    %cst_63 = arith.constant dense<0.000000e+00> : vector<32x72xf32>
    %87 = tpu.matmul %86, %84, %cst_63 {dimension_numbers = #tpu.dot_dimension_numbers<[1], [0], [0], [1], [0, 0, 1, 1], [], []>} : vector<32x16xbf16>, vector<16x72xbf16>, vector<32x72xf32> -> vector<32x72xf32>
    %88 = arith.addf %83, %87 : vector<32x72xf32>
    %c0_64 = arith.constant 0 : index
    %c0_65 = arith.constant 0 : index
    %c0_66 = arith.constant 0 : index
    %89 = vector.load %arg3[%c0_64, %c0_65, %c0_66] : memref<1x32x72xf32, #tpu.memory_space<vmem>>, vector<1x32x72xf32>
    %90 = vector.shape_cast %89 : vector<1x32x72xf32> to vector<32x72xf32>
    %91 = vector.shape_cast %88 : vector<32x72xf32> to vector<1x32x72xf32>
    tpu.vector_store %arg3[%c0_64, %c0_65, %c0_66], %91 {strides = array<i32>} : memref<1x32x72xf32, #tpu.memory_space<vmem>>, vector<1x32x72xf32>,
    %92 = tpu.iota {dimensions = array<i32: 1>} : vector<1x72xi32>
    %c9_i32 = arith.constant 9 : i32
    %c0_i32 = arith.constant 0 : i32
    %93 = arith.cmpi eq, %c9_i32, %c0_i32 : i32
    %c1_i32 = arith.constant 1 : i32
    %94 = arith.select %93, %c1_i32, %c9_i32 : i32
    %95 = vector.broadcast %94 : i32 to vector<1x72xi32>
    %96 = arith.remsi %92, %95 : vector<1x72xi32>
    %c0_i32_67 = arith.constant 0 : i32
    %97 = vector.broadcast %c0_i32_67 : i32 to vector<1x72xi32>
    %98 = arith.cmpi ne, %96, %97 : vector<1x72xi32>
    %c0_i32_68 = arith.constant 0 : i32
    %99 = vector.broadcast %c0_i32_68 : i32 to vector<1x72xi32>
    %100 = arith.cmpi slt, %96, %99 : vector<1x72xi32>
    %c0_i32_69 = arith.constant 0 : i32
    %101 = arith.cmpi slt, %94, %c0_i32_69 : i32
    %102 = vector.broadcast %101 : i1 to vector<1x72xi1>
    %103 = vector.broadcast %102 : vector<1x72xi1> to vector<1x72xi1>
    %104 = arith.xori %100, %103 : vector<1x72xi1>
    %105 = arith.andi %104, %98 : vector<1x72xi1>
    %106 = vector.broadcast %94 : i32 to vector<1x72xi32>
    %107 = arith.addi %96, %106 : vector<1x72xi32>
    %108 = arith.select %105, %107, %96 : vector<1x72xi1>, vector<1x72xi32>
    %c8_i32 = arith.constant 8 : i32
    %109 = vector.broadcast %c8_i32 : i32 to vector<1x72xi32>
    %110 = arith.cmpi slt, %108, %109 : vector<1x72xi32>
    %cst_70 = arith.constant 0.000000e+00 : f32
    %111 = vector.shape_cast %110 : vector<1x72xi1> to vector<1x72xi1>
    %112 = vector.broadcast %111 : vector<1x72xi1> to vector<32x72xi1>
    %113 = vector.broadcast %cst_70 : f32 to vector<32x72xf32>
    %114 = arith.select %112, %88, %113 : vector<32x72xi1>, vector<32x72xf32>
    %cst_71 = arith.constant dense<0.000000e+00> : vector<32xf32>
    %115 = vector.multi_reduction <add>, %114, %cst_71 [1] : vector<32x72xf32> to vector<32xf32>
    %116 = vector.shape_cast %115 : vector<32xf32> to vector<32x1xf32>
    %117 = arith.mulf %114, %114 : vector<32x72xf32>
    %cst_72 = arith.constant dense<0.000000e+00> : vector<32xf32>
    %118 = vector.multi_reduction <add>, %117, %cst_72 [1] : vector<32x72xf32> to vector<32xf32>
    %119 = vector.shape_cast %118 : vector<32xf32> to vector<32x1xf32>
    %120 = tpu.concatenate %116, %119 in 1 : vector<32x1xf32>, vector<32x1xf32> -> vector<32x2xf32>
    %c0_73 = arith.constant 0 : index
    %c0_74 = arith.constant 0 : index
    %c0_75 = arith.constant 0 : index
    %121 = vector.load %arg4[%c0_73, %c0_74, %c0_75] : memref<1x32x2xf32, #tpu.memory_space<vmem>>, vector<1x32x2xf32>
    %122 = vector.shape_cast %121 : vector<1x32x2xf32> to vector<32x2xf32>
    %123 = vector.shape_cast %120 : vector<32x2xf32> to vector<1x32x2xf32>
    tpu.vector_store %arg4[%c0_73, %c0_74, %c0_75], %123 {strides = array<i32>} : memref<1x32x2xf32, #tpu.memory_space<vmem>>, vector<1x32x2xf32>,
    return
  }
  func.func @transform_0(%arg0: i32) -> (i32, i32, i32, i32) {
    %c0_i32 = arith.constant 0 : i32
    %c0_i32_0 = arith.constant 0 : i32
    %c0_i32_1 = arith.constant 0 : i32
    %c0_i32_2 = arith.constant 0 : i32
    return %arg0, %c0_i32, %c0_i32_0, %c0_i32_1 : i32, i32, i32, i32
  }
  func.func @transform_1(%arg0: i32) -> (i32, i32, i32) {
    %c0_i32 = arith.constant 0 : i32
    %c0_i32_0 = arith.constant 0 : i32
    %c0_i32_1 = arith.constant 0 : i32
    %c0_i32_2 = arith.constant 0 : i32
    return %c0_i32, %c0_i32_0, %c0_i32_1 : i32, i32, i32
  }
  func.func @transform_2(%arg0: i32) -> (i32, i32, i32) {
    %c0_i32 = arith.constant 0 : i32
    %c0_i32_0 = arith.constant 0 : i32
    %c0_i32_1 = arith.constant 0 : i32
    return %arg0, %c0_i32, %c0_i32_0 : i32, i32, i32
  }
  func.func @transform_3(%arg0: i32) -> (i32, i32, i32) {
    %c0_i32 = arith.constant 0 : i32
    %c0_i32_0 = arith.constant 0 : i32
    %c0_i32_1 = arith.constant 0 : i32
    return %arg0, %c0_i32, %c0_i32_0 : i32, i32, i32
  }
}

module attributes {stable_mosaic.version = 11 : i64} {
  func.func @kernel(%arg0: i32, %arg1: memref<1x4x32x30xbf16, #tpu.memory_space<vmem>>, %arg2: memref<16x64x32xbf16, #tpu.memory_space<vmem>>, %arg3: memref<1x64x20xf32, #tpu.memory_space<vmem>>, %arg4: memref<1x64x2xf32, #tpu.memory_space<vmem>>) attributes {dimension_semantics = [#tpu.dimension_semantics<parallel>], iteration_bounds = array<i64: 4>, scalar_prefetch = 0 : i64, scratch_operands = 0 : i64, tpu.core_type = #tpu.core_type<tc>, window_params = [{transform_indices = @transform_0, window_bounds = array<i64: 1, 4, 32, 30>}, {pipeline_mode = #tpu.pipeline_mode<synchronous>, transform_indices = @transform_1, window_bounds = array<i64: 16, 64, 32>}, {transform_indices = @transform_2, window_bounds = array<i64: 1, 64, 20>}, {transform_indices = @transform_3, window_bounds = array<i64: 1, 64, 2>}]} {
    %cst = arith.constant 0.000000e+00 : f32
    %0 = vector.broadcast %cst : f32 to vector<64x20xf32>
    %c0 = arith.constant 0 : index
    %c0_0 = arith.constant 0 : index
    %c0_1 = arith.constant 0 : index
    %c0_2 = arith.constant 0 : index
    %1 = vector.load %arg1[%c0, %c0_0, %c0_1, %c0_2] : memref<1x4x32x30xbf16, #tpu.memory_space<vmem>>, vector<1x1x32x30xbf16>
    %2 = vector.shape_cast %1 : vector<1x1x32x30xbf16> to vector<32x30xbf16>
    %3 = vector.extract_strided_slice %2 {offsets = [0, 0], sizes = [32, 20], strides = [1, 1]} : vector<32x30xbf16> to vector<32x20xbf16>
    %c0_3 = arith.constant 0 : index
    %c0_4 = arith.constant 0 : index
    %c0_5 = arith.constant 0 : index
    %4 = vector.load %arg2[%c0_3, %c0_4, %c0_5] : memref<16x64x32xbf16, #tpu.memory_space<vmem>>, vector<1x64x32xbf16>
    %5 = vector.shape_cast %4 : vector<1x64x32xbf16> to vector<64x32xbf16>
    %cst_6 = arith.constant dense<0.000000e+00> : vector<64x20xf32>
    %6 = tpu.matmul %5, %3, %cst_6 {dimension_numbers = #tpu.dot_dimension_numbers<[1], [0], [0], [1], [0, 0, 1, 1], [], []>} : vector<64x32xbf16>, vector<32x20xbf16>, vector<64x20xf32> -> vector<64x20xf32>
    %7 = arith.addf %0, %6 : vector<64x20xf32>
    %8 = vector.extract_strided_slice %2 {offsets = [0, 1], sizes = [32, 20], strides = [1, 1]} : vector<32x30xbf16> to vector<32x20xbf16>
    %c2 = arith.constant 2 : index
    %c0_7 = arith.constant 0 : index
    %c0_8 = arith.constant 0 : index
    %9 = vector.load %arg2[%c2, %c0_7, %c0_8] : memref<16x64x32xbf16, #tpu.memory_space<vmem>>, vector<1x64x32xbf16>
    %10 = vector.shape_cast %9 : vector<1x64x32xbf16> to vector<64x32xbf16>
    %cst_9 = arith.constant dense<0.000000e+00> : vector<64x20xf32>
    %11 = tpu.matmul %10, %8, %cst_9 {dimension_numbers = #tpu.dot_dimension_numbers<[1], [0], [0], [1], [0, 0, 1, 1], [], []>} : vector<64x32xbf16>, vector<32x20xbf16>, vector<64x20xf32> -> vector<64x20xf32>
    %12 = arith.addf %7, %11 : vector<64x20xf32>
    %13 = vector.extract_strided_slice %2 {offsets = [0, 5], sizes = [32, 20], strides = [1, 1]} : vector<32x30xbf16> to vector<32x20xbf16>
    %c8 = arith.constant 8 : index
    %c0_10 = arith.constant 0 : index
    %c0_11 = arith.constant 0 : index
    %14 = vector.load %arg2[%c8, %c0_10, %c0_11] : memref<16x64x32xbf16, #tpu.memory_space<vmem>>, vector<1x64x32xbf16>
    %15 = vector.shape_cast %14 : vector<1x64x32xbf16> to vector<64x32xbf16>
    %cst_12 = arith.constant dense<0.000000e+00> : vector<64x20xf32>
    %16 = tpu.matmul %15, %13, %cst_12 {dimension_numbers = #tpu.dot_dimension_numbers<[1], [0], [0], [1], [0, 0, 1, 1], [], []>} : vector<64x32xbf16>, vector<32x20xbf16>, vector<64x20xf32> -> vector<64x20xf32>
    %17 = arith.addf %12, %16 : vector<64x20xf32>
    %18 = vector.extract_strided_slice %2 {offsets = [0, 6], sizes = [32, 20], strides = [1, 1]} : vector<32x30xbf16> to vector<32x20xbf16>
    %c10 = arith.constant 10 : index
    %c0_13 = arith.constant 0 : index
    %c0_14 = arith.constant 0 : index
    %19 = vector.load %arg2[%c10, %c0_13, %c0_14] : memref<16x64x32xbf16, #tpu.memory_space<vmem>>, vector<1x64x32xbf16>
    %20 = vector.shape_cast %19 : vector<1x64x32xbf16> to vector<64x32xbf16>
    %cst_15 = arith.constant dense<0.000000e+00> : vector<64x20xf32>
    %21 = tpu.matmul %20, %18, %cst_15 {dimension_numbers = #tpu.dot_dimension_numbers<[1], [0], [0], [1], [0, 0, 1, 1], [], []>} : vector<64x32xbf16>, vector<32x20xbf16>, vector<64x20xf32> -> vector<64x20xf32>
    %22 = arith.addf %17, %21 : vector<64x20xf32>
    %c0_16 = arith.constant 0 : index
    %c1 = arith.constant 1 : index
    %c0_17 = arith.constant 0 : index
    %c0_18 = arith.constant 0 : index
    %23 = vector.load %arg1[%c0_16, %c1, %c0_17, %c0_18] : memref<1x4x32x30xbf16, #tpu.memory_space<vmem>>, vector<1x1x32x30xbf16>
    %24 = vector.shape_cast %23 : vector<1x1x32x30xbf16> to vector<32x30xbf16>
    %25 = vector.extract_strided_slice %24 {offsets = [0, 0], sizes = [32, 20], strides = [1, 1]} : vector<32x30xbf16> to vector<32x20xbf16>
    %c1_19 = arith.constant 1 : index
    %c0_20 = arith.constant 0 : index
    %c0_21 = arith.constant 0 : index
    %26 = vector.load %arg2[%c1_19, %c0_20, %c0_21] : memref<16x64x32xbf16, #tpu.memory_space<vmem>>, vector<1x64x32xbf16>
    %27 = vector.shape_cast %26 : vector<1x64x32xbf16> to vector<64x32xbf16>
    %cst_22 = arith.constant dense<0.000000e+00> : vector<64x20xf32>
    %28 = tpu.matmul %27, %25, %cst_22 {dimension_numbers = #tpu.dot_dimension_numbers<[1], [0], [0], [1], [0, 0, 1, 1], [], []>} : vector<64x32xbf16>, vector<32x20xbf16>, vector<64x20xf32> -> vector<64x20xf32>
    %29 = arith.addf %22, %28 : vector<64x20xf32>
    %30 = vector.extract_strided_slice %24 {offsets = [0, 1], sizes = [32, 20], strides = [1, 1]} : vector<32x30xbf16> to vector<32x20xbf16>
    %c3 = arith.constant 3 : index
    %c0_23 = arith.constant 0 : index
    %c0_24 = arith.constant 0 : index
    %31 = vector.load %arg2[%c3, %c0_23, %c0_24] : memref<16x64x32xbf16, #tpu.memory_space<vmem>>, vector<1x64x32xbf16>
    %32 = vector.shape_cast %31 : vector<1x64x32xbf16> to vector<64x32xbf16>
    %cst_25 = arith.constant dense<0.000000e+00> : vector<64x20xf32>
    %33 = tpu.matmul %32, %30, %cst_25 {dimension_numbers = #tpu.dot_dimension_numbers<[1], [0], [0], [1], [0, 0, 1, 1], [], []>} : vector<64x32xbf16>, vector<32x20xbf16>, vector<64x20xf32> -> vector<64x20xf32>
    %34 = arith.addf %29, %33 : vector<64x20xf32>
    %35 = vector.extract_strided_slice %24 {offsets = [0, 5], sizes = [32, 20], strides = [1, 1]} : vector<32x30xbf16> to vector<32x20xbf16>
    %c9 = arith.constant 9 : index
    %c0_26 = arith.constant 0 : index
    %c0_27 = arith.constant 0 : index
    %36 = vector.load %arg2[%c9, %c0_26, %c0_27] : memref<16x64x32xbf16, #tpu.memory_space<vmem>>, vector<1x64x32xbf16>
    %37 = vector.shape_cast %36 : vector<1x64x32xbf16> to vector<64x32xbf16>
    %cst_28 = arith.constant dense<0.000000e+00> : vector<64x20xf32>
    %38 = tpu.matmul %37, %35, %cst_28 {dimension_numbers = #tpu.dot_dimension_numbers<[1], [0], [0], [1], [0, 0, 1, 1], [], []>} : vector<64x32xbf16>, vector<32x20xbf16>, vector<64x20xf32> -> vector<64x20xf32>
    %39 = arith.addf %34, %38 : vector<64x20xf32>
    %40 = vector.extract_strided_slice %24 {offsets = [0, 6], sizes = [32, 20], strides = [1, 1]} : vector<32x30xbf16> to vector<32x20xbf16>
    %c11 = arith.constant 11 : index
    %c0_29 = arith.constant 0 : index
    %c0_30 = arith.constant 0 : index
    %41 = vector.load %arg2[%c11, %c0_29, %c0_30] : memref<16x64x32xbf16, #tpu.memory_space<vmem>>, vector<1x64x32xbf16>
    %42 = vector.shape_cast %41 : vector<1x64x32xbf16> to vector<64x32xbf16>
    %cst_31 = arith.constant dense<0.000000e+00> : vector<64x20xf32>
    %43 = tpu.matmul %42, %40, %cst_31 {dimension_numbers = #tpu.dot_dimension_numbers<[1], [0], [0], [1], [0, 0, 1, 1], [], []>} : vector<64x32xbf16>, vector<32x20xbf16>, vector<64x20xf32> -> vector<64x20xf32>
    %44 = arith.addf %39, %43 : vector<64x20xf32>
    %c0_32 = arith.constant 0 : index
    %c2_33 = arith.constant 2 : index
    %c0_34 = arith.constant 0 : index
    %c0_35 = arith.constant 0 : index
    %45 = vector.load %arg1[%c0_32, %c2_33, %c0_34, %c0_35] : memref<1x4x32x30xbf16, #tpu.memory_space<vmem>>, vector<1x1x32x30xbf16>
    %46 = vector.shape_cast %45 : vector<1x1x32x30xbf16> to vector<32x30xbf16>
    %47 = vector.extract_strided_slice %46 {offsets = [0, 0], sizes = [32, 20], strides = [1, 1]} : vector<32x30xbf16> to vector<32x20xbf16>
    %c4 = arith.constant 4 : index
    %c0_36 = arith.constant 0 : index
    %c0_37 = arith.constant 0 : index
    %48 = vector.load %arg2[%c4, %c0_36, %c0_37] : memref<16x64x32xbf16, #tpu.memory_space<vmem>>, vector<1x64x32xbf16>
    %49 = vector.shape_cast %48 : vector<1x64x32xbf16> to vector<64x32xbf16>
    %cst_38 = arith.constant dense<0.000000e+00> : vector<64x20xf32>
    %50 = tpu.matmul %49, %47, %cst_38 {dimension_numbers = #tpu.dot_dimension_numbers<[1], [0], [0], [1], [0, 0, 1, 1], [], []>} : vector<64x32xbf16>, vector<32x20xbf16>, vector<64x20xf32> -> vector<64x20xf32>
    %51 = arith.addf %44, %50 : vector<64x20xf32>
    %52 = vector.extract_strided_slice %46 {offsets = [0, 1], sizes = [32, 20], strides = [1, 1]} : vector<32x30xbf16> to vector<32x20xbf16>
    %c6 = arith.constant 6 : index
    %c0_39 = arith.constant 0 : index
    %c0_40 = arith.constant 0 : index
    %53 = vector.load %arg2[%c6, %c0_39, %c0_40] : memref<16x64x32xbf16, #tpu.memory_space<vmem>>, vector<1x64x32xbf16>
    %54 = vector.shape_cast %53 : vector<1x64x32xbf16> to vector<64x32xbf16>
    %cst_41 = arith.constant dense<0.000000e+00> : vector<64x20xf32>
    %55 = tpu.matmul %54, %52, %cst_41 {dimension_numbers = #tpu.dot_dimension_numbers<[1], [0], [0], [1], [0, 0, 1, 1], [], []>} : vector<64x32xbf16>, vector<32x20xbf16>, vector<64x20xf32> -> vector<64x20xf32>
    %56 = arith.addf %51, %55 : vector<64x20xf32>
    %57 = vector.extract_strided_slice %46 {offsets = [0, 5], sizes = [32, 20], strides = [1, 1]} : vector<32x30xbf16> to vector<32x20xbf16>
    %c12 = arith.constant 12 : index
    %c0_42 = arith.constant 0 : index
    %c0_43 = arith.constant 0 : index
    %58 = vector.load %arg2[%c12, %c0_42, %c0_43] : memref<16x64x32xbf16, #tpu.memory_space<vmem>>, vector<1x64x32xbf16>
    %59 = vector.shape_cast %58 : vector<1x64x32xbf16> to vector<64x32xbf16>
    %cst_44 = arith.constant dense<0.000000e+00> : vector<64x20xf32>
    %60 = tpu.matmul %59, %57, %cst_44 {dimension_numbers = #tpu.dot_dimension_numbers<[1], [0], [0], [1], [0, 0, 1, 1], [], []>} : vector<64x32xbf16>, vector<32x20xbf16>, vector<64x20xf32> -> vector<64x20xf32>
    %61 = arith.addf %56, %60 : vector<64x20xf32>
    %62 = vector.extract_strided_slice %46 {offsets = [0, 6], sizes = [32, 20], strides = [1, 1]} : vector<32x30xbf16> to vector<32x20xbf16>
    %c14 = arith.constant 14 : index
    %c0_45 = arith.constant 0 : index
    %c0_46 = arith.constant 0 : index
    %63 = vector.load %arg2[%c14, %c0_45, %c0_46] : memref<16x64x32xbf16, #tpu.memory_space<vmem>>, vector<1x64x32xbf16>
    %64 = vector.shape_cast %63 : vector<1x64x32xbf16> to vector<64x32xbf16>
    %cst_47 = arith.constant dense<0.000000e+00> : vector<64x20xf32>
    %65 = tpu.matmul %64, %62, %cst_47 {dimension_numbers = #tpu.dot_dimension_numbers<[1], [0], [0], [1], [0, 0, 1, 1], [], []>} : vector<64x32xbf16>, vector<32x20xbf16>, vector<64x20xf32> -> vector<64x20xf32>
    %66 = arith.addf %61, %65 : vector<64x20xf32>
    %c0_48 = arith.constant 0 : index
    %c3_49 = arith.constant 3 : index
    %c0_50 = arith.constant 0 : index
    %c0_51 = arith.constant 0 : index
    %67 = vector.load %arg1[%c0_48, %c3_49, %c0_50, %c0_51] : memref<1x4x32x30xbf16, #tpu.memory_space<vmem>>, vector<1x1x32x30xbf16>
    %68 = vector.shape_cast %67 : vector<1x1x32x30xbf16> to vector<32x30xbf16>
    %69 = vector.extract_strided_slice %68 {offsets = [0, 0], sizes = [32, 20], strides = [1, 1]} : vector<32x30xbf16> to vector<32x20xbf16>
    %c5 = arith.constant 5 : index
    %c0_52 = arith.constant 0 : index
    %c0_53 = arith.constant 0 : index
    %70 = vector.load %arg2[%c5, %c0_52, %c0_53] : memref<16x64x32xbf16, #tpu.memory_space<vmem>>, vector<1x64x32xbf16>
    %71 = vector.shape_cast %70 : vector<1x64x32xbf16> to vector<64x32xbf16>
    %cst_54 = arith.constant dense<0.000000e+00> : vector<64x20xf32>
    %72 = tpu.matmul %71, %69, %cst_54 {dimension_numbers = #tpu.dot_dimension_numbers<[1], [0], [0], [1], [0, 0, 1, 1], [], []>} : vector<64x32xbf16>, vector<32x20xbf16>, vector<64x20xf32> -> vector<64x20xf32>
    %73 = arith.addf %66, %72 : vector<64x20xf32>
    %74 = vector.extract_strided_slice %68 {offsets = [0, 1], sizes = [32, 20], strides = [1, 1]} : vector<32x30xbf16> to vector<32x20xbf16>
    %c7 = arith.constant 7 : index
    %c0_55 = arith.constant 0 : index
    %c0_56 = arith.constant 0 : index
    %75 = vector.load %arg2[%c7, %c0_55, %c0_56] : memref<16x64x32xbf16, #tpu.memory_space<vmem>>, vector<1x64x32xbf16>
    %76 = vector.shape_cast %75 : vector<1x64x32xbf16> to vector<64x32xbf16>
    %cst_57 = arith.constant dense<0.000000e+00> : vector<64x20xf32>
    %77 = tpu.matmul %76, %74, %cst_57 {dimension_numbers = #tpu.dot_dimension_numbers<[1], [0], [0], [1], [0, 0, 1, 1], [], []>} : vector<64x32xbf16>, vector<32x20xbf16>, vector<64x20xf32> -> vector<64x20xf32>
    %78 = arith.addf %73, %77 : vector<64x20xf32>
    %79 = vector.extract_strided_slice %68 {offsets = [0, 5], sizes = [32, 20], strides = [1, 1]} : vector<32x30xbf16> to vector<32x20xbf16>
    %c13 = arith.constant 13 : index
    %c0_58 = arith.constant 0 : index
    %c0_59 = arith.constant 0 : index
    %80 = vector.load %arg2[%c13, %c0_58, %c0_59] : memref<16x64x32xbf16, #tpu.memory_space<vmem>>, vector<1x64x32xbf16>
    %81 = vector.shape_cast %80 : vector<1x64x32xbf16> to vector<64x32xbf16>
    %cst_60 = arith.constant dense<0.000000e+00> : vector<64x20xf32>
    %82 = tpu.matmul %81, %79, %cst_60 {dimension_numbers = #tpu.dot_dimension_numbers<[1], [0], [0], [1], [0, 0, 1, 1], [], []>} : vector<64x32xbf16>, vector<32x20xbf16>, vector<64x20xf32> -> vector<64x20xf32>
    %83 = arith.addf %78, %82 : vector<64x20xf32>
    %84 = vector.extract_strided_slice %68 {offsets = [0, 6], sizes = [32, 20], strides = [1, 1]} : vector<32x30xbf16> to vector<32x20xbf16>
    %c15 = arith.constant 15 : index
    %c0_61 = arith.constant 0 : index
    %c0_62 = arith.constant 0 : index
    %85 = vector.load %arg2[%c15, %c0_61, %c0_62] : memref<16x64x32xbf16, #tpu.memory_space<vmem>>, vector<1x64x32xbf16>
    %86 = vector.shape_cast %85 : vector<1x64x32xbf16> to vector<64x32xbf16>
    %cst_63 = arith.constant dense<0.000000e+00> : vector<64x20xf32>
    %87 = tpu.matmul %86, %84, %cst_63 {dimension_numbers = #tpu.dot_dimension_numbers<[1], [0], [0], [1], [0, 0, 1, 1], [], []>} : vector<64x32xbf16>, vector<32x20xbf16>, vector<64x20xf32> -> vector<64x20xf32>
    %88 = arith.addf %83, %87 : vector<64x20xf32>
    %c0_64 = arith.constant 0 : index
    %c0_65 = arith.constant 0 : index
    %c0_66 = arith.constant 0 : index
    %89 = vector.load %arg3[%c0_64, %c0_65, %c0_66] : memref<1x64x20xf32, #tpu.memory_space<vmem>>, vector<1x64x20xf32>
    %90 = vector.shape_cast %89 : vector<1x64x20xf32> to vector<64x20xf32>
    %91 = vector.shape_cast %88 : vector<64x20xf32> to vector<1x64x20xf32>
    tpu.vector_store %arg3[%c0_64, %c0_65, %c0_66], %91 {strides = array<i32>} : memref<1x64x20xf32, #tpu.memory_space<vmem>>, vector<1x64x20xf32>,
    %92 = tpu.iota {dimensions = array<i32: 1>} : vector<1x20xi32>
    %c5_i32 = arith.constant 5 : i32
    %c0_i32 = arith.constant 0 : i32
    %93 = arith.cmpi eq, %c5_i32, %c0_i32 : i32
    %c1_i32 = arith.constant 1 : i32
    %94 = arith.select %93, %c1_i32, %c5_i32 : i32
    %95 = vector.broadcast %94 : i32 to vector<1x20xi32>
    %96 = arith.remsi %92, %95 : vector<1x20xi32>
    %c0_i32_67 = arith.constant 0 : i32
    %97 = vector.broadcast %c0_i32_67 : i32 to vector<1x20xi32>
    %98 = arith.cmpi ne, %96, %97 : vector<1x20xi32>
    %c0_i32_68 = arith.constant 0 : i32
    %99 = vector.broadcast %c0_i32_68 : i32 to vector<1x20xi32>
    %100 = arith.cmpi slt, %96, %99 : vector<1x20xi32>
    %c0_i32_69 = arith.constant 0 : i32
    %101 = arith.cmpi slt, %94, %c0_i32_69 : i32
    %102 = vector.broadcast %101 : i1 to vector<1x20xi1>
    %103 = vector.broadcast %102 : vector<1x20xi1> to vector<1x20xi1>
    %104 = arith.xori %100, %103 : vector<1x20xi1>
    %105 = arith.andi %104, %98 : vector<1x20xi1>
    %106 = vector.broadcast %94 : i32 to vector<1x20xi32>
    %107 = arith.addi %96, %106 : vector<1x20xi32>
    %108 = arith.select %105, %107, %96 : vector<1x20xi1>, vector<1x20xi32>
    %c4_i32 = arith.constant 4 : i32
    %109 = vector.broadcast %c4_i32 : i32 to vector<1x20xi32>
    %110 = arith.cmpi slt, %108, %109 : vector<1x20xi32>
    %cst_70 = arith.constant 0.000000e+00 : f32
    %111 = vector.shape_cast %110 : vector<1x20xi1> to vector<1x20xi1>
    %112 = vector.broadcast %111 : vector<1x20xi1> to vector<64x20xi1>
    %113 = vector.broadcast %cst_70 : f32 to vector<64x20xf32>
    %114 = arith.select %112, %88, %113 : vector<64x20xi1>, vector<64x20xf32>
    %cst_71 = arith.constant dense<0.000000e+00> : vector<64xf32>
    %115 = vector.multi_reduction <add>, %114, %cst_71 [1] : vector<64x20xf32> to vector<64xf32>
    %116 = vector.shape_cast %115 : vector<64xf32> to vector<64x1xf32>
    %117 = arith.mulf %114, %114 : vector<64x20xf32>
    %cst_72 = arith.constant dense<0.000000e+00> : vector<64xf32>
    %118 = vector.multi_reduction <add>, %117, %cst_72 [1] : vector<64x20xf32> to vector<64xf32>
    %119 = vector.shape_cast %118 : vector<64xf32> to vector<64x1xf32>
    %120 = tpu.concatenate %116, %119 in 1 : vector<64x1xf32>, vector<64x1xf32> -> vector<64x2xf32>
    %c0_73 = arith.constant 0 : index
    %c0_74 = arith.constant 0 : index
    %c0_75 = arith.constant 0 : index
    %121 = vector.load %arg4[%c0_73, %c0_74, %c0_75] : memref<1x64x2xf32, #tpu.memory_space<vmem>>, vector<1x64x2xf32>
    %122 = vector.shape_cast %121 : vector<1x64x2xf32> to vector<64x2xf32>
    %123 = vector.shape_cast %120 : vector<64x2xf32> to vector<1x64x2xf32>
    tpu.vector_store %arg4[%c0_73, %c0_74, %c0_75], %123 {strides = array<i32>} : memref<1x64x2xf32, #tpu.memory_space<vmem>>, vector<1x64x2xf32>,
    return
  }
  func.func @transform_0(%arg0: i32) -> (i32, i32, i32, i32) {
    %c0_i32 = arith.constant 0 : i32
    %c0_i32_0 = arith.constant 0 : i32
    %c0_i32_1 = arith.constant 0 : i32
    %c0_i32_2 = arith.constant 0 : i32
    return %arg0, %c0_i32, %c0_i32_0, %c0_i32_1 : i32, i32, i32, i32
  }
  func.func @transform_1(%arg0: i32) -> (i32, i32, i32) {
    %c0_i32 = arith.constant 0 : i32
    %c0_i32_0 = arith.constant 0 : i32
    %c0_i32_1 = arith.constant 0 : i32
    %c0_i32_2 = arith.constant 0 : i32
    return %c0_i32, %c0_i32_0, %c0_i32_1 : i32, i32, i32
  }
  func.func @transform_2(%arg0: i32) -> (i32, i32, i32) {
    %c0_i32 = arith.constant 0 : i32
    %c0_i32_0 = arith.constant 0 : i32
    %c0_i32_1 = arith.constant 0 : i32
    return %arg0, %c0_i32, %c0_i32_0 : i32, i32, i32
  }
  func.func @transform_3(%arg0: i32) -> (i32, i32, i32) {
    %c0_i32 = arith.constant 0 : i32
    %c0_i32_0 = arith.constant 0 : i32
    %c0_i32_1 = arith.constant 0 : i32
    return %arg0, %c0_i32, %c0_i32_0 : i32, i32, i32
  }
}

module attributes {stable_mosaic.version = 11 : i64} {
  func.func @_final_kernel(%arg0: i32, %arg1: memref<4x1024xbf16, #tpu.memory_space<vmem>>, %arg2: memref<1024x128xbf16, #tpu.memory_space<vmem>>, %arg3: memref<4x128xf32, #tpu.memory_space<vmem>>) attributes {dimension_semantics = [#tpu.dimension_semantics<arbitrary>], iteration_bounds = array<i64: 1>, scalar_prefetch = 0 : i64, scratch_operands = 0 : i64, tpu.core_type = #tpu.core_type<tc>, window_params = [{pipeline_mode = #tpu.pipeline_mode<synchronous>, transform_indices = @transform_0, window_bounds = array<i64: 4, 1024>}, {pipeline_mode = #tpu.pipeline_mode<synchronous>, transform_indices = @transform_1, window_bounds = array<i64: 1024, 128>}, {pipeline_mode = #tpu.pipeline_mode<synchronous>, transform_indices = @transform_2, window_bounds = array<i64: 4, 128>}]} {
    %c0 = arith.constant 0 : index
    %c0_0 = arith.constant 0 : index
    %0 = vector.load %arg1[%c0, %c0_0] : memref<4x1024xbf16, #tpu.memory_space<vmem>>, vector<4x1024xbf16>
    %c0_1 = arith.constant 0 : index
    %c0_2 = arith.constant 0 : index
    %1 = vector.load %arg2[%c0_1, %c0_2] : memref<1024x128xbf16, #tpu.memory_space<vmem>>, vector<1024x128xbf16>
    %cst = arith.constant dense<0.000000e+00> : vector<4x128xf32>
    %2 = tpu.matmul %0, %1, %cst {dimension_numbers = #tpu.dot_dimension_numbers<[1], [0], [0], [1], [0, 0, 1, 1], [], []>} : vector<4x1024xbf16>, vector<1024x128xbf16>, vector<4x128xf32> -> vector<4x128xf32>
    %cst_3 = arith.constant 0.000000e+00 : f32
    %3 = vector.broadcast %cst_3 : f32 to vector<4x128xf32>
    %4 = arith.subf %3, %2 : vector<4x128xf32>
    %5 = math.exp %4 : vector<4x128xf32>
    %cst_4 = arith.constant 1.000000e+00 : f32
    %6 = vector.broadcast %cst_4 : f32 to vector<4x128xf32>
    %7 = arith.addf %6, %5 : vector<4x128xf32>
    %cst_5 = arith.constant 1.000000e+00 : f32
    %8 = vector.broadcast %cst_5 : f32 to vector<4x128xf32>
    %9 = arith.divf %8, %7 : vector<4x128xf32>
    %c0_6 = arith.constant 0 : index
    %c0_7 = arith.constant 0 : index
    %10 = vector.load %arg3[%c0_6, %c0_7] : memref<4x128xf32, #tpu.memory_space<vmem>>, vector<4x128xf32>
    tpu.vector_store %arg3[%c0_6, %c0_7], %9 {strides = array<i32>} : memref<4x128xf32, #tpu.memory_space<vmem>>, vector<4x128xf32>,
    return
  }
  func.func @transform_0(%arg0: i32) -> (i32, i32) {
    %c0_i32 = arith.constant 0 : i32
    %c0_i32_0 = arith.constant 0 : i32
    %c0_i32_1 = arith.constant 0 : i32
    return %c0_i32, %c0_i32_0 : i32, i32
  }
  func.func @transform_1(%arg0: i32) -> (i32, i32) {
    %c0_i32 = arith.constant 0 : i32
    %c0_i32_0 = arith.constant 0 : i32
    %c0_i32_1 = arith.constant 0 : i32
    return %c0_i32, %c0_i32_0 : i32, i32
  }
  func.func @transform_2(%arg0: i32) -> (i32, i32) {
    %c0_i32 = arith.constant 0 : i32
    %c0_i32_0 = arith.constant 0 : i32
    %c0_i32_1 = arith.constant 0 : i32
    return %c0_i32, %c0_i32_0 : i32, i32
  }
}

</mosaic_0001>

<bundles_post_ra>
// kernel: discriminator_forward.5
= control target key start
LH: loop header
LB: loop body
LE: loop exit
PB: predicated region body
PF: predicated region fallthrough
CT: control target
= control target key end

     0   :  { %s5287_s9 = smov 0   ;;  %s6463_s0 = inlined_call_operand.vmem [shape: bf16[4,4,3,1122], index: 0, kind: input, shape index: {}]   ;;  %s6464_s1 = inlined_call_operand.vmem [shape: bf16[16,8,3], index: 1, kind: input, shape index: {}]   ;;  %s6465_s2 = inlined_call_operand.vmem [shape: bf16[4,8,1056], index: 2, kind: output, shape index: {}]  }
   0x1 LB: > { %s4682_s10 = sadd.s32 4294967295, %s5262_s9   ;;  %p4686_p0 = scmp.ge.s32.totalorder %s5262_s9, 1  ;;  %s5262_s9 = sphi %s5287_s9, %s12_s9  }
   0x2   : > { %p112_p1 = scmp.lt.s32.totalorder %s5262_s9, 5 }
   0x4   : > { %p113_p2 = pnand %p4686_p0, %p112_p1 }
   0x5   : > { %p134_p3 = scmp.lt.s32.totalorder (!%p113_p2), %s4682_s10, 3  ;;  %v158_v0 = vlaneseq (!%p113_p2)  ;;  %v5264_v1 = vmov (!%p113_p2), 1983009808   ;;  %v5265_v3 = vmov (!%p113_p2), 0.0   ;;  %s5266_s15 = smov (!%p113_p2), 95   ;;  %vm5268_vm0 = vmmov (!%p113_p2), 0  }
   0x6   : > { %116 = sbr.rel (%p113_p2) target bundleno = 683 (0x2ab), region = 28  ;;  %v156_v2 = vunpack.c.l.s4 (!%p113_p2), %v5264_v1  ;;  %4853 = vmatprep.subr.bf16.mxu0 (!%p113_p2), %v5265_v3  ;;  %s5267_s16 = smov (!%p113_p2), 127   ;;  %4855 = vmatprep.mubr.msk.bf16.mxu0 (!%p113_p2), %vm5268_vm0, %v5265_v3  ;;  %v5269_v15 = vmov (!%p113_p2), 0   ;;  %vm226_vm1 = vcmask (!%p113_p2), 1040384   ;;  %vm227_vm2 = vcmask (!%p113_p2), 1041408  }
   0x7   : > { %v159_v4 = vshrl.u32 (!%p113_p2), %v158_v0, 7  ;;  %289 = vmatprep.mubr.bf16.mxu1 (!%p113_p2), %v5269_v15  ;;  %s5270_s17 = smov (!%p113_p2), 94   ;;  %v5271_v44 = vmov (!%p113_p2), 65535   ;;  %vm222_vm3 = vcmask (!%p113_p2), 23552   ;;  %v5524_v49 = vld [vmem:[%s6464_s1 + $0x20] sm:$0xf] (!%p113_p2) }
   0x8   : > { %v157_v5 = vunpack.c.0.s8 (!%p113_p2), %v156_v2  ;;  %v228_v45 = vsel (!%p113_p2), %vm226_vm1, 4294967295, %v5271_v44  ;;  %vm213_vm4 = vcmask (!%p113_p2), 1039360   ;;  %vm987_vm5 = vcmask (!%p113_p2), 769024   ;;  %v5551_v62 = vld [vmem:[%s6464_s1 + $0x8] sm:$0xf] (!%p113_p2) }
   0x9   : > { %v5509_v46 = vsel (!%p113_p2), %vm227_vm2, %v228_v45, 0  ;;  %vm715_vm6 = vcmask (!%p113_p2), 777216  }
   0xa   : > { %v5299_v6 = vsub.s32 (!%p113_p2), %v157_v5, %v159_v4 }
   0xd   : > { %s6467_s10 = smov (!%p134_p3, %s4682_s10), 3 }
   0xe   : > { %s5230_s11 = smul.u32 72, %s6467_s10 }
   0xf   : > { %s5231_s24 = smul.u32 36, %s6467_s10 }
  0x10   : > { %s5304_s14 = scalar_lea.vmem %s6463_s0, %s5230_s11 }
  0x11   : > { %v5307_v7 = vld.sshfl [vmem:[%s5304_s14 + $0x10] sm:$0x3 pattern:$0x76325410]  ;;  %v145_v8 = vld [vmem:[%s5304_s14] sm:$0xff]  ;;  %v146_v11 = vld [vmem:[%s5304_s14 + $0x8] sm:$0xff]  ;;  %s6452_s27 = scalar_lea.vmem %s6465_s2, %s5231_s24 }
  0x12   : > { %713 = vrot.lane.b32.xlu1 %v5307_v7, %s5266_s15  ;;  %v5313_v9 = vrot.slane %v145_v8, %v5299_v6  ;;  %v154_v10 = vcombine.high %v145_v8, %v145_v8  ;;  %v5325_v13 = vrot.slane %v146_v11, %v5299_v6  ;;  %v171_v18 = vcombine.high %v146_v11, %v146_v11  ;;  %v4713_v20 = vld [vmem:[%s5304_s14 + $0x12] sm:$0xff]  ;;  %v4714_v24 = vld [vmem:[%s5304_s14 + $0x1a] sm:$0xff]  ;;  %v5407_v31 = vld.sshfl [vmem:[%s5304_s14 + $0x22] sm:$0x3 pattern:$0x76325410] }
  0x13   : > { %v5366_v21 = vrot.slane %v4713_v20, %v5299_v6  ;;  %v1265_v25 = vcombine.high %v4714_v24, %v4714_v24  ;;  %v1248_v26 = vcombine.high %v4713_v20, %v4713_v20  ;;  %v5390_v27 = vrot.slane %v4714_v24, %v5299_v6  ;;  %v4741_v32 = vld [vmem:[%s5304_s14 + $0x24] sm:$0xff]  ;;  %v4742_v35 = vld [vmem:[%s5304_s14 + $0x2c] sm:$0xff]  ;;  %v5531_v52 = vld.sshfl [vmem:[%s5304_s14 + $0x34] sm:$0x3 pattern:$0x76325410] }
  0x14   : > { %v5318_v12 = vcombine.high %v5313_v9, %v5313_v9  ;;  %v5328_v14 = vrot.slane %v154_v10, %v5299_v6  ;;  %v5343_v16 = vcombine.high %v5325_v13, %v5325_v13  ;;  %v5358_v19 = vrot.slane %v171_v18, %v5299_v6 }
  0x15   : > { %v5374_v22 = vcombine.high %v5366_v21, %v5366_v21  ;;  %v5393_v28 = vrot.slane %v1265_v25, %v5299_v6  ;;  %v5396_v29 = vrot.slane %v1248_v26, %v5299_v6  ;;  %v5404_v30 = vcombine.high %v5390_v27, %v5390_v27  ;;  %v5582_v26 = vld [vmem:[%s6464_s1 + $0x28] sm:$0xf] }
  0x16   : > { %195 = vrot.lane.b32.xlu1 %v5313_v9, %s5267_s16  ;;  %197 = vrot.lane.b32.xlu0 %v5318_v12, %s5267_s16  ;;  %v5347_v17 = vcombine.high %v5328_v14, %v5328_v14  ;;  %v5378_v23 = vcombine.high %v5358_v19, %v5358_v19  ;;  %v5459_v33 = vrot.slane %v4741_v32, %v5299_v6 }
  0x17   : > { %v5472_v36 = vcombine.high %v5393_v28, %v5393_v28  ;;  %v5480_v37 = vcombine.high %v5396_v29, %v5396_v29  ;;  %v5483_v38 = vrot.slane %v4742_v35, %v5299_v6  ;;  %v2354_v39 = vcombine.high %v4741_v32, %v4741_v32 }
  0x18   : > { %v5467_v34 = vcombine.high %v5459_v33, %v5459_v33  ;;  %v2371_v42 = vcombine.high %v4742_v35, %v4742_v35 }
  0x19   : > { %v5491_v40 = vcombine.high %v5483_v38, %v5483_v38  ;;  %v5494_v41 = vrot.slane %v2354_v39, %v5299_v6 }
  0x1a   : > { %203 = vrot.lane.b32.xlu1 %v5325_v13, %s5267_s16  ;;  %199 = vrot.lane.b32.xlu0 %v5328_v14, %s5267_s16  ;;  %v5505_v43 = vrot.slane %v2371_v42, %v5299_v6 }
  0x1b   : > { %v5597_v44 = vcombine.high %v5494_v41, %v5494_v41 }
  0x1e   : > { %973 = vrot.lane.b32.xlu1 %v5328_v14, %s5270_s17  ;;  %971 = vrot.lane.b32.xlu0 %v5318_v12, %s5270_s17 }
  0x22   : > { %979 = vrot.lane.b32.xlu1 %v5343_v16, %s5270_s17  ;;  %201 = vrot.lane.b32.xlu0 %v5347_v17, %s5267_s16 }
  0x26   : > { %205 = vrot.lane.b32.xlu1 %v5343_v16, %s5267_s16  ;;  %969 = vrot.lane.b32.xlu0 %v5313_v9, %s5270_s17 }
  0x2a   : > { %977 = vrot.lane.b32.xlu1 %v5325_v13, %s5270_s17  ;;  %981 = vrot.lane.b32.xlu0 %v5358_v19, %s5270_s17 }
  0x2e   : > { %211 = vrot.lane.b32.xlu1 %v5307_v7, %s5267_s16  ;;  %207 = vrot.lane.b32.xlu0 %v5358_v19, %s5267_s16 }
  0x32   : > { %1536 = vrot.lane.b32.xlu1 %v5374_v22, %s5267_s16  ;;  %209 = vrot.lane.b32.xlu0 %v5378_v23, %s5267_s16 }
  0x36   : > { %1534 = vrot.lane.b32.xlu1 %v5366_v21, %s5267_s16  ;;  %985 = vrot.lane.b32.xlu0 %v5307_v7, %s5270_s17 }
  0x3a   : > { %1546 = vrot.lane.b32.xlu1 %v5393_v28, %s5267_s16  ;;  %1538 = vrot.lane.b32.xlu0 %v5396_v29, %s5267_s16 }
  0x3e   : > { %1550 = vrot.lane.b32.xlu1 %v5407_v31, %s5267_s16  ;;  %1544 = vrot.lane.b32.xlu0 %v5404_v30, %s5267_s16 }
  0x42   : > { %1809 = vrot.lane.b32.xlu1 %v5396_v29, %s5266_s15  ;;  %1542 = vrot.lane.b32.xlu0 %v5390_v27, %s5267_s16 }
  0x46   : > { %701 = vrot.lane.b32.xlu1 %v5328_v14, %s5266_s15  ;;  %1807 = vrot.lane.b32.xlu0 %v5374_v22, %s5266_s15 }
  0x4a   : > { %697 = vrot.lane.b32.xlu1 %v5313_v9, %s5266_s15  ;;  %699 = vrot.lane.b32.xlu0 %v5318_v12, %s5266_s15 }
  0x4e   : > { %1817 = vrot.lane.b32.xlu1 %v5393_v28, %s5266_s15  ;;  %1805 = vrot.lane.b32.xlu0 %v5366_v21, %s5266_s15 }
  0x52   : > { %705 = vrot.lane.b32.xlu1 %v5325_v13, %s5266_s15  ;;  %1815 = vrot.lane.b32.xlu0 %v5404_v30, %s5266_s15 }
  0x56   : > { %707 = vrot.lane.b32.xlu1 %v5343_v16, %s5266_s15  ;;  %703 = vrot.lane.b32.xlu0 %v5347_v17, %s5266_s15 }
  0x5a   : > { %1821 = vrot.lane.b32.xlu1 %v5407_v31, %s5266_s15  ;;  %1813 = vrot.lane.b32.xlu0 %v5390_v27, %s5266_s15 }
  0x5e   : > { %2080 = vrot.lane.b32.xlu1 %v5396_v29, %s5270_s17  ;;  %709 = vrot.lane.b32.xlu0 %v5358_v19, %s5266_s15 }
  0x62   : > { %2076 = vrot.lane.b32.xlu1 %v5366_v21, %s5270_s17  ;;  %2078 = vrot.lane.b32.xlu0 %v5374_v22, %s5270_s17 }
  0x66   : > { %2088 = vrot.lane.b32.xlu1 %v5393_v28, %s5270_s17  ;;  %711 = vrot.lane.b32.xlu0 %v5378_v23, %s5266_s15 }
  0x6a   : > { %2084 = vrot.lane.b32.xlu1 %v5390_v27, %s5270_s17  ;;  %2086 = vrot.lane.b32.xlu0 %v5404_v30, %s5270_s17 }
  0x6e   : > { %2092 = vrot.lane.b32.xlu1 %v5407_v31, %s5270_s17  ;;  %975 = vrot.lane.b32.xlu0 %v5347_v17, %s5270_s17 }
  0x72   : > { %2642 = vrot.lane.b32.xlu1 %v5467_v34, %s5267_s16  ;;  %983 = vrot.lane.b32.xlu0 %v5378_v23, %s5270_s17 }
  0x76   : > { %1548 = vrot.lane.b32.xlu1 %v5472_v36, %s5267_s16  ;;  %1540 = vrot.lane.b32.xlu0 %v5480_v37, %s5267_s16 }
  0x7a   : > { %2650 = vrot.lane.b32.xlu1 %v5491_v40, %s5267_s16  ;;  %2644 = vrot.lane.b32.xlu0 %v5494_v41, %s5267_s16 }
  0x7e   : > { %1811 = vrot.lane.b32.xlu1 %v5480_v37, %s5266_s15  ;;  %2640 = vrot.lane.b32.xlu0 %v5459_v33, %s5267_s16 }
  0x82   : > { %1819 = vrot.lane.b32.xlu1 %v5472_v36, %s5266_s15  ;;  %2652 = vrot.lane.b32.xlu0 %v5505_v43, %s5267_s16 }
  0x84   : > { %v5513_v47 = vpop.permute.xlu1 %713 }
  0x85   : > { %v752_v48 = vand.u32 %v5513_v47, %v5509_v46 }
  0x86   : > { %2913 = vrot.lane.b32.xlu1 %v5467_v34, %s5266_s15  ;;  %2648 = vrot.lane.b32.xlu0 %v5483_v38, %s5267_s16 }
  0x87   : > { %4854 = vmatpush3.bf16.msra.mxu0 %v752_v48 }
  0x88   : > { %v196_v50 = vpop.permute.xlu1 %195  ;;  %v198_v51 = vpop.permute.xlu0 %197 }
  0x89   : > { %v214_v55 = vsel %vm213_vm4, %v196_v50, %v198_v51 }
  0x8a   : > { %2082 = vrot.lane.b32.xlu1 %v5480_v37, %s5270_s17  ;;  %4856 = vmatmul.mubr.msk.bf16.vlgmr.msra.gmra.mrb[0].mxu0 %vm222_vm3, %v5524_v49  ;;  %v231_v58 = vand.u32 %v5509_v46, %v214_v55  ;;  %v5612_v55 = vcombine.high %v5505_v43, %v5505_v43 }
  0x8b   : > { %1058 = vmatprep.mubr.bf16.mxu0 %v5269_v15  ;;  %2656 = vrot.lane.b32.xlu0 %v5531_v52, %s5267_s16 }
  0x8c   : > { %v204_v53 = vpop.permute.xlu1 %203  ;;  %v200_v54 = vpop.permute.xlu0 %199 }
  0x8d   : > { %v215_v56 = vsel %vm213_vm4, %v198_v51, %v200_v54 }
  0x8e   : > { %2921 = vrot.lane.b32.xlu1 %v5491_v40, %s5266_s15  ;;  %v234_v57 = vand.u32 %v5509_v46, %v215_v56 }
  0x8f   : > { %2915 = vrot.lane.b32.xlu0 %v5494_v41, %s5266_s15 }
  0x90   : > { %v5544_v59 = vpop.permute.xlu1 %973  ;;  %257 = vmatprep.subr.bf16.mxu1 %v234_v57  ;;  %v972_v60 = vpop.permute.xlu0 %971 }
  0x91   : > { %v989_v61 = vsel %vm987_vm5, %v972_v60, %v5544_v59  ;;  %258 = vmatpush1.bf16.msra.mxu1 %v231_v58 }
  0x92   : > { %2090 = vrot.lane.b32.xlu1 %v5472_v36, %s5270_s17  ;;  %v1003_v63 = vand.u32 %v989_v61, %v5509_v46 }
  0x93   : > { %2911 = vrot.lane.b32.xlu0 %v5459_v33, %s5266_s15 }
  0x94   : > { %v980_v0 = vpop.permute.xlu1 %979  ;;  %1026 = vmatprep.subr.bf16.mxu0 %v1003_v63  ;;  %v202_v1 = vpop.permute.xlu0 %201  ;;  %4691 = vmatmul.mubr.msk.bf16.vlgmr.msra.gmra.mrb[0].mxu1 %vm222_vm3, %v5551_v62 }
  0x95   : > { %v216_v2 = vsel %vm213_vm4, %v200_v54, %v202_v1  ;;  %v217_v4 = vsel %vm213_vm4, %v202_v1, %v204_v53  ;;  %330 = vmatprep.mubr.bf16.mxu1 %v5269_v15  ;;  %v1296_v1 = vand.u32 %v5374_v22, %v5509_v46  ;;  %v1293_v22 = vand.u32 %v5366_v21, %v5509_v46 }
  0x96   : > { %v237_v5 = vand.u32 %v5509_v46, %v216_v2  ;;  %v240_v8 = vand.u32 %v5509_v46, %v217_v4  ;;  %2927 = vrot.lane.b32.xlu1 %v5531_v52, %s5266_s15 }
  0x97   : > { %2923 = vrot.lane.b32.xlu0 %v5505_v43, %s5266_s15 }
  0x98   : > { %v206_v10 = vpop.permute.xlu1 %205  ;;  %298 = vmatprep.subr.bf16.mxu1 %v240_v8  ;;  %v970_v11 = vpop.permute.xlu0 %969 }
  0x99   : > { %v988_v18 = vsel %vm987_vm5, %v970_v11, %v972_v60  ;;  %299 = vmatpush1.bf16.msra.mxu1 %v237_v5  ;;  %v218_v45 = vsel %vm213_vm4, %v204_v53, %v206_v10  ;;  %v4769_v5 = vld [vmem:[%s5304_s14 + $0x36] sm:$0xff]  ;;  %v1308_v11 = vand.u32 %v5404_v30, %v5509_v46 }
  0x9a   : > { %v1000_v20 = vand.u32 %v988_v18, %v5509_v46  ;;  %3186 = vrot.lane.b32.xlu1 %v5494_v41, %s5270_s17  ;;  %v243_v53 = vand.u32 %v5509_v46, %v218_v45  ;;  %v465_v45 = vand.u32 %v5509_v46, %v5313_v9  ;;  %v4770_v9 = vld [vmem:[%s5304_s14 + $0x3e] sm:$0xff] }
  0x9b   : > { %2919 = vrot.lane.b32.xlu0 %v5483_v38, %s5266_s15 }
  0x9c   : > { %v5575_v24 = vpop.permute.xlu1 %977  ;;  %1027 = vmatpush1.bf16.msra.mxu0 %v1000_v20  ;;  %v5577_v25 = vpop.permute.xlu0 %981  ;;  %4692 = vmatmul.mubr.msk.bf16.vlgmr.msra.gmra.mrb[4].mxu1 %vm222_vm3, %v5551_v62  ;;  %v468_v20 = vand.u32 %v5509_v46, %v5318_v12  ;;  %v5676_v12 = vrot.slane %v4769_v5, %v5299_v6 }
  0x9d   : > { %v992_v32 = vsel %vm987_vm5, %v5575_v24, %v980_v0  ;;  %v993_v35 = vsel %vm987_vm5, %v980_v0, %v5577_v25  ;;  %371 = vmatprep.mubr.bf16.mxu1 %v5269_v15 }
  0x9e   : > { %v1012_v39 = vand.u32 %v992_v32, %v5509_v46  ;;  %v1015_v42 = vand.u32 %v993_v35, %v5509_v46  ;;  %3192 = vrot.lane.b32.xlu1 %v5491_v40, %s5270_s17 }
  0x9f   : > { %4708 = vmatmul.mubr.msk.bf16.vlgmr.msra.gmra.mrb[4].mxu0 %vm222_vm3, %v5582_v26  ;;  %3184 = vrot.lane.b32.xlu0 %v5467_v34, %s5270_s17 }
  0xa0   : > { %v212_v48 = vpop.permute.xlu1 %211  ;;  %1108 = vmatprep.subr.bf16.mxu0 %v1015_v42  ;;  %v208_v50 = vpop.permute.xlu0 %207  ;;  %1140 = vmatprep.mubr.bf16.mxu0 %v5269_v15  ;;  %v1305_v42 = vand.u32 %v5390_v27, %v5509_v46  ;;  %v5701_v27 = vcombine.high %v5676_v12, %v5676_v12 }
  0xa1   : > { %v219_v51 = vsel %vm213_vm4, %v206_v10, %v208_v50  ;;  %1109 = vmatpush1.bf16.msra.mxu0 %v1012_v39  ;;  %v3460_v10 = vcombine.high %v4769_v5, %v4769_v5  ;;  %v255_v18 = vand.u32 %v5509_v46, %v212_v48  ;;  %v5683_v39 = vld [vmem:[%s6464_s1 + $0x4] sm:$0xf] }
  0xa2   : > { %v246_v54 = vand.u32 %v5509_v46, %v219_v51  ;;  %4859 = vmatprep.subr.bf16.mxu0 %v5265_v3  ;;  %2646 = vrot.lane.b32.xlu1 %v5597_v44, %s5267_s16 }
  0xa3   : > { %3182 = vrot.lane.b32.xlu0 %v5459_v33, %s5270_s17  ;;  %v5668_v30 = vrot.slane %v3460_v10, %v5299_v6  ;;  %v486_v10 = vand.u32 %v5509_v46, %v5378_v23 }
  0xa4   : > { %v5617_v56 = vpop.permute.xlu1 %1536  ;;  %339 = vmatprep.subr.bf16.mxu1 %v246_v54  ;;  %v210_v57 = vpop.permute.xlu0 %209 }
  0xa5   : > { %v220_v58 = vsel %vm213_vm4, %v208_v50, %v210_v57  ;;  %v221_v60 = vsel %vm213_vm4, %v210_v57, %v212_v48  ;;  %340 = vmatpush1.bf16.msra.mxu1 %v243_v53  ;;  %v474_v50 = vand.u32 %v5509_v46, %v5347_v17  ;;  %v1317_v57 = vand.u32 %v5407_v31, %v5509_v46 }
  0xa6   : > { %v249_v61 = vand.u32 %v5509_v46, %v220_v58  ;;  %v252_v63 = vand.u32 %v5509_v46, %v221_v60  ;;  %2654 = vrot.lane.b32.xlu1 %v5612_v55, %s5267_s16  ;;  %v3477_v58 = vcombine.high %v4770_v9, %v4770_v9  ;;  %v5730_v60 = vld [vmem:[%s6464_s1] sm:$0xf]  ;;  %v480_v31 = vand.u32 %v5509_v46, %v5343_v16 }
  0xa7   : > { %4710 = vmatmul.mubr.msk.bf16.vlgmr.msra.gmra.mrb[8].mxu0 %vm222_vm3, %v5582_v26  ;;  %3194 = vrot.lane.b32.xlu0 %v5505_v43, %s5270_s17  ;;  %v5793_v23 = vcombine.high %v5668_v30, %v5668_v30 }
  0xa8   : > { %4693 = vmatmul.mubr.msk.bf16.vlgmr.msra.gmra.mrb[8].mxu1 %vm222_vm3, %v5551_v62  ;;  %380 = vmatprep.subr.bf16.mxu1 %v252_v63  ;;  %v5631_v0 = vpop.permute.xlu0 %985  ;;  %v5639_v4 = vpop.permute.xlu1 %1534 }
  0xa9   : > { %v1024_v2 = vand.u32 %v5631_v0, %v5509_v46  ;;  %381 = vmatpush1.bf16.msra.mxu1 %v249_v61  ;;  %4861 = vmatprep.mubr.msk.bf16.mxu0 %vm5268_vm0, %v5265_v3  ;;  %v471_v61 = vand.u32 %v5509_v46, %v5328_v14  ;;  %v5748_v14 = vrot.slane %v3477_v58, %v5299_v6 }
  0xaa   : > { %412 = vmatprep.mubr.bf16.mxu1 %v5269_v15  ;;  %4841 = vmatprep.subr.bf16.mxu1 %v5265_v3 }
  0xab   : > { %4860 = vmatpush3.bf16.msra.mxu0 %v1024_v2  ;;  %2917 = vrot.lane.b32.xlu1 %v5597_v44, %s5266_s15  ;;  %v1552_v2 = vsel %vm213_vm4, %v5639_v4, %v5617_v56  ;;  %v477_v4 = vand.u32 %v5509_v46, %v5325_v13 }
  0xac   : > { %v5646_v8 = vpop.permute.xlu0 %1538  ;;  %1319 = vmatprep.subr.bf16.mxu0 %v1296_v1  ;;  %3190 = vrot.lane.b32.xlu0 %v5483_v38, %s5270_s17  ;;  %v5661_v32 = vpop.permute.xlu1 %1546 }
  0xad   : > { %v1553_v17 = vsel %vm213_vm4, %v5617_v56, %v5646_v8  ;;  %v1564_v56 = vand.u32 %v1552_v2, %v5509_v46  ;;  %v489_v2 = vand.u32 %v5307_v7, %v5509_v46 }
  0xae   : > { %v1567_v63 = vand.u32 %v1553_v17, %v5509_v46 }
  0xaf   : > { %4862 = vmatmul.mubr.msk.bf16.vlgmr.msra.gmra.mrb[0].mxu0 %vm222_vm3, %v5582_v26  ;;  %3188 = vrot.lane.b32.xlu1 %v5597_v44, %s5270_s17 }
  0xb0   : > { %4694 = vmatmul.mubr.msk.bf16.vlgmr.msra.gmra.mrb[12].mxu1 %vm222_vm3, %v5551_v62  ;;  %v5665_v21 = vpop.permute.xlu0 %1544  ;;  %1320 = vmatpush1.bf16.msra.mxu0 %v1293_v22  ;;  %v5691_v48 = vpop.permute.xlu1 %1550 }
  0xb1   : > { %4842 = vmatpush3.bf16.msra.mxu1 %v255_v18  ;;  %1351 = vmatprep.mubr.bf16.mxu0 %v5269_v15  ;;  %v1588_v58 = vand.u32 %v5691_v48, %v5509_v46 }
  0xb2   : > { %4843 = vmatprep.mubr.msk.bf16.mxu1 %vm5268_vm0, %v5265_v3  ;;  %1401 = vmatprep.subr.bf16.mxu0 %v1308_v11 }
  0xb3   : > { %491 = vmatprep.subr.bf16.mxu1 %v468_v20  ;;  %3198 = vrot.lane.b32.xlu0 %v5531_v52, %s5270_s17  ;;  %v5786_v20 = vld.sshfl [vmem:[%s5304_s14 + $0x46] sm:$0x3 pattern:$0x76325410] }
  0xb4   : > { %v5678_v35 = vpop.permute.xlu0 %1542  ;;  %3750 = vrot.lane.b32.xlu1 %v5668_v30, %s5267_s16  ;;  %v5719_v54 = vpop.permute.xlu1 %1809 }
  0xb5   : > { %v1556_v13 = vsel %vm213_vm4, %v5678_v35, %v5665_v21 }
  0xb7   : > { %4718 = vmatmul.mubr.msk.bf16.vlgmr.msra.gmra.mrb[4].mxu0 %vm222_vm3, %v5683_v39  ;;  %2925 = vrot.lane.b32.xlu0 %v5612_v55, %s5266_s15 }
  0xb8   : > { %4844 = vmatmul.mubr.msk.bf16.vlgmr.msra.gmra.mrb[16].mxu1 %vm222_vm3, %v5551_v62  ;;  %v5705_v51 = vpop.permute.xlu0 %1807  ;;  %1402 = vmatpush1.bf16.msra.mxu0 %v1305_v42  ;;  %v5717_v62 = vrot.slane %v4770_v9, %v5299_v6  ;;  %v5755_v16 = vpop.permute.xlu1 %701  ;;  %v1557_v6 = vsel %vm213_vm4, %v5665_v21, %v5661_v32  ;;  %v1576_v42 = vand.u32 %v1556_v13, %v5509_v46  ;;  %v5799_v21 = vld [vmem:[%s6464_s1 + $0xc] sm:$0xf] }
  0xb9   : > { %492 = vmatpush1.bf16.msra.mxu1 %v465_v45  ;;  %1433 = vmatprep.mubr.bf16.mxu0 %v5269_v15  ;;  %v1579_v22 = vand.u32 %v1557_v6, %v5509_v46  ;;  %v483_v45 = vand.u32 %v5509_v46, %v5358_v19  ;;  %v1824_v19 = vsel %vm715_vm6, %v5705_v51, %v5719_v54 }
  0xba   : > { %523 = vmatprep.mubr.bf16.mxu1 %v5269_v15  ;;  %4865 = vmatprep.subr.bf16.mxu0 %v5265_v3  ;;  %v5743_v1 = vcombine.high %v5717_v62, %v5717_v62 }
  0xbb   : > { %532 = vmatprep.subr.bf16.mxu1 %v474_v50  ;;  %3748 = vrot.lane.b32.xlu0 %v5701_v27, %s5267_s16 }
  0xbc   : > { %v5721_v53 = vpop.permute.xlu0 %699  ;;  %3746 = vrot.lane.b32.xlu1 %v5676_v12, %s5267_s16  ;;  %v698_v11 = vpop.permute.xlu1 %697 }
  0xbd   : > { %v717_v17 = vsel %vm715_vm6, %v5721_v53, %v5755_v16 }
  0xbe   : > { %v731_v6 = vand.u32 %v717_v17, %v5509_v46 }
  0xbf   : > { %4720 = vmatmul.mubr.msk.bf16.vlgmr.msra.gmra.mrb[8].mxu0 %vm222_vm3, %v5683_v39  ;;  %3196 = vrot.lane.b32.xlu0 %v5612_v55, %s5270_s17 }
  0xc0   : > { %4696 = vmatmul.mubr.msk.bf16.vlgmr.msra.gmra.mrb[0].mxu1 %vm222_vm3, %v5730_v60  ;;  %4866 = vmatpush3.bf16.msra.mxu0 %v1317_v57  ;;  %v5757_v5 = vpop.permute.xlu0 %1805  ;;  %v5805_v50 = vpop.permute.xlu1 %1817  ;;  %v5827_v57 = vcombine.high %v5748_v14, %v5748_v14 }
  0xc1   : > { %533 = vmatpush1.bf16.msra.mxu1 %v471_v61  ;;  %4867 = vmatprep.mubr.msk.bf16.mxu0 %vm5268_vm0, %v5265_v3 }
  0xc2   : > { %564 = vmatprep.mubr.bf16.mxu1 %v5269_v15  ;;  %1590 = vmatprep.subr.bf16.mxu0 %v1567_v63 }
  0xc3   : > { %573 = vmatprep.subr.bf16.mxu1 %v480_v31  ;;  %3756 = vrot.lane.b32.xlu0 %v5743_v1, %s5267_s16  ;;  %v1838_v31 = vand.u32 %v1824_v19, %v5509_v46 }
  0xc4   : > { %3758 = vrot.lane.b32.xlu1 %v5748_v14, %s5267_s16  ;;  %v5777_v18 = vpop.permute.xlu0 %1815  ;;  %v706_v61 = vpop.permute.xlu1 %705 }
  0xc7   : > { %4868 = vmatmul.mubr.msk.bf16.vlgmr.msra.gmra.mrb[0].mxu0 %vm222_vm3, %v5683_v39  ;;  %3754 = vrot.lane.b32.xlu0 %v5717_v62, %s5267_s16 }
  0xc8   : > { %1591 = vmatpush1.bf16.msra.mxu0 %v1564_v56  ;;  %4697 = vmatmul.mubr.msk.bf16.vlgmr.msra.gmra.mrb[4].mxu1 %vm222_vm3, %v5730_v60  ;;  %v704_v9 = vpop.permute.xlu0 %703  ;;  %v1828_v56 = vsel %vm715_vm6, %v5777_v18, %v5805_v50 }
  0xc9   : > { %574 = vmatpush1.bf16.msra.mxu1 %v477_v4  ;;  %1622 = vmatprep.mubr.bf16.mxu0 %v5269_v15  ;;  %v708_v4 = vpop.permute.xlu1 %707  ;;  %v719_v13 = vsel %vm715_vm6, %v704_v9, %v706_v61  ;;  %v718_v17 = vsel %vm715_vm6, %v5755_v16, %v704_v9 }
  0xca   : > { %605 = vmatprep.mubr.bf16.mxu1 %v5269_v15  ;;  %1672 = vmatprep.subr.bf16.mxu0 %v1579_v22  ;;  %v1823_v22 = vsel %vm715_vm6, %v5757_v5, %v5705_v51  ;;  %v737_v5 = vand.u32 %v719_v13, %v5509_v46  ;;  %v720_v9 = vsel %vm715_vm6, %v706_v61, %v708_v4 }
  0xcb   : > { %614 = vmatprep.subr.bf16.mxu1 %v486_v10  ;;  %4019 = vrot.lane.b32.xlu0 %v5701_v27, %s5266_s15  ;;  %v716_v10 = vsel %vm715_vm6, %v698_v11, %v5721_v53  ;;  %v740_v61 = vand.u32 %v720_v9, %v5509_v46 }
  0xcc   : > { %3762 = vrot.lane.b32.xlu1 %v5786_v20, %s5267_s16  ;;  %v5831_v63 = vpop.permute.xlu0 %1813  ;;  %v728_v51 = vand.u32 %v716_v10, %v5509_v46 }
  0xcd   : > { %v5872_v53 = vpop.permute.xlu1 %1821  ;;  %v1827_v19 = vsel %vm715_vm6, %v5831_v63, %v5777_v18 }
  0xce   : > { %v1847_v18 = vand.u32 %v1827_v19, %v5509_v46 }
  0xcf   : > { %4724 = vmatmul.mubr.msk.bf16.vlgmr.msra.gmra.mrb[4].mxu0 %vm222_vm3, %v5799_v21  ;;  %3752 = vrot.lane.b32.xlu0 %v5793_v23, %s5267_s16 }
  0xd0   : > { %1673 = vmatpush1.bf16.msra.mxu0 %v1576_v42  ;;  %4698 = vmatmul.mubr.msk.bf16.vlgmr.msra.gmra.mrb[8].mxu1 %vm222_vm3, %v5730_v60  ;;  %v5848_v7 = vpop.permute.xlu0 %709  ;;  %v1850_v42 = vand.u32 %v1828_v56, %v5509_v46  ;;  %v1859_v56 = vand.u32 %v5872_v53, %v5509_v46 }
  0xd1   : > { %615 = vmatpush1.bf16.msra.mxu1 %v483_v45  ;;  %1704 = vmatprep.mubr.bf16.mxu0 %v5269_v15  ;;  %v1835_v45 = vand.u32 %v1823_v22, %v5509_v46 }
  0xd2   : > { %4871 = vmatprep.subr.bf16.mxu0 %v5265_v3  ;;  %646 = vmatprep.mubr.bf16.mxu1 %v5269_v15 }
  0xd3   : > { %4847 = vmatprep.subr.bf16.mxu1 %v5265_v3  ;;  %4027 = vrot.lane.b32.xlu0 %v5743_v1, %s5266_s15 }
  0xd4   : > { %4021 = vrot.lane.b32.xlu1 %v5668_v30, %s5266_s15  ;;  %v2079_v11 = vpop.permute.xlu0 %2078 }
  0xd7   : > { %4726 = vmatmul.mubr.msk.bf16.vlgmr.msra.gmra.mrb[8].mxu0 %vm222_vm3, %v5799_v21  ;;  %3760 = vrot.lane.b32.xlu0 %v5827_v57, %s5267_s16 }
  0xd8   : > { %4872 = vmatpush3.bf16.msra.mxu0 %v1588_v58  ;;  %4699 = vmatmul.mubr.msk.bf16.vlgmr.msra.gmra.mrb[12].mxu1 %vm222_vm3, %v5730_v60  ;;  %v5890_v58 = vld [vmem:[%s6464_s1 + $0x24] sm:$0xf] }
  0xd9   : > { %1861 = vmatprep.subr.bf16.mxu0 %v1838_v31  ;;  %4848 = vmatpush3.bf16.msra.mxu1 %v489_v2  ;;  %v5895_v31 = vpop.permute.xlu1 %2080  ;;  %v712_v2 = vpop.permute.xlu0 %711 }
  0xda   : > { %754 = vmatprep.subr.bf16.mxu1 %v731_v6  ;;  %4873 = vmatprep.mubr.msk.bf16.mxu0 %vm5268_vm0, %v5265_v3  ;;  %v734_v6 = vand.u32 %v718_v17, %v5509_v46  ;;  %v2095_v10 = vsel %vm987_vm5, %v2079_v11, %v5895_v31  ;;  %v722_v17 = vsel %vm715_vm6, %v5848_v7, %v712_v2 }
  0xdb   : > { %4849 = vmatprep.mubr.msk.bf16.mxu1 %vm5268_vm0, %v5265_v3  ;;  %4017 = vrot.lane.b32.xlu1 %v5676_v12, %s5266_s15 }
  0xdc   : > { %4023 = vrot.lane.b32.xlu0 %v5793_v23, %s5266_s15 }
  0xdd   : > { %v2077_v22 = vpop.permute.xlu1 %2076  ;;  %v2087_v13 = vpop.permute.xlu0 %2086 }
  0xdf   : > { %4874 = vmatmul.mubr.msk.bf16.vlgmr.msra.gmra.mrb[0].mxu0 %vm222_vm3, %v5799_v21  ;;  %4029 = vrot.lane.b32.xlu1 %v5748_v14, %s5266_s15 }
  0xe0   : > { %1862 = vmatpush1.bf16.msra.mxu0 %v1835_v45  ;;  %4850 = vmatmul.mubr.msk.bf16.vlgmr.msra.gmra.mrb[16].mxu1 %vm222_vm3, %v5730_v60  ;;  %v721_v60 = vsel %vm715_vm6, %v708_v4, %v5848_v7  ;;  %v2109_v4 = vand.u32 %v2095_v10, %v5509_v46 }
  0xe1   : > { %755 = vmatpush1.bf16.msra.mxu1 %v728_v51  ;;  %1943 = vmatprep.subr.bf16.mxu0 %v1850_v42  ;;  %v743_v16 = vand.u32 %v721_v60, %v5509_v46  ;;  %v723_v42 = vsel %vm715_vm6, %v712_v2, %v5513_v47  ;;  %v2094_v51 = vsel %vm987_vm5, %v2077_v22, %v2079_v11  ;;  %v5929_v47 = vpop.permute.xlu1 %2088  ;;  %v5966_v22 = vld [vmem:[%s6464_s1 + $0x2c] sm:$0xf] }
  0xe2   : > { %1893 = vmatprep.mubr.bf16.mxu0 %v5269_v15  ;;  %786 = vmatprep.mubr.bf16.mxu1 %v5269_v15  ;;  %v749_v45 = vand.u32 %v723_v42, %v5509_v46  ;;  %v2106_v19 = vand.u32 %v2094_v51, %v5509_v46  ;;  %v2099_v11 = vsel %vm987_vm5, %v2087_v13, %v5929_v47 }
  0xe3   : > { %795 = vmatprep.subr.bf16.mxu1 %v737_v5  ;;  %4290 = vrot.lane.b32.xlu0 %v5701_v27, %s5270_s17  ;;  %v976_v5 = vpop.permute.xlu0 %975  ;;  %v2399_v51 = vand.u32 %v5459_v33, %v5509_v46 }
  0xe4   : > { %4025 = vrot.lane.b32.xlu1 %v5717_v62, %s5266_s15  ;;  %v991_v60 = vsel %vm987_vm5, %v976_v5, %v5575_v24 }
  0xe5   : > { %v5949_v7 = vpop.permute.xlu1 %2084  ;;  %v1009_v2 = vand.u32 %v991_v60, %v5509_v46 }
  0xe6   : > { %v2098_v24 = vsel %vm987_vm5, %v5949_v7, %v2087_v13 }
  0xe7   : > { %4730 = vmatmul.mubr.msk.bf16.vlgmr.msra.gmra.mrb[4].mxu0 %vm222_vm3, %v5890_v58  ;;  %4031 = vrot.lane.b32.xlu0 %v5827_v57, %s5266_s15  ;;  %v2118_v9 = vand.u32 %v2098_v24, %v5509_v46 }
  0xe8   : > { %1944 = vmatpush1.bf16.msra.mxu0 %v1847_v18  ;;  %4702 = vmatmul.mubr.msk.bf16.vlgmr.msra.gmra.mrb[0].mxu1 %vm222_vm3, %v5524_v49  ;;  %v746_v18 = vand.u32 %v722_v17, %v5509_v46 }
  0xe9   : > { %796 = vmatpush1.bf16.msra.mxu1 %v734_v6  ;;  %1975 = vmatprep.mubr.bf16.mxu0 %v5269_v15  ;;  %v2121_v6 = vand.u32 %v2099_v11, %v5509_v46 }
  0xea   : > { %827 = vmatprep.mubr.bf16.mxu1 %v5269_v15  ;;  %836 = vmatprep.subr.bf16.mxu1 %v743_v16  ;;  %v984_v16 = vpop.permute.xlu0 %983 }
  0xeb   : > { %4877 = vmatprep.subr.bf16.mxu0 %v5265_v3  ;;  %4033 = vrot.lane.b32.xlu1 %v5786_v20, %s5266_s15  ;;  %v995_v10 = vsel %vm987_vm5, %v984_v16, %v5631_v0  ;;  %v5982_v0 = vpop.permute.xlu1 %2092 }
  0xec   : > { %4298 = vrot.lane.b32.xlu0 %v5743_v1, %s5270_s17  ;;  %v2130_v42 = vand.u32 %v5982_v0, %v5509_v46 }
  0xef   : > { %4732 = vmatmul.mubr.msk.bf16.vlgmr.msra.gmra.mrb[8].mxu0 %vm222_vm3, %v5890_v58  ;;  %4292 = vrot.lane.b32.xlu1 %v5668_v30, %s5270_s17 }
  0xf0   : > { %4703 = vmatmul.mubr.msk.bf16.vlgmr.msra.gmra.mrb[4].mxu1 %vm222_vm3, %v5524_v49  ;;  %4878 = vmatpush3.bf16.msra.mxu0 %v1859_v56  ;;  %v990_v56 = vsel %vm987_vm5, %v5544_v59, %v976_v5  ;;  %v1021_v59 = vand.u32 %v995_v10, %v5509_v46  ;;  %v1314_v5 = vand.u32 %v5472_v36, %v5509_v46 }
  0xf1   : > { %837 = vmatpush1.bf16.msra.mxu1 %v740_v61  ;;  %4879 = vmatprep.mubr.msk.bf16.mxu0 %vm5268_vm0, %v5265_v3  ;;  %v1006_v13 = vand.u32 %v990_v56, %v5509_v46  ;;  %v1302_v61 = vand.u32 %v5480_v37, %v5509_v46  ;;  %v2643_v37 = vpop.permute.xlu1 %2642  ;;  %v2411_v36 = vand.u32 %v5483_v38, %v5509_v46 }
  0xf2   : > { %877 = vmatprep.subr.bf16.mxu1 %v749_v45  ;;  %868 = vmatprep.mubr.bf16.mxu1 %v5269_v15  ;;  %v2402_v45 = vand.u32 %v5467_v34, %v5509_v46  ;;  %v1299_v34 = vand.u32 %v5396_v29, %v5509_v46  ;;  %v6022_v29 = vld [vmem:[%s6464_s1 + $0x10] sm:$0xf] }
  0xf3   : > { %2132 = vmatprep.subr.bf16.mxu0 %v2109_v4  ;;  %4294 = vrot.lane.b32.xlu0 %v5793_v23, %s5270_s17 }
  0xf4   : > { %4288 = vrot.lane.b32.xlu1 %v5676_v12, %s5270_s17 }
  0xf5   : > { %v1549_v33 = vpop.permute.xlu1 %1548 }
  0xf7   : > { %4880 = vmatmul.mubr.msk.bf16.vlgmr.msra.gmra.mrb[0].mxu0 %vm222_vm3, %v5890_v58  ;;  %4302 = vrot.lane.b32.xlu0 %v5827_v57, %s5270_s17 }
  0xf8   : > { %4704 = vmatmul.mubr.msk.bf16.vlgmr.msra.gmra.mrb[8].mxu1 %vm222_vm3, %v5524_v49  ;;  %2133 = vmatpush1.bf16.msra.mxu0 %v2106_v19  ;;  %v2414_v19 = vand.u32 %v5491_v40, %v5509_v46 }
  0xf9   : > { %878 = vmatpush1.bf16.msra.mxu1 %v746_v18  ;;  %2164 = vmatprep.mubr.bf16.mxu0 %v5269_v15  ;;  %v2651_v18 = vpop.permute.xlu1 %2650 }
  0xfa   : > { %1067 = vmatprep.subr.bf16.mxu1 %v1009_v2  ;;  %909 = vmatprep.mubr.bf16.mxu1 %v5269_v15  ;;  %v1559_v2 = vsel %vm213_vm4, %v1549_v33, %v5691_v48  ;;  %v1558_v48 = vsel %vm213_vm4, %v5661_v32, %v1549_v33 }
  0xfb   : > { %2214 = vmatprep.subr.bf16.mxu0 %v2121_v6  ;;  %4300 = vrot.lane.b32.xlu1 %v5748_v14, %s5270_s17  ;;  %v2423_v6 = vand.u32 %v5531_v52, %v5509_v46 }
  0xfd   : > { %v1812_v24 = vpop.permute.xlu1 %1811 }
  0xff   : > { %4736 = vmatmul.mubr.msk.bf16.vlgmr.msra.gmra.mrb[4].mxu0 %vm222_vm3, %v5966_v22  ;;  %4296 = vrot.lane.b32.xlu1 %v5717_v62, %s5270_s17 }
 0x100   : > { %4705 = vmatmul.mubr.msk.bf16.vlgmr.msra.gmra.mrb[12].mxu1 %vm222_vm3, %v5524_v49  ;;  %2215 = vmatpush1.bf16.msra.mxu0 %v2118_v9  ;;  %v994_v49 = vsel %vm987_vm5, %v5577_v25, %v984_v16  ;;  %v1541_v25 = vpop.permute.xlu0 %1540 }
 0x101   : > { %1068 = vmatpush1.bf16.msra.mxu1 %v1006_v13  ;;  %2246 = vmatprep.mubr.bf16.mxu0 %v5269_v15  ;;  %v1018_v4 = vand.u32 %v994_v49, %v5509_v46  ;;  %v1555_v40 = vsel %vm213_vm4, %v1541_v25, %v5678_v35  ;;  %v1820_v10 = vpop.permute.xlu1 %1819 }
 0x102   : > { %1149 = vmatprep.subr.bf16.mxu1 %v1021_v59  ;;  %1099 = vmatprep.mubr.bf16.mxu1 %v5269_v15  ;;  %v1573_v60 = vand.u32 %v1555_v40, %v5509_v46  ;;  %v1826_v59 = vsel %vm715_vm6, %v1812_v24, %v5831_v63 }
 0x103   : > { %4883 = vmatprep.subr.bf16.mxu0 %v5265_v3  ;;  %4304 = vrot.lane.b32.xlu1 %v5786_v20, %s5270_s17 }
 0x104   : > { %v6013_v17 = vpop.permute.xlu0 %2644 }
 0x105   : > { %v2659_v38 = vsel %vm213_vm4, %v2643_v37, %v6013_v17  ;;  %v2914_v63 = vpop.permute.xlu1 %2913 }
 0x106   : > { %v2673_v9 = vand.u32 %v2659_v38, %v5509_v46 }
 0x107   : > { %4738 = vmatmul.mubr.msk.bf16.vlgmr.msra.gmra.mrb[8].mxu0 %vm222_vm3, %v5966_v22 }
 0x108   : > { %4709 = vmatmul.mubr.msk.bf16.vlgmr.msra.gmra.mrb[4].mxu1 %vm222_vm3, %v5582_v26  ;;  %4884 = vmatpush3.bf16.msra.mxu0 %v2130_v42  ;;  %v2641_v11 = vpop.permute.xlu0 %2640  ;;  %v1582_v42 = vand.u32 %v1558_v48, %v5509_v46 }
 0x109   : > { %1150 = vmatpush1.bf16.msra.mxu1 %v1018_v4  ;;  %4885 = vmatprep.mubr.msk.bf16.mxu0 %vm5268_vm0, %v5265_v3  ;;  %v2658_v56 = vsel %vm213_vm4, %v2641_v11, %v2643_v37 }
 0x10a   : > { %1181 = vmatprep.mubr.bf16.mxu1 %v5269_v15  ;;  %1360 = vmatprep.subr.bf16.mxu1 %v1302_v61  ;;  %v2670_v13 = vand.u32 %v2658_v56, %v5509_v46  ;;  %v1844_v61 = vand.u32 %v1826_v59, %v5509_v46 }
 0x10b   : > { %2425 = vmatprep.subr.bf16.mxu0 %v2402_v45  ;;  %v1825_v45 = vsel %vm715_vm6, %v5719_v54, %v1812_v24  ;;  %v2083_v54 = vpop.permute.xlu1 %2082 }
 0x10c   : > { %v6042_v35 = vpop.permute.xlu0 %2652 }
 0x10f   : > { %4886 = vmatmul.mubr.msk.bf16.vlgmr.msra.gmra.mrb[0].mxu0 %vm222_vm3, %v5966_v22 }
 0x110   : > { %4711 = vmatmul.mubr.msk.bf16.vlgmr.msra.gmra.mrb[12].mxu1 %vm222_vm3, %v5582_v26  ;;  %2426 = vmatpush1.bf16.msra.mxu0 %v2399_v51  ;;  %v1311_v26 = vand.u32 %v5393_v28, %v5509_v46  ;;  %v1554_v28 = vsel %vm213_vm4, %v5646_v8, %v1541_v25  ;;  %v1585_v8 = vand.u32 %v1559_v2, %v5509_v46  ;;  %v6058_v52 = vpop.permute.xlu0 %2648  ;;  %v6087_v25 = vld [vmem:[%s6464_s1 + $0x18] sm:$0xf] }
 0x111   : > { %1361 = vmatpush1.bf16.msra.mxu1 %v1299_v34  ;;  %2457 = vmatprep.mubr.bf16.mxu0 %v5269_v15  ;;  %v1570_v16 = vand.u32 %v1554_v28, %v5509_v46  ;;  %v2662_v32 = vsel %vm213_vm4, %v6058_v52, %v2651_v18  ;;  %v1830_v51 = vsel %vm715_vm6, %v1820_v10, %v5872_v53 }
 0x112   : > { %1392 = vmatprep.mubr.bf16.mxu1 %v5269_v15  ;;  %1442 = vmatprep.subr.bf16.mxu1 %v1314_v5  ;;  %v2682_v37 = vand.u32 %v2662_v32, %v5509_v46  ;;  %v1841_v5 = vand.u32 %v1825_v45, %v5509_v46  ;;  %v1829_v53 = vsel %vm715_vm6, %v5805_v50, %v1820_v10 }
 0x113   : > { %2507 = vmatprep.subr.bf16.mxu0 %v2414_v19  ;;  %v1856_v19 = vand.u32 %v1830_v51, %v5509_v46  ;;  %v1853_v11 = vand.u32 %v1829_v53, %v5509_v46  ;;  %v2096_v28 = vsel %vm987_vm5, %v5895_v31, %v2083_v54 }
 0x114   : > { %v6073_v4 = vpop.permute.xlu0 %2656 }
 0x115   : > { %v2694_v33 = vand.u32 %v6073_v4, %v5509_v46 }
 0x117   : > { %4746 = vmatmul.mubr.msk.bf16.vlgmr.msra.gmra.mrb[4].mxu0 %vm222_vm3, %v6022_v29 }
 0x118   : > { %4719 = vmatmul.mubr.msk.bf16.vlgmr.msra.gmra.mrb[4].mxu1 %vm222_vm3, %v5683_v39  ;;  %2508 = vmatpush1.bf16.msra.mxu0 %v2411_v36  ;;  %v6091_v34 = vpop.permute.xlu0 %2915 }
 0x119   : > { %1443 = vmatpush1.bf16.msra.mxu1 %v1311_v26  ;;  %2539 = vmatprep.mubr.bf16.mxu0 %v5269_v15  ;;  %v2930_v36 = vsel %vm715_vm6, %v2914_v63, %v6091_v34  ;;  %v2922_v26 = vpop.permute.xlu1 %2921 }
 0x11a   : > { %1631 = vmatprep.subr.bf16.mxu1 %v1573_v60  ;;  %1474 = vmatprep.mubr.bf16.mxu1 %v5269_v15  ;;  %v2944_v60 = vand.u32 %v2930_v36, %v5509_v46 }
 0x11b   : > { %4889 = vmatprep.subr.bf16.mxu0 %v5265_v3 }
 0x11c   : > { %v2912_v40 = vpop.permute.xlu0 %2911 }
 0x11d   : > { %v2091_v38 = vpop.permute.xlu1 %2090 }
 0x11e   : > { %v2101_v24 = vsel %vm987_vm5, %v2091_v38, %v5982_v0  ;;  %v2100_v48 = vsel %vm987_vm5, %v5929_v47, %v2091_v38  ;;  %v3508_v38 = vand.u32 %v5701_v27, %v5509_v46  ;;  %v3505_v27 = vand.u32 %v5676_v12, %v5509_v46 }
 0x11f   : > { %4748 = vmatmul.mubr.msk.bf16.vlgmr.msra.gmra.mrb[8].mxu0 %vm222_vm3, %v6022_v29  ;;  %v2124_v59 = vand.u32 %v2100_v48, %v5509_v46 }
 0x120   : > { %4721 = vmatmul.mubr.msk.bf16.vlgmr.msra.gmra.mrb[12].mxu1 %vm222_vm3, %v5683_v39  ;;  %4890 = vmatpush3.bf16.msra.mxu0 %v2423_v6  ;;  %v2663_v39 = vsel %vm213_vm4, %v2651_v18, %v6042_v35  ;;  %v2929_v18 = vsel %vm715_vm6, %v2912_v40, %v2914_v63  ;;  %v2420_v63 = vand.u32 %v5612_v55, %v5509_v46 }
 0x121   : > { %1632 = vmatpush1.bf16.msra.mxu1 %v1570_v16  ;;  %4891 = vmatprep.mubr.msk.bf16.mxu0 %vm5268_vm0, %v5265_v3  ;;  %v2685_v49 = vand.u32 %v2663_v39, %v5509_v46  ;;  %v2941_v6 = vand.u32 %v2929_v18, %v5509_v46  ;;  %v2112_v16 = vand.u32 %v2096_v28, %v5509_v46  ;;  %v6142_v0 = vpop.permute.xlu1 %2927 }
 0x122   : > { %1713 = vmatprep.subr.bf16.mxu1 %v1585_v8  ;;  %1663 = vmatprep.mubr.bf16.mxu1 %v5269_v15  ;;  %v2127_v8 = vand.u32 %v2101_v24, %v5509_v46  ;;  %v2408_v39 = vand.u32 %v5597_v44, %v5509_v46  ;;  %v2965_v44 = vand.u32 %v6142_v0, %v5509_v46 }
 0x123   : > { %2696 = vmatprep.subr.bf16.mxu0 %v2673_v9 }
 0x127   : > { %4892 = vmatmul.mubr.msk.bf16.vlgmr.msra.gmra.mrb[0].mxu0 %vm222_vm3, %v6022_v29 }
 0x128   : > { %2697 = vmatpush1.bf16.msra.mxu0 %v2670_v13  ;;  %4725 = vmatmul.mubr.msk.bf16.vlgmr.msra.gmra.mrb[4].mxu1 %vm222_vm3, %v5799_v21 }
 0x129   : > { %1714 = vmatpush1.bf16.msra.mxu1 %v1582_v42  ;;  %2728 = vmatprep.mubr.bf16.mxu0 %v5269_v15  ;;  %v6158_v42 = vpop.permute.xlu1 %3186 }
 0x12a   : > { %1902 = vmatprep.subr.bf16.mxu1 %v1844_v61  ;;  %1745 = vmatprep.mubr.bf16.mxu1 %v5269_v15  ;;  %v2405_v61 = vand.u32 %v5494_v41, %v5509_v46 }
 0x12b   : > { %2778 = vmatprep.subr.bf16.mxu0 %v2685_v49 }
 0x12d   : > { %v3193_v32 = vpop.permute.xlu1 %3192 }
 0x12f   : > { %4752 = vmatmul.mubr.msk.bf16.vlgmr.msra.gmra.mrb[4].mxu0 %vm222_vm3, %v6087_v25 }
 0x130   : > { %2779 = vmatpush1.bf16.msra.mxu0 %v2682_v37  ;;  %4727 = vmatmul.mubr.msk.bf16.vlgmr.msra.gmra.mrb[12].mxu1 %vm222_vm3, %v5799_v21  ;;  %v2097_v21 = vsel %vm987_vm5, %v2083_v54, %v5949_v7  ;;  %v6120_v7 = vpop.permute.xlu0 %2923 }
 0x131   : > { %1903 = vmatpush1.bf16.msra.mxu1 %v1841_v5  ;;  %2810 = vmatprep.mubr.bf16.mxu0 %v5269_v15  ;;  %v2115_v50 = vand.u32 %v2097_v21, %v5509_v46  ;;  %v2934_v2 = vsel %vm715_vm6, %v2922_v26, %v6120_v7  ;;  %v2647_v55 = vpop.permute.xlu1 %2646  ;;  %v6209_v21 = vld [vmem:[%s6464_s1 + $0x38] sm:$0xf] }
 0x132   : > { %1984 = vmatprep.subr.bf16.mxu1 %v1856_v19  ;;  %1934 = vmatprep.mubr.bf16.mxu1 %v5269_v15  ;;  %v2956_v9 = vand.u32 %v2934_v2, %v5509_v46  ;;  %v2417_v19 = vand.u32 %v5505_v43, %v5509_v46  ;;  %v2660_v43 = vsel %vm213_vm4, %v6013_v17, %v2647_v55 }
 0x133   : > { %4895 = vmatprep.subr.bf16.mxu0 %v5265_v3 }
 0x134   : > { %v6135_v56 = vpop.permute.xlu0 %2919 }
 0x135   : > { %v2933_v31 = vsel %vm715_vm6, %v6135_v56, %v2922_v26 }
 0x136   : > { %v2953_v10 = vand.u32 %v2933_v31, %v5509_v46 }
 0x137   : > { %4754 = vmatmul.mubr.msk.bf16.vlgmr.msra.gmra.mrb[8].mxu0 %vm222_vm3, %v6087_v25 }
 0x138   : > { %4731 = vmatmul.mubr.msk.bf16.vlgmr.msra.gmra.mrb[4].mxu1 %vm222_vm3, %v5890_v58  ;;  %4896 = vmatpush3.bf16.msra.mxu0 %v2694_v33  ;;  %v3185_v13 = vpop.permute.xlu0 %3184 }
 0x139   : > { %1985 = vmatpush1.bf16.msra.mxu1 %v1853_v11  ;;  %4897 = vmatprep.mubr.msk.bf16.mxu0 %vm5268_vm0, %v5265_v3  ;;  %v3201_v47 = vsel %vm987_vm5, %v3185_v13, %v6158_v42  ;;  %v2676_v11 = vand.u32 %v2660_v43, %v5509_v46 }
 0x13a   : > { %2173 = vmatprep.subr.bf16.mxu1 %v2115_v50  ;;  %2016 = vmatprep.mubr.bf16.mxu1 %v5269_v15  ;;  %v3215_v45 = vand.u32 %v3201_v47, %v5509_v46  ;;  %v3529_v47 = vand.u32 %v5786_v20, %v5509_v46 }
 0x13b   : > { %2967 = vmatprep.subr.bf16.mxu0 %v2944_v60 }
 0x13c   : > { %v3183_v49 = vpop.permute.xlu0 %3182 }
 0x13d   : > { %v3200_v37 = vsel %vm987_vm5, %v3183_v49, %v3185_v13 }
 0x13e   : > { %v3212_v51 = vand.u32 %v3200_v37, %v5509_v46 }
 0x13f   : > { %4898 = vmatmul.mubr.msk.bf16.vlgmr.msra.gmra.mrb[0].mxu0 %vm222_vm3, %v6087_v25 }
 0x140   : > { %2968 = vmatpush1.bf16.msra.mxu0 %v2941_v6  ;;  %4733 = vmatmul.mubr.msk.bf16.vlgmr.msra.gmra.mrb[12].mxu1 %vm222_vm3, %v5890_v58  ;;  %v6151_v58 = vld [vmem:[%s6464_s1 + $0x30] sm:$0xf]  ;;  %v6181_v41 = vpop.permute.xlu0 %3194 }
 0x141   : > { %2174 = vmatpush1.bf16.msra.mxu1 %v2112_v16  ;;  %2999 = vmatprep.mubr.bf16.mxu0 %v5269_v15  ;;  %v3205_v5 = vsel %vm987_vm5, %v3193_v32, %v6181_v41 }
 0x142   : > { %2255 = vmatprep.subr.bf16.mxu1 %v2127_v8  ;;  %2205 = vmatprep.mubr.bf16.mxu1 %v5269_v15  ;;  %v3227_v54 = vand.u32 %v3205_v5, %v5509_v46 }
 0x143   : > { %3049 = vmatprep.subr.bf16.mxu0 %v2956_v9 }
 0x144   : > { %v6195_v33 = vpop.permute.xlu0 %3190 }
 0x145   : > { %v3204_v36 = vsel %vm987_vm5, %v6195_v33, %v3193_v32 }
 0x146   : > { %v3224_v40 = vand.u32 %v3204_v36, %v5509_v46  ;;  %v3511_v36 = vand.u32 %v5668_v30, %v5509_v46 }
 0x147   : > { %4758 = vmatmul.mubr.msk.bf16.vlgmr.msra.gmra.mrb[4].mxu0 %vm222_vm3, %v6151_v58 }
 0x148   : > { %4737 = vmatmul.mubr.msk.bf16.vlgmr.msra.gmra.mrb[4].mxu1 %vm222_vm3, %v5966_v22  ;;  %3050 = vmatpush1.bf16.msra.mxu0 %v2953_v10  ;;  %v3199_v17 = vpop.permute.xlu0 %3198 }
 0x149   : > { %2256 = vmatpush1.bf16.msra.mxu1 %v2124_v59  ;;  %3081 = vmatprep.mubr.bf16.mxu0 %v5269_v15  ;;  %v3236_v18 = vand.u32 %v3199_v17, %v5509_v46 }
 0x14a   : > { %2287 = vmatprep.mubr.bf16.mxu1 %v5269_v15  ;;  %2466 = vmatprep.subr.bf16.mxu1 %v2408_v39 }
 0x14b   : > { %4901 = vmatprep.subr.bf16.mxu0 %v5265_v3 }
 0x14c   : > { %v2926_v24 = vpop.permute.xlu0 %2925 }
 0x14d   : > { %v2936_v16 = vsel %vm715_vm6, %v2926_v24, %v6142_v0 }
 0x14e   : > { %v2962_v31 = vand.u32 %v2936_v16, %v5509_v46 }
 0x14f   : > { %4760 = vmatmul.mubr.msk.bf16.vlgmr.msra.gmra.mrb[8].mxu0 %vm222_vm3, %v6151_v58 }
 0x150   : > { %4739 = vmatmul.mubr.msk.bf16.vlgmr.msra.gmra.mrb[12].mxu1 %vm222_vm3, %v5966_v22  ;;  %4902 = vmatpush3.bf16.msra.mxu0 %v2965_v44  ;;  %v2661_v22 = vsel %vm213_vm4, %v2647_v55, %v6058_v52  ;;  %v2655_v52 = vpop.permute.xlu1 %2654  ;;  %v3749_v12 = vpop.permute.xlu0 %3748 }
 0x151   : > { %2467 = vmatpush1.bf16.msra.mxu1 %v2405_v61  ;;  %4903 = vmatprep.mubr.msk.bf16.mxu0 %vm5268_vm0, %v5265_v3  ;;  %v2679_v53 = vand.u32 %v2661_v22, %v5509_v46  ;;  %v2665_v26 = vsel %vm213_vm4, %v2655_v52, %v6073_v4  ;;  %v2664_v4 = vsel %vm213_vm4, %v6042_v35, %v2655_v52 }
 0x152   : > { %2498 = vmatprep.mubr.bf16.mxu1 %v5269_v15  ;;  %2548 = vmatprep.subr.bf16.mxu1 %v2420_v63  ;;  %v2691_v60 = vand.u32 %v2665_v26, %v5509_v46  ;;  %v3526_v52 = vand.u32 %v5827_v57, %v5509_v46 }
 0x153   : > { %3238 = vmatprep.subr.bf16.mxu0 %v3215_v45 }
 0x154   : > { %v2918_v50 = vpop.permute.xlu1 %2917 }
 0x155   : > { %v2932_v28 = vsel %vm715_vm6, %v2918_v50, %v6135_v56  ;;  %v2931_v2 = vsel %vm715_vm6, %v6091_v34, %v2918_v50  ;;  %v3520_v56 = vand.u32 %v5743_v1, %v5509_v46  ;;  %v2935_v34 = vsel %vm715_vm6, %v6120_v7, %v2926_v24  ;;  %v6261_v1 = vld [vmem:[%s6464_s1 + $0x14] sm:$0xf]  ;;  %v3197_v7 = vpop.permute.xlu0 %3196 }
 0x156   : > { %v2950_v6 = vand.u32 %v2932_v28, %v5509_v46  ;;  %v2947_v8 = vand.u32 %v2931_v2, %v5509_v46  ;;  %v2959_v10 = vand.u32 %v2935_v34, %v5509_v46  ;;  %v3207_v61 = vsel %vm987_vm5, %v3197_v7, %v3199_v17  ;;  %v6378_v34 = vld [vmem:[%s6464_s1 + $0x34] sm:$0xf] }
 0x157   : > { %4904 = vmatmul.mubr.msk.bf16.vlgmr.msra.gmra.mrb[0].mxu0 %vm222_vm3, %v6151_v58 }
 0x158   : > { %3239 = vmatpush1.bf16.msra.mxu0 %v3212_v51  ;;  %4747 = vmatmul.mubr.msk.bf16.vlgmr.msra.gmra.mrb[4].mxu1 %vm222_vm3, %v6022_v29  ;;  %v3189_v35 = vpop.permute.xlu1 %3188 }
 0x159   : > { %2549 = vmatpush1.bf16.msra.mxu1 %v2417_v19  ;;  %3270 = vmatprep.mubr.bf16.mxu0 %v5269_v15  ;;  %v3203_v48 = vsel %vm987_vm5, %v3189_v35, %v6195_v33  ;;  %v3757_v59 = vpop.permute.xlu0 %3756  ;;  %v3514_v19 = vand.u32 %v5793_v23, %v5509_v46  ;;  %v6320_v23 = vld [vmem:[%s6464_s1 + $0x1c] sm:$0xf] }
 0x15a   : > { %2737 = vmatprep.subr.bf16.mxu1 %v2679_v53  ;;  %2580 = vmatprep.mubr.bf16.mxu1 %v5269_v15  ;;  %v3221_v13 = vand.u32 %v3203_v48, %v5509_v46 }
 0x15b   : > { %3320 = vmatprep.subr.bf16.mxu0 %v3227_v54 }
 0x15c   : > { %v6244_v9 = vpop.permute.xlu1 %3750 }
 0x15d   : > { %v3765_v44 = vsel %vm213_vm4, %v3749_v12, %v6244_v9  ;;  %v3755_v45 = vpop.permute.xlu0 %3754 }
 0x15e   : > { %v3779_v63 = vand.u32 %v3765_v44, %v5509_v46 }
 0x15f   : > { %4764 = vmatmul.mubr.msk.bf16.vlgmr.msra.gmra.mrb[4].mxu0 %vm222_vm3, %v6209_v21 }
 0x160   : > { %4749 = vmatmul.mubr.msk.bf16.vlgmr.msra.gmra.mrb[12].mxu1 %vm222_vm3, %v6022_v29  ;;  %3321 = vmatpush1.bf16.msra.mxu0 %v3224_v40  ;;  %v2688_v29 = vand.u32 %v2664_v4, %v5509_v46  ;;  %v3747_v0 = vpop.permute.xlu1 %3746 }
 0x161   : > { %2738 = vmatpush1.bf16.msra.mxu1 %v2676_v11  ;;  %3352 = vmatprep.mubr.bf16.mxu0 %v5269_v15  ;;  %v3764_v20 = vsel %vm213_vm4, %v3747_v0, %v3749_v12  ;;  %v4020_v54 = vpop.permute.xlu0 %4019 }
 0x162   : > { %2819 = vmatprep.subr.bf16.mxu1 %v2691_v60  ;;  %2769 = vmatprep.mubr.bf16.mxu1 %v5269_v15  ;;  %v3776_v51 = vand.u32 %v3764_v20, %v5509_v46 }
 0x163   : > { %4907 = vmatprep.subr.bf16.mxu0 %v5265_v3 }
 0x164   : > { %v6273_v39 = vpop.permute.xlu1 %3758 }
 0x165   : > { %v3769_v55 = vsel %vm213_vm4, %v3757_v59, %v6273_v39  ;;  %v3753_v43 = vpop.permute.xlu0 %3752 }
 0x166   : > { %v3791_v5 = vand.u32 %v3769_v55, %v5509_v46  ;;  %v3767_v60 = vsel %vm213_vm4, %v3753_v43, %v3755_v45 }
 0x167   : > { %4766 = vmatmul.mubr.msk.bf16.vlgmr.msra.gmra.mrb[8].mxu0 %vm222_vm3, %v6209_v21  ;;  %v3785_v4 = vand.u32 %v3767_v60, %v5509_v46 }
 0x168   : > { %4753 = vmatmul.mubr.msk.bf16.vlgmr.msra.gmra.mrb[4].mxu1 %vm222_vm3, %v6087_v25  ;;  %4908 = vmatpush3.bf16.msra.mxu0 %v3236_v18  ;;  %v6284_v49 = vpop.permute.xlu1 %3762 }
 0x169   : > { %2820 = vmatpush1.bf16.msra.mxu1 %v2688_v29  ;;  %4909 = vmatprep.mubr.msk.bf16.mxu0 %vm5268_vm0, %v5265_v3  ;;  %v4028_v26 = vpop.permute.xlu0 %4027  ;;  %v3800_v30 = vand.u32 %v6284_v49, %v5509_v46 }
 0x16a   : > { %3008 = vmatprep.subr.bf16.mxu1 %v2950_v6  ;;  %2851 = vmatprep.mubr.bf16.mxu1 %v5269_v15 }
 0x16b   : > { %3531 = vmatprep.subr.bf16.mxu0 %v3508_v38 }
 0x16c   : > { %v6298_v37 = vpop.permute.xlu1 %4021 }
 0x16d   : > { %v4036_v57 = vsel %vm715_vm6, %v4020_v54, %v6298_v37  ;;  %v3761_v50 = vpop.permute.xlu0 %3760 }
 0x16e   : > { %v4050_v17 = vand.u32 %v4036_v57, %v5509_v46 }
 0x16f   : > { %4910 = vmatmul.mubr.msk.bf16.vlgmr.msra.gmra.mrb[0].mxu0 %vm222_vm3, %v6209_v21 }
 0x170   : > { %4755 = vmatmul.mubr.msk.bf16.vlgmr.msra.gmra.mrb[12].mxu1 %vm222_vm3, %v6087_v25  ;;  %3532 = vmatpush1.bf16.msra.mxu0 %v3505_v27  ;;  %v3517_v25 = vand.u32 %v5717_v62, %v5509_v46  ;;  %v3202_v62 = vsel %vm987_vm5, %v6158_v42, %v3189_v35  ;;  %v3233_v42 = vand.u32 %v3207_v61, %v5509_v46  ;;  %v4018_v53 = vpop.permute.xlu1 %4017 }
 0x171   : > { %3009 = vmatpush1.bf16.msra.mxu1 %v2947_v8  ;;  %3563 = vmatprep.mubr.bf16.mxu0 %v5269_v15  ;;  %v3218_v32 = vand.u32 %v3202_v62, %v5509_v46  ;;  %v4035_v28 = vsel %vm715_vm6, %v4018_v53, %v4020_v54  ;;  %v4024_v38 = vpop.permute.xlu0 %4023  ;;  %v3771_v35 = vsel %vm213_vm4, %v3761_v50, %v6284_v49 }
 0x172   : > { %3090 = vmatprep.subr.bf16.mxu1 %v2962_v31  ;;  %3040 = vmatprep.mubr.bf16.mxu1 %v5269_v15  ;;  %v4047_v29 = vand.u32 %v4035_v28, %v5509_v46  ;;  %v3797_v16 = vand.u32 %v3771_v35, %v5509_v46  ;;  %v3770_v31 = vsel %vm213_vm4, %v6273_v39, %v3761_v50 }
 0x173   : > { %3613 = vmatprep.subr.bf16.mxu0 %v3520_v56  ;;  %v3794_v0 = vand.u32 %v3770_v31, %v5509_v46 }
 0x174   : > { %v6326_v40 = vpop.permute.xlu1 %4029 }
 0x175   : > { %v4040_v6 = vsel %vm715_vm6, %v4028_v26, %v6326_v40  ;;  %v4291_v8 = vpop.permute.xlu0 %4290 }
 0x176   : > { %v4062_v27 = vand.u32 %v4040_v6, %v5509_v46 }
 0x177   : > { %4774 = vmatmul.mubr.msk.bf16.vlgmr.msra.gmra.mrb[4].mxu0 %vm222_vm3, %v6261_v1 }
 0x178   : > { %4759 = vmatmul.mubr.msk.bf16.vlgmr.msra.gmra.mrb[4].mxu1 %vm222_vm3, %v6151_v58  ;;  %3614 = vmatpush1.bf16.msra.mxu0 %v3517_v25  ;;  %v4026_v11 = vpop.permute.xlu1 %4025 }
 0x179   : > { %3091 = vmatpush1.bf16.msra.mxu1 %v2959_v10  ;;  %3645 = vmatprep.mubr.bf16.mxu0 %v5269_v15  ;;  %v4038_v56 = vsel %vm715_vm6, %v4024_v38, %v4026_v11  ;;  %v4032_v48 = vpop.permute.xlu0 %4031 }
 0x17a   : > { %3279 = vmatprep.subr.bf16.mxu1 %v3221_v13  ;;  %3122 = vmatprep.mubr.bf16.mxu1 %v5269_v15  ;;  %v4056_v25 = vand.u32 %v4038_v56, %v5509_v46 }
 0x17b   : > { %4913 = vmatprep.subr.bf16.mxu0 %v5265_v3 }
 0x17c   : > { %v4034_v18 = vpop.permute.xlu1 %4033 }
 0x17d   : > { %v4042_v13 = vsel %vm715_vm6, %v4032_v48, %v4034_v18  ;;  %v4071_v39 = vand.u32 %v4034_v18, %v5509_v46 }
 0x17e   : > { %v4068_v44 = vand.u32 %v4042_v13, %v5509_v46 }
 0x17f   : > { %4776 = vmatmul.mubr.msk.bf16.vlgmr.msra.gmra.mrb[8].mxu0 %vm222_vm3, %v6261_v1 }
 0x180   : > { %4761 = vmatmul.mubr.msk.bf16.vlgmr.msra.gmra.mrb[12].mxu1 %vm222_vm3, %v6151_v58  ;;  %4914 = vmatpush3.bf16.msra.mxu0 %v3529_v47  ;;  %v3206_v58 = vsel %vm987_vm5, %v6181_v41, %v3197_v7  ;;  %v3768_v41 = vsel %vm213_vm4, %v3755_v45, %v3757_v59  ;;  %v6359_v2 = vpop.permute.xlu1 %4292  ;;  %v4037_v7 = vsel %vm715_vm6, %v6298_v37, %v4024_v38  ;;  %v4299_v59 = vpop.permute.xlu0 %4298 }
 0x181   : > { %3280 = vmatpush1.bf16.msra.mxu1 %v3218_v32  ;;  %4915 = vmatprep.mubr.msk.bf16.mxu0 %vm5268_vm0, %v5265_v3  ;;  %v3230_v22 = vand.u32 %v3206_v58, %v5509_v46  ;;  %v3788_v33 = vand.u32 %v3768_v41, %v5509_v46  ;;  %v4307_v62 = vsel %vm987_vm5, %v4291_v8, %v6359_v2 }
 0x182   : > { %3361 = vmatprep.subr.bf16.mxu1 %v3233_v42  ;;  %3311 = vmatprep.mubr.bf16.mxu1 %v5269_v15  ;;  %v4053_v47 = vand.u32 %v4037_v7, %v5509_v46  ;;  %v4321_v49 = vand.u32 %v4307_v62, %v5509_v46  ;;  %v4041_v45 = vsel %vm715_vm6, %v6326_v40, %v4032_v48 }
 0x183   : > { %3802 = vmatprep.subr.bf16.mxu0 %v3779_v63 }
 0x184   : > { %v4295_v63 = vpop.permute.xlu0 %4294 }
 0x187   : > { %4916 = vmatmul.mubr.msk.bf16.vlgmr.msra.gmra.mrb[0].mxu0 %vm222_vm3, %v6261_v1 }
 0x188   : > { %4765 = vmatmul.mubr.msk.bf16.vlgmr.msra.gmra.mrb[4].mxu1 %vm222_vm3, %v6209_v21  ;;  %3803 = vmatpush1.bf16.msra.mxu0 %v3776_v51 }
 0x189   : > { %3362 = vmatpush1.bf16.msra.mxu1 %v3230_v22  ;;  %3834 = vmatprep.mubr.bf16.mxu0 %v5269_v15 }
 0x18a   : > { %3884 = vmatprep.subr.bf16.mxu0 %v3791_v5  ;;  %3393 = vmatprep.mubr.bf16.mxu1 %v5269_v15 }
 0x18b   : > { %3572 = vmatprep.subr.bf16.mxu1 %v3514_v19  ;;  %v4065_v19 = vand.u32 %v4041_v45, %v5509_v46 }
 0x18f   : > { %4780 = vmatmul.mubr.msk.bf16.vlgmr.msra.gmra.mrb[4].mxu0 %vm222_vm3, %v6320_v23 }
 0x190   : > { %4767 = vmatmul.mubr.msk.bf16.vlgmr.msra.gmra.mrb[12].mxu1 %vm222_vm3, %v6209_v21  ;;  %3885 = vmatpush1.bf16.msra.mxu0 %v3788_v33  ;;  %v3523_v21 = vand.u32 %v5748_v14, %v5509_v46  ;;  %v3766_v14 = vsel %vm213_vm4, %v6244_v9, %v3753_v43  ;;  %v4039_v9 = vsel %vm715_vm6, %v4026_v11, %v4028_v26  ;;  %v4303_v33 = vpop.permute.xlu0 %4302  ;;  %v4791_v26 = vld [vmem:[%s6464_s1 + $0x3c] sm:$0xf] }
 0x191   : > { %3573 = vmatpush1.bf16.msra.mxu1 %v3511_v36  ;;  %3916 = vmatprep.mubr.bf16.mxu0 %v5269_v15  ;;  %v3782_v24 = vand.u32 %v3766_v14, %v5509_v46  ;;  %v4059_v12 = vand.u32 %v4039_v9, %v5509_v46  ;;  %v4308_v43 = vsel %vm987_vm5, %v6359_v2, %v4295_v63 }
 0x192   : > { %3604 = vmatprep.mubr.bf16.mxu1 %v5269_v15  ;;  %3654 = vmatprep.subr.bf16.mxu1 %v3526_v52  ;;  %v4324_v60 = vand.u32 %v4308_v43, %v5509_v46 }
 0x193   : > { %4919 = vmatprep.subr.bf16.mxu0 %v5265_v3 }
 0x197   : > { %4782 = vmatmul.mubr.msk.bf16.vlgmr.msra.gmra.mrb[8].mxu0 %vm222_vm3, %v6320_v23 }
 0x198   : > { %4775 = vmatmul.mubr.msk.bf16.vlgmr.msra.gmra.mrb[4].mxu1 %vm222_vm3, %v6261_v1  ;;  %4920 = vmatpush3.bf16.msra.mxu0 %v3800_v30 }
 0x199   : > { %3655 = vmatpush1.bf16.msra.mxu1 %v3523_v21  ;;  %4921 = vmatprep.mubr.msk.bf16.mxu0 %vm5268_vm0, %v5265_v3 }
 0x19a   : > { %3843 = vmatprep.subr.bf16.mxu1 %v3785_v4  ;;  %3686 = vmatprep.mubr.bf16.mxu1 %v5269_v15 }
 0x19b   : > { %4073 = vmatprep.subr.bf16.mxu0 %v4050_v17 }
 0x19f   : > { %4922 = vmatmul.mubr.msk.bf16.vlgmr.msra.gmra.mrb[0].mxu0 %vm222_vm3, %v6320_v23 }
 0x1a0   : > { %4074 = vmatpush1.bf16.msra.mxu0 %v4047_v29  ;;  %4777 = vmatmul.mubr.msk.bf16.vlgmr.msra.gmra.mrb[12].mxu1 %vm222_vm3, %v6261_v1  ;;  %v4289_v1 = vpop.permute.xlu1 %4288 }
 0x1a1   : > { %3844 = vmatpush1.bf16.msra.mxu1 %v3782_v24  ;;  %4105 = vmatprep.mubr.bf16.mxu0 %v5269_v15  ;;  %v4306_v32 = vsel %vm987_vm5, %v4289_v1, %v4291_v8 }
 0x1a2   : > { %3925 = vmatprep.subr.bf16.mxu1 %v3797_v16  ;;  %3875 = vmatprep.mubr.bf16.mxu1 %v5269_v15  ;;  %v4318_v37 = vand.u32 %v4306_v32, %v5509_v46 }
 0x1a3   : > { %4155 = vmatprep.subr.bf16.mxu0 %v4062_v27 }
 0x1a4   : > { %v4301_v10 = vpop.permute.xlu1 %4300 }
 0x1a5   : > { %v4311_v58 = vsel %vm987_vm5, %v4299_v59, %v4301_v10  ;;  %v4312_v21 = vsel %vm987_vm5, %v4301_v10, %v4303_v33 }
 0x1a6   : > { %v4333_v54 = vand.u32 %v4311_v58, %v5509_v46  ;;  %v4336_v4 = vand.u32 %v4312_v21, %v5509_v46 }
 0x1a7   : > { %4786 = vmatmul.mubr.msk.bf16.vlgmr.msra.gmra.mrb[4].mxu0 %vm222_vm3, %v6378_v34 }
 0x1a8   : > { %4781 = vmatmul.mubr.msk.bf16.vlgmr.msra.gmra.mrb[4].mxu1 %vm222_vm3, %v6320_v23  ;;  %4156 = vmatpush1.bf16.msra.mxu0 %v4059_v12  ;;  %v4297_v61 = vpop.permute.xlu1 %4296 }
 0x1a9   : > { %3926 = vmatpush1.bf16.msra.mxu1 %v3794_v0  ;;  %4187 = vmatprep.mubr.bf16.mxu0 %v5269_v15  ;;  %v4309_v20 = vsel %vm987_vm5, %v4295_v63, %v4297_v61  ;;  %v4310_v41 = vsel %vm987_vm5, %v4297_v61, %v4299_v59 }
 0x1aa   : > { %4114 = vmatprep.subr.bf16.mxu1 %v4056_v25  ;;  %3957 = vmatprep.mubr.bf16.mxu1 %v5269_v15  ;;  %v4327_v22 = vand.u32 %v4309_v20, %v5509_v46  ;;  %v4330_v52 = vand.u32 %v4310_v41, %v5509_v46 }
 0x1ab   : > { %4925 = vmatprep.subr.bf16.mxu0 %v5265_v3 }
 0x1ac   : > { %v4305_v53 = vpop.permute.xlu1 %4304 }
 0x1ad   : > { %v4313_v36 = vsel %vm987_vm5, %v4303_v33, %v4305_v53  ;;  %v4342_v17 = vand.u32 %v4305_v53, %v5509_v46 }
 0x1ae   : > { %v4339_v11 = vand.u32 %v4313_v36, %v5509_v46 }
 0x1af   : > { %4788 = vmatmul.mubr.msk.bf16.vlgmr.msra.gmra.mrb[8].mxu0 %vm222_vm3, %v6378_v34 }
 0x1b0   : > { %4783 = vmatmul.mubr.msk.bf16.vlgmr.msra.gmra.mrb[12].mxu1 %vm222_vm3, %v6320_v23  ;;  %4926 = vmatpush3.bf16.msra.mxu0 %v4071_v39 }
 0x1b1   : > { %4115 = vmatpush1.bf16.msra.mxu1 %v4053_v47  ;;  %4927 = vmatprep.mubr.msk.bf16.mxu0 %vm5268_vm0, %v5265_v3 }
 0x1b2   : > { %4196 = vmatprep.subr.bf16.mxu1 %v4068_v44  ;;  %4146 = vmatprep.mubr.bf16.mxu1 %v5269_v15 }
 0x1b3   : > { %v6406_v42 = vpop.f32.mrb[16].mxu1  ;;  %4344 = vmatprep.subr.bf16.mxu0 %v4321_v49 }
 0x1b4   : > { %v4851_v55 = vpop.f32.mrb[17].mxu1 }
 0x1b5   : > { %v692_v51 = vpop.f32.mrb[18].mxu1 }
 0x1b6   : > { %v4852_v5 = vpop.f32.mrb[19].mxu1 }
 0x1b7   : > { %4928 = vmatmul.mubr.msk.bf16.vlgmr.msra.gmra.mrb[0].mxu0 %vm222_vm3, %v6378_v34 }
 0x1b8   : > { %4787 = vmatmul.mubr.msk.bf16.vlgmr.msra.gmra.mrb[4].mxu1 %vm222_vm3, %v6378_v34  ;;  %4345 = vmatpush1.bf16.msra.mxu0 %v4318_v37 }
 0x1b9   : > { %4197 = vmatpush1.bf16.msra.mxu1 %v4065_v19  ;;  %4376 = vmatprep.mubr.bf16.mxu0 %v5269_v15 }
 0x1ba   : > { %4228 = vmatprep.mubr.bf16.mxu1 %v5269_v15  ;;  %4385 = vmatprep.subr.bf16.mxu1 %v4327_v22 }
 0x1bb   : > { %v788_v23 = vpop.f32.mrb[0].mxu1  ;;  %4426 = vmatprep.subr.bf16.mxu0 %v4333_v54 }
 0x1bc   : > { %v790_v40 = vpop.f32.mrb[1].mxu1 }
 0x1bd   : > { %v792_v30 = vpop.f32.mrb[2].mxu1 }
 0x1be   : > { %v793_v57 = vpop.f32.mrb[3].mxu1 }
 0x1bf   : > { %4792 = vmatmul.mubr.msk.bf16.vlgmr.msra.gmra.mrb[4].mxu0 %vm222_vm3, %v4791_v26 }
 0x1c0   : > { %4789 = vmatmul.mubr.msk.bf16.vlgmr.msra.gmra.mrb[12].mxu1 %vm222_vm3, %v6378_v34  ;;  %4427 = vmatpush1.bf16.msra.mxu0 %v4330_v52 }
 0x1c1   : > { %4386 = vmatpush1.bf16.msra.mxu1 %v4324_v60  ;;  %4458 = vmatprep.mubr.bf16.mxu0 %v5269_v15 }
 0x1c2   : > { %4417 = vmatprep.mubr.bf16.mxu1 %v5269_v15  ;;  %4467 = vmatprep.subr.bf16.mxu1 %v4339_v11 }
 0x1c3   : > { %4931 = vmatprep.subr.bf16.mxu0 %v5265_v3 }
 0x1c7   : > { %4794 = vmatmul.mubr.msk.bf16.vlgmr.msra.gmra.mrb[8].mxu0 %vm222_vm3, %v4791_v26 }
 0x1c8   : > { %4793 = vmatmul.mubr.msk.bf16.vlgmr.msra.gmra.mrb[4].mxu1 %vm222_vm3, %v4791_v26  ;;  %4932 = vmatpush3.bf16.msra.mxu0 %v4342_v17 }
 0x1c9   : > { %4468 = vmatpush1.bf16.msra.mxu1 %v4336_v4  ;;  %4933 = vmatprep.mubr.msk.bf16.mxu0 %vm5268_vm0, %v5265_v3  ;;  %vm4625_vm0 = vcmask 257024  }
 0x1ca   : > { %4499 = vmatprep.mubr.bf16.mxu1 %v5269_v15 }
 0x1cb   : > { %v870_v50 = vpop.f32.mrb[8].mxu1 }
 0x1cc   : > { %v872_v18 = vpop.f32.mrb[9].mxu1 }
 0x1cd   : > { %v874_v28 = vpop.f32.mrb[10].mxu1 }
 0x1ce   : > { %v875_v14 = vpop.f32.mrb[11].mxu1 }
 0x1cf   : > { %4934 = vmatmul.mubr.msk.bf16.vlgmr.msra.gmra.mrb[0].mxu0 %vm222_vm3, %v4791_v26 }
 0x1d0   : > { %4795 = vmatmul.mubr.msk.bf16.vlgmr.msra.gmra.mrb[12].mxu1 %vm222_vm3, %v4791_v26 }
 0x292   : > { %v4378_v46 = vpop.f32.mrb[4].mxu0 }
 0x293   : > { %v4937_v29 = vadd.f32 %v4378_v46, %v788_v23  ;;  %v4380_v38 = vpop.f32.mrb[5].mxu0 }
 0x294   : > { %v4938_v6 = vadd.f32 %v4380_v38, %v790_v40  ;;  %v4382_v35 = vpop.f32.mrb[6].mxu0 }
 0x295   : > { %vm4557_vm7 = vcmp.ge.f32.partialorder %v4937_v29, 0.0  ;;  %v4566_v2 = vmul.f32 0.2, %v4937_v29  ;;  %v4383_v24 = vpop.f32.mrb[7].mxu0 }
 0x296   : > { %vm4558_vm8 = vcmp.ge.f32.partialorder %v4938_v6, 0.0  ;;  %v4567_v3 = vmul.f32 0.2, %v4938_v6 }
 0x297   : > { %v4575_v15 = vsel %vm4557_vm7, %v4937_v29, %v4566_v2 }
 0x298   : > { %v4576_v27 = vsel %vm4558_vm8, %v4938_v6, %v4567_v3 }
 0x299   : > { %v4804_v16 = vpack.c.bf16 %v4576_v27, %v4575_v15 }
 0x29a   : > { %v4460_v9 = vpop.f32.mrb[8].mxu0 }
 0x29b   : > { %4621 = vst [vmem:[%s6452_s27] sm:$0xff] %v4804_v16  ;;  %v4939_v8 = vadd.f32 %v4460_v9, %v870_v50  ;;  %v4419_v56 = vpop.f32.mrb[4].mxu1  ;;  %v4462_v31 = vpop.f32.mrb[9].mxu0 }
 0x29c   : > { %vm4559_vm9 = vcmp.ge.f32.partialorder %v4419_v56, 0.0  ;;  %v4568_v12 = vmul.f32 0.2, %v4419_v56  ;;  %v4940_v34 = vadd.f32 %v4462_v31, %v872_v18  ;;  %v4421_v1 = vpop.f32.mrb[5].mxu1  ;;  %v4464_v25 = vpop.f32.mrb[10].mxu0 }
 0x29d   : > { %vm4561_vm10 = vcmp.ge.f32.partialorder %v4939_v8, 0.0  ;;  %v4570_v0 = vmul.f32 0.2, %v4939_v8  ;;  %vm4560_vm11 = vcmp.ge.f32.partialorder %v4421_v1, 0.0  ;;  %v4569_v48 = vmul.f32 0.2, %v4421_v1 }
 0x29e   : > { %v4577_v10 = vsel %vm4559_vm9, %v4419_v56, %v4568_v12  ;;  %vm4562_vm12 = vcmp.ge.f32.partialorder %v4940_v34, 0.0  ;;  %v4571_v13 = vmul.f32 0.2, %v4940_v34  ;;  %v4423_v7 = vpop.f32.mrb[6].mxu1  ;;  %v4465_v39 = vpop.f32.mrb[11].mxu0 }
 0x29f   : > { %v4579_v62 = vsel %vm4561_vm10, %v4939_v8, %v4570_v0  ;;  %v4578_v59 = vsel %vm4560_vm11, %v4421_v1, %v4569_v48  ;;  %v4424_v44 = vpop.f32.mrb[7].mxu1 }
 0x2a0   : > { %v4580_v47 = vsel %vm4562_vm12, %v4940_v34, %v4571_v13  ;;  %v4805_v49 = vpack.c.bf16 %v4578_v59, %v4577_v10 }
 0x2a1   : > { %v4806_v61 = vpack.c.bf16 %v4580_v47, %v4579_v62 }
 0x2a2   : > { %4622 = vst [vmem:[%s6452_s27 + $0x8] sm:$0xff] %v4805_v49  ;;  %v4542_v32 = vpop.f32.mrb[0].mxu0 }
 0x2a3   : > { %4623 = vst [vmem:[%s6452_s27 + $0x10] sm:$0xff] %v4806_v61  ;;  %v4941_v63 = vadd.f32 %v4542_v32, %v6406_v42  ;;  %v4501_v20 = vpop.f32.mrb[12].mxu1  ;;  %v4935_v45 = vpop.f32.mrb[1].mxu0 }
 0x2a4   : > { %vm4563_vm13 = vcmp.ge.f32.partialorder %v4501_v20, 0.0  ;;  %v4572_v37 = vmul.f32 0.2, %v4501_v20  ;;  %v4503_v55 = vpop.f32.mrb[13].mxu1  ;;  %v4545_v58 = vpop.f32.mrb[2].mxu0 }
 0x2a5   : > { %vm4565_vm14 = vcmp.ge.f32.partialorder %v4941_v63, 0.0  ;;  %v4574_v51 = vmul.f32 0.2, %v4941_v63  ;;  %vm4564_vm15 = vcmp.ge.f32.partialorder %v4503_v55, 0.0  ;;  %v4573_v5 = vmul.f32 0.2, %v4503_v55 }
 0x2a6   : > { %v4581_v22 = vsel %vm4563_vm13, %v4501_v20, %v4572_v37  ;;  %v4505_v19 = vpop.f32.mrb[14].mxu1  ;;  %v4936_v54 = vpop.f32.mrb[3].mxu0 }
 0x2a7   : > { %v4583_v53 = vsel %vm4565_vm14, %v4941_v63, %v4574_v51  ;;  %v4582_v41 = vsel %vm4564_vm15, %v4503_v55, %v4573_v5  ;;  %v4506_v33 = vpop.f32.mrb[15].mxu1 }
 0x2a8   : > { %v4808_v42 = vpack.c.bf16 %v4583_v53, %v4583_v53  ;;  %v4807_v23 = vpack.c.bf16 %v4582_v41, %v4581_v22 }
 0x2aa   : > { %4626 = vst.msk [vmem:[%s6452_s27 + $0x20] sm:$0xf] %vm4625_vm0, %v4808_v42  ;;  %4624 = vst [vmem:[%s6452_s27 + $0x18] sm:$0xff] %v4807_v23 }
 0x2ab PF: > { %s12_s9 = sadd.s32 1, %s5262_s9  }
 0x2ac   : > { %p9_p4 = scmp.ge.s32.totalorder %s12_s9, 6  }
 0x2ae   :  { %11 = sbr.rel (!%p9_p4) target bundleno = 1 (0x1), region = 76 }

// kernel: discriminator_forward.6
= control target key start
LH: loop header
LB: loop body
LE: loop exit
PB: predicated region body
PF: predicated region fallthrough
CT: control target
= control target key end

     0   :  { %s2725_s12 = smov 0   ;;  %s3121_s0 = inlined_call_operand.vmem [shape: bf16[4,4,8,306], index: 0, kind: input, shape index: {}]   ;;  %s3122_s1 = inlined_call_operand.vmem [shape: bf16[16,16,8], index: 1, kind: input, shape index: {}]   ;;  %s3123_s2 = inlined_call_operand.vmem [shape: f32[4,16,272], index: 2, kind: output, shape index: {0}]   ;;  %s3124_s3 = inlined_call_operand.vmem [shape: f32[4,16,2], index: 3, kind: output, shape index: {1}]  }
   0x1 LB: > { %s2270_s13 = sadd.s32 4294967295, %s2697_s12   ;;  %p2274_p0 = scmp.ge.s32.totalorder %s2697_s12, 1  ;;  %s2697_s12 = sphi %s2725_s12, %s14_s12  }
   0x2   : > { %p140_p1 = scmp.lt.s32.totalorder %s2697_s12, 5 }
   0x4   : > { %p141_p2 = pnand %p2274_p0, %p140_p1 }
   0x5   : > { %p169_p3 = scmp.lt.s32.totalorder (!%p141_p2), %s2270_s13, 3  ;;  %v2699_v0 = vmov (!%p141_p2), 0.0   ;;  %vm2700_vm0 = vmmov (!%p141_p2), 0   ;;  %v2701_v1 = vmov (!%p141_p2), 0   ;;  %s2702_s18 = smov (!%p141_p2), 127   ;;  %vm218_vm1 = vcmask (!%p141_p2), 1043456  }
   0x6   : > { %144 = sbr.rel (%p141_p2) target bundleno = 694 (0x2b6), region = 28  ;;  %2426 = vmatprep.subr.bf16.mxu1 (!%p141_p2), %v2699_v0  ;;  %2428 = vmatprep.mubr.msk.bf16.mxu1 (!%p141_p2), %vm2700_vm0, %v2699_v0  ;;  %s2703_s19 = smov (!%p141_p2), 111   ;;  %v2672_v21 = vld [vmem:[%s3122_s1 + $0x10] sm:$0xff] (!%p141_p2)   ;;  %vm214_vm2 = vcmask (!%p141_p2), 64512   ;;  %vm211_vm3 = vcmask (!%p141_p2), 1039360   ;;  %vm427_vm4 = vcmask (!%p141_p2), 908288  }
   0x7   : > { %260 = vmatprep.mubr.bf16.mxu0 (!%p141_p2), %v2701_v1  ;;  %s2704_s20 = smov (!%p141_p2), 110   ;;  %v2673_v32 = vld [vmem:[%s3122_s1] sm:$0xff] (!%p141_p2)   ;;  %vm546_vm5 = vcmask (!%p141_p2), 900096   ;;  %v2678_v44 = vld [vmem:[%s3122_s1 + $0x50] sm:$0xff] (!%p141_p2)   ;;  %v2679_v51 = vld [vmem:[%s3122_s1 + $0x8] sm:$0xff] (!%p141_p2)   ;;  %vm2078_vm13 = vcmask (!%p141_p2), 130048  }
   0x8   : > { %v2674_v40 = vld [vmem:[%s3122_s1 + $0x40] sm:$0xff] (!%p141_p2)   ;;  %v2680_v59 = vld [vmem:[%s3122_s1 + $0x18] sm:$0xff] (!%p141_p2)  }
   0xd   : > { %s3128_s13 = smov (!%p169_p3, %s2270_s13), 3 }
   0xe   : > { %s2642_s14 = smul.u32 48, %s3128_s13 }
  0x10   : > { %s2745_s17 = scalar_lea.vmem %s3121_s0, %s2642_s14  ;;  %s3092_s4 = scalar_lea.vmem %s3123_s2, %s2642_s14 }
  0x11   : > { %v2748_v2 = vld [vmem:[%s2745_s17 + $0x8] ss:$0 sps:$4 sm:$0xff]   ;;  %v185_v3 = vld [vmem:[%s2745_s17] sm:$0xff]  ;;  %v2304_v6 = vld [vmem:[%s2745_s17 + $0xc] sm:$0xff]  ;;  %s2393_s14 = sshll.u32 %s3128_s13, 4 }
  0x12   : > { %v2751_v4 = vcombine.low %v185_v3, %v185_v3  ;;  %209 = vrot.lane.b32.xlu1 %v2748_v2, %s2702_s18  ;;  %v2757_v5 = vcombine.high %v185_v3, %v185_v3  ;;  %v2770_v7 = vcombine.low %v2304_v6, %v2304_v6  ;;  %v2777_v8 = vld [vmem:[%s2745_s17 + $0x14] ss:$0 sps:$4 sm:$0xff]   ;;  %v2781_v9 = vcombine.high %v2304_v6, %v2304_v6  ;;  %v2333_v10 = vld [vmem:[%s2745_s17 + $0x18] sm:$0xff]  ;;  %v2809_v13 = vld [vmem:[%s2745_s17 + $0x20] ss:$0 sps:$4 sm:$0xff]   ;;  %s183_s7 = scalar_lea.vmem %s3124_s3, %s2393_s14 }
  0x13   : > { %v2798_v11 = vcombine.high %v2333_v10, %v2333_v10  ;;  %v2802_v12 = vcombine.low %v2333_v10, %v2333_v10  ;;  %v2362_v14 = vld [vmem:[%s2745_s17 + $0x24] sm:$0xff]  ;;  %v2829_v16 = vld [vmem:[%s2745_s17 + $0x2c] ss:$0 sps:$4 sm:$0xff]   ;;  %v327_v22 = vsel %vm218_vm1, %v2748_v2, 0  ;;  %v680_v46 = vsel %vm218_vm1, %v2777_v8, 0 }
  0x14   : > { %205 = vrot.lane.b32.xlu0 %v2751_v4, %s2702_s18  ;;  %v2822_v15 = vcombine.low %v2362_v14, %v2362_v14  ;;  %v2833_v17 = vcombine.high %v2362_v14, %v2362_v14  ;;  %v321_v29 = vsel %vm218_vm1, %v2751_v4, 0  ;;  %v674_v49 = vsel %vm218_vm1, %v2770_v7, 0 }
  0x15   : > { %v1155_v14 = vsel %vm218_vm1, %v2809_v13, 0 }
  0x16   : > { %421 = vrot.lane.b32.xlu1 %v2751_v4, %s2703_s19 }
  0x18   : > { %207 = vrot.lane.b32.xlu0 %v2757_v5, %s2702_s18 }
  0x1a   : > { %425 = vrot.lane.b32.xlu1 %v2748_v2, %s2703_s19 }
  0x1c   : > { %423 = vrot.lane.b32.xlu0 %v2757_v5, %s2703_s19 }
  0x1e   : > { %542 = vrot.lane.b32.xlu1 %v2757_v5, %s2704_s20 }
  0x20   : > { %540 = vrot.lane.b32.xlu0 %v2751_v4, %s2704_s20 }
  0x22   : > { %780 = vrot.lane.b32.xlu1 %v2770_v7, %s2702_s18 }
  0x24   : > { %544 = vrot.lane.b32.xlu0 %v2748_v2, %s2704_s20 }
  0x26   : > { %784 = vrot.lane.b32.xlu1 %v2777_v8, %s2702_s18 }
  0x28   : > { %782 = vrot.lane.b32.xlu0 %v2781_v9, %s2702_s18 }
  0x2a   : > { %900 = vrot.lane.b32.xlu1 %v2781_v9, %s2703_s19 }
  0x2c   : > { %898 = vrot.lane.b32.xlu0 %v2770_v7, %s2703_s19 }
  0x2e   : > { %1016 = vrot.lane.b32.xlu1 %v2770_v7, %s2704_s20 }
  0x30   : > { %902 = vrot.lane.b32.xlu0 %v2777_v8, %s2703_s19 }
  0x32   : > { %1020 = vrot.lane.b32.xlu1 %v2777_v8, %s2704_s20 }
  0x34   : > { %1018 = vrot.lane.b32.xlu0 %v2781_v9, %s2704_s20 }
  0x36   : > { %1257 = vrot.lane.b32.xlu1 %v2798_v11, %s2702_s18 }
  0x38   : > { %1255 = vrot.lane.b32.xlu0 %v2802_v12, %s2702_s18 }
  0x3a   : > { %1373 = vrot.lane.b32.xlu1 %v2802_v12, %s2703_s19 }
  0x3c   : > { %1259 = vrot.lane.b32.xlu0 %v2809_v13, %s2702_s18 }
  0x3e   : > { %1377 = vrot.lane.b32.xlu1 %v2809_v13, %s2703_s19 }
  0x40   : > { %1375 = vrot.lane.b32.xlu0 %v2798_v11, %s2703_s19 }
  0x42   : > { %1493 = vrot.lane.b32.xlu1 %v2798_v11, %s2704_s20 }
  0x44   : > { %1491 = vrot.lane.b32.xlu0 %v2802_v12, %s2704_s20 }
  0x46   : > { %1730 = vrot.lane.b32.xlu1 %v2822_v15, %s2702_s18 }
  0x48   : > { %1495 = vrot.lane.b32.xlu0 %v2809_v13, %s2704_s20 }
  0x4a   : > { %1734 = vrot.lane.b32.xlu1 %v2829_v16, %s2702_s18 }
  0x4c   : > { %1732 = vrot.lane.b32.xlu0 %v2833_v17, %s2702_s18 }
  0x4e   : > { %1850 = vrot.lane.b32.xlu1 %v2833_v17, %s2703_s19 }
  0x50   : > { %1848 = vrot.lane.b32.xlu0 %v2822_v15, %s2703_s19 }
  0x52   : > { %1966 = vrot.lane.b32.xlu1 %v2822_v15, %s2704_s20 }
  0x54   : > { %1852 = vrot.lane.b32.xlu0 %v2829_v16, %s2703_s19 }
  0x56   : > { %1970 = vrot.lane.b32.xlu1 %v2829_v16, %s2704_s20 }
  0x58   : > { %1968 = vrot.lane.b32.xlu0 %v2833_v17, %s2704_s20 }
  0x84   : > { %v210_v18 = vpop.permute.xlu1 %209 }
  0x85   : > { %v226_v20 = vsel %vm218_vm1, %v210_v18, 0 }
  0x86   : > { %v206_v19 = vpop.permute.xlu0 %205  ;;  %2427 = vmatpush3.bf16.msra.mxu1 %v226_v20  ;;  %v1149_v20 = vsel %vm218_vm1, %v2802_v12, 0 }
  0x87   : > { %2432 = vmatprep.subr.bf16.mxu1 %v2699_v0 }
  0x88   : > { %v422_v23 = vpop.permute.xlu1 %421 }
  0x89   : > { %2429 = vmatmul.mubr.msk.bf16.vlgmr.msra.gmra.mrb[0].mxu1 %vm214_vm2, %v2672_v21 }
  0x8a   : > { %v208_v24 = vpop.permute.xlu0 %207  ;;  %2433 = vmatpush3.bf16.msra.mxu1 %v327_v22  ;;  %2434 = vmatprep.mubr.msk.bf16.mxu1 %vm2700_vm0, %v2699_v0 }
  0x8b   : > { %v213_v25 = vsel %vm211_vm3, %v208_v24, %v210_v18  ;;  %v212_v26 = vsel %vm211_vm3, %v206_v19, %v208_v24  ;;  %2438 = vmatprep.subr.bf16.mxu1 %v2699_v0 }
  0x8c   : > { %2285 = vmatprep.subr.msk.bf16.mxu0 %vm218_vm1, %v213_v25  ;;  %v220_v27 = vsel %vm218_vm1, %v212_v26, 0  ;;  %v426_v28 = vpop.permute.xlu1 %425 }
  0x8d   : > { %229 = vmatpush1.bf16.msra.mxu0 %v220_v27  ;;  %v440_v34 = vsel %vm218_vm1, %v426_v28, 0  ;;  %v2684_v27 = vld [vmem:[%s3122_s1 + $0x30] sm:$0xff]  }
  0x8e   : > { %2289 = vmatprep.subr.msk.bf16.mxu0 %vm218_vm1, %v2757_v5  ;;  %v424_v30 = vpop.permute.xlu0 %423  ;;  %v2681_v5 = vld [vmem:[%s3122_s1 + $0x48] sm:$0xff]  }
  0x8f   : > { %v429_v31 = vsel %vm427_vm4, %v424_v30, %v426_v28  ;;  %v428_v35 = vsel %vm427_vm4, %v422_v23, %v424_v30 }
  0x90   : > { %2286 = vmatmul.mubr.msk.bf16.vlgmr.msra.gmra.mrb[0].mxu0 %vm214_vm2, %v2672_v21  ;;  %v543_v36 = vpop.permute.xlu1 %542  ;;  %v434_v38 = vsel %vm218_vm1, %v428_v35, 0  ;;  %v2685_v35 = vld [vmem:[%s3122_s1 + $0x60] sm:$0xff]  }
  0x91   : > { %330 = vmatpush1.bf16.msra.mxu0 %v321_v29  ;;  %361 = vmatprep.mubr.bf16.mxu0 %v2701_v1 }
  0x92   : > { %2295 = vmatprep.subr.msk.bf16.mxu0 %vm218_vm1, %v429_v31  ;;  %v541_v33 = vpop.permute.xlu0 %540 }
  0x93   : > { %v547_v42 = vsel %vm546_vm5, %v541_v33, %v543_v36 }
  0x94   : > { %v553_v43 = vsel %vm218_vm1, %v547_v42, 0  ;;  %v781_v45 = vpop.permute.xlu1 %780 }
  0x95   : > { %2435 = vmatmul.mubr.msk.bf16.vlgmr.msra.gmra.mrb[0].mxu1 %vm214_vm2, %v2673_v32 }
  0x96   : > { %2439 = vmatpush3.bf16.msra.mxu1 %v440_v34  ;;  %2440 = vmatprep.mubr.msk.bf16.mxu1 %vm2700_vm0, %v2699_v0  ;;  %v545_v37 = vpop.permute.xlu0 %544 }
  0x97   : > { %2444 = vmatprep.subr.bf16.mxu1 %v2699_v0  ;;  %v548_v39 = vsel %vm546_vm5, %v543_v36, %v545_v37  ;;  %v559_v41 = vsel %vm218_vm1, %v545_v37, 0 }
  0x98   : > { %v785_v48 = vpop.permute.xlu1 %784 }
  0x99   : > { %v798_v53 = vsel %vm218_vm1, %v785_v48, 0 }
  0x9a   : > { %v783_v47 = vpop.permute.xlu0 %782 }
  0x9b   : > { %v787_v50 = vsel %vm211_vm3, %v783_v47, %v785_v48  ;;  %v786_v54 = vsel %vm211_vm3, %v781_v45, %v783_v47 }
  0x9c   : > { %2290 = vmatmul.mubr.msk.bf16.vlgmr.msra.gmra.mrb[0].mxu0 %vm214_vm2, %v2673_v32  ;;  %v901_v55 = vpop.permute.xlu1 %900  ;;  %v792_v57 = vsel %vm218_vm1, %v786_v54, 0 }
  0x9d   : > { %443 = vmatpush1.bf16.msra.mxu0 %v434_v38  ;;  %474 = vmatprep.mubr.bf16.mxu0 %v2701_v1 }
  0x9e   : > { %2301 = vmatprep.subr.msk.bf16.mxu0 %vm218_vm1, %v548_v39  ;;  %v899_v52 = vpop.permute.xlu0 %898  ;;  %v2686_v39 = vld [vmem:[%s3122_s1 + $0x70] sm:$0xff]  }
  0x9f   : > { %v904_v62 = vsel %vm427_vm4, %v899_v52, %v901_v55 }
  0xa0   : > { %v1017_v60 = vpop.permute.xlu1 %1016  ;;  %v910_v3 = vsel %vm218_vm1, %v904_v62, 0 }
  0xa1   : > { %2441 = vmatmul.mubr.msk.bf16.vlgmr.msra.gmra.mrb[0].mxu1 %vm214_vm2, %v2674_v40 }
  0xa2   : > { %2445 = vmatpush3.bf16.msra.mxu1 %v559_v41  ;;  %2446 = vmatprep.mubr.msk.bf16.mxu1 %vm2700_vm0, %v2699_v0  ;;  %v903_v56 = vpop.permute.xlu0 %902  ;;  %v1630_v41 = vsel %vm218_vm1, %v2829_v16, 0  ;;  %v2687_v16 = vld [vmem:[%s3122_s1 + $0x28] sm:$0xff]  }
  0xa3   : > { %2450 = vmatprep.subr.bf16.mxu1 %v2699_v0  ;;  %v905_v58 = vsel %vm427_vm4, %v901_v55, %v903_v56  ;;  %v916_v61 = vsel %vm218_vm1, %v903_v56, 0 }
  0xa4   : > { %v1021_v2 = vpop.permute.xlu1 %1020 }
  0xa5   : > { %v1034_v6 = vsel %vm218_vm1, %v1021_v2, 0 }
  0xa6   : > { %v1019_v63 = vpop.permute.xlu0 %1018 }
  0xa7   : > { %v1023_v4 = vsel %vm546_vm5, %v1019_v63, %v1021_v2  ;;  %v1022_v7 = vsel %vm546_vm5, %v1017_v60, %v1019_v63  ;;  %v2690_v63 = vld [vmem:[%s3122_s1 + $0x78] sm:$0xff]   ;;  %v2083_v2 = vlaneseq }
  0xa8   : > { %2296 = vmatmul.mubr.msk.bf16.vlgmr.msra.gmra.mrb[0].mxu0 %vm214_vm2, %v2674_v40  ;;  %v1028_v8 = vsel %vm218_vm1, %v1022_v7, 0  ;;  %v1258_v18 = vpop.permute.xlu1 %1257 }
  0xa9   : > { %562 = vmatpush1.bf16.msra.mxu0 %v553_v43  ;;  %593 = vmatprep.mubr.bf16.mxu0 %v2701_v1 }
  0xaa   : > { %2312 = vmatprep.subr.msk.bf16.mxu0 %vm218_vm1, %v2781_v9  ;;  %v2682_v9 = vld [vmem:[%s3122_s1 + $0x58] sm:$0xff]   ;;  %v1256_v10 = vpop.permute.xlu0 %1255 }
  0xab   : > { %v1261_v12 = vsel %vm211_vm3, %v1256_v10, %v1258_v18 }
  0xac   : > { %v1374_v13 = vpop.permute.xlu1 %1373  ;;  %v1267_v25 = vsel %vm218_vm1, %v1261_v12, 0 }
  0xad   : > { %2447 = vmatmul.mubr.msk.bf16.vlgmr.msra.gmra.mrb[0].mxu1 %vm214_vm2, %v2678_v44 }
  0xae   : > { %2451 = vmatpush3.bf16.msra.mxu1 %v680_v46  ;;  %2452 = vmatprep.mubr.msk.bf16.mxu1 %vm2700_vm0, %v2699_v0  ;;  %v1260_v19 = vpop.permute.xlu0 %1259 }
  0xaf   : > { %2456 = vmatprep.subr.bf16.mxu1 %v2699_v0  ;;  %v1262_v21 = vsel %vm211_vm3, %v1258_v18, %v1260_v19  ;;  %v1273_v22 = vsel %vm218_vm1, %v1260_v19, 0 }
  0xb0   : > { %v1378_v24 = vpop.permute.xlu1 %1377 }
  0xb1   : > { %v1391_v29 = vsel %vm218_vm1, %v1378_v24, 0 }
  0xb2   : > { %v1376_v23 = vpop.permute.xlu0 %1375 }
  0xb3   : > { %v1380_v26 = vsel %vm427_vm4, %v1376_v23, %v1378_v24  ;;  %v1379_v30 = vsel %vm427_vm4, %v1374_v13, %v1376_v23 }
  0xb4   : > { %2302 = vmatmul.mubr.msk.bf16.vlgmr.msra.gmra.mrb[0].mxu0 %vm214_vm2, %v2678_v44  ;;  %v1494_v31 = vpop.permute.xlu1 %1493  ;;  %v1385_v33 = vsel %vm218_vm1, %v1379_v30, 0  ;;  %v1624_v44 = vsel %vm218_vm1, %v2822_v15, 0 }
  0xb5   : > { %683 = vmatpush1.bf16.msra.mxu0 %v674_v49  ;;  %714 = vmatprep.mubr.bf16.mxu0 %v2701_v1 }
  0xb6   : > { %2318 = vmatprep.subr.msk.bf16.mxu0 %vm218_vm1, %v787_v50  ;;  %v1492_v28 = vpop.permute.xlu0 %1491 }
  0xb7   : > { %v1497_v37 = vsel %vm546_vm5, %v1492_v28, %v1494_v31 }
  0xb8   : > { %v1503_v38 = vsel %vm218_vm1, %v1497_v37, 0  ;;  %v1731_v40 = vpop.permute.xlu1 %1730 }
  0xb9   : > { %2453 = vmatmul.mubr.msk.bf16.vlgmr.msra.gmra.mrb[0].mxu1 %vm214_vm2, %v2679_v51 }
  0xba   : > { %2457 = vmatpush3.bf16.msra.mxu1 %v798_v53  ;;  %2458 = vmatprep.mubr.msk.bf16.mxu1 %vm2700_vm0, %v2699_v0  ;;  %v1496_v32 = vpop.permute.xlu0 %1495 }
  0xbb   : > { %2462 = vmatprep.subr.bf16.mxu1 %v2699_v0  ;;  %v1498_v34 = vsel %vm546_vm5, %v1494_v31, %v1496_v32  ;;  %v1509_v36 = vsel %vm218_vm1, %v1496_v32, 0 }
  0xbc   : > { %v1735_v43 = vpop.permute.xlu1 %1734 }
  0xbd   : > { %v1748_v46 = vsel %vm218_vm1, %v1735_v43, 0 }
  0xbe   : > { %v1733_v42 = vpop.permute.xlu0 %1732 }
  0xbf   : > { %v1737_v45 = vsel %vm211_vm3, %v1733_v42, %v1735_v43  ;;  %v1736_v15 = vsel %vm211_vm3, %v1731_v40, %v1733_v42  ;;  %vm2176_vm3 = vcmask 7168  }
  0xc0   : > { %2313 = vmatmul.mubr.msk.bf16.vlgmr.msra.gmra.mrb[0].mxu0 %vm214_vm2, %v2679_v51  ;;  %v1851_v47 = vpop.permute.xlu1 %1850  ;;  %v1742_v49 = vsel %vm218_vm1, %v1736_v15, 0  ;;  %v2688_v51 = vld [vmem:[%s3122_s1 + $0x38] sm:$0xff]  }
  0xc1   : > { %801 = vmatpush1.bf16.msra.mxu0 %v792_v57  ;;  %832 = vmatprep.mubr.bf16.mxu0 %v2701_v1 }
  0xc2   : > { %2324 = vmatprep.subr.msk.bf16.mxu0 %vm218_vm1, %v905_v58 }
  0xc4   : > { %v1967_v52 = vpop.permute.xlu1 %1966 }
  0xc5   : > { %2459 = vmatmul.mubr.msk.bf16.vlgmr.msra.gmra.mrb[0].mxu1 %vm214_vm2, %v2680_v59 }
  0xc6   : > { %2463 = vmatpush3.bf16.msra.mxu1 %v916_v61  ;;  %2464 = vmatprep.mubr.msk.bf16.mxu1 %vm2700_vm0, %v2699_v0 }
  0xc7   : > { %2468 = vmatprep.subr.bf16.mxu1 %v2699_v0 }
  0xc8   : > { %v1971_v56 = vpop.permute.xlu1 %1970 }
  0xc9   : > { %v1984_v60 = vsel %vm218_vm1, %v1971_v56, 0 }
  0xcc   : > { %2319 = vmatmul.mubr.msk.bf16.vlgmr.msra.gmra.mrb[0].mxu0 %vm214_vm2, %v2680_v59  ;;  %v2689_v59 = vld [vmem:[%s3122_s1 + $0x68] sm:$0xff]  }
  0xcd   : > { %919 = vmatpush1.bf16.msra.mxu0 %v910_v3  ;;  %950 = vmatprep.mubr.bf16.mxu0 %v2701_v1  ;;  %v2084_v3 = vand.u32 127, %v2083_v2 }
  0xce   : > { %2330 = vmatprep.subr.msk.bf16.mxu0 %vm218_vm1, %v1023_v4 }
  0xcf   : > { %v2086_v4 = vadd.s32 256, %v2084_v3 }
  0xd1   : > { %2465 = vmatmul.mubr.msk.bf16.vlgmr.msra.gmra.mrb[0].mxu1 %vm214_vm2, %v2681_v5 }
  0xd2   : > { %2469 = vmatpush3.bf16.msra.mxu1 %v1034_v6  ;;  %2470 = vmatprep.mubr.msk.bf16.mxu1 %vm2700_vm0, %v2699_v0 }
  0xd3   : > { %2474 = vmatprep.subr.bf16.mxu1 %v2699_v0 }
  0xd8   : > { %2325 = vmatmul.mubr.msk.bf16.vlgmr.msra.gmra.mrb[0].mxu0 %vm214_vm2, %v2681_v5  ;;  %v2085_v5 = vadd.s32 128, %v2084_v3 }
  0xd9   : > { %1037 = vmatpush1.bf16.msra.mxu0 %v1028_v8  ;;  %1068 = vmatprep.mubr.bf16.mxu0 %v2701_v1  ;;  %v3078_v7 = vmul.u32.u64.low 4042322161, %v2084_v3  ;;  %v3079_v8 = vmul.u32.u64.high 4042322161, %v2084_v3, %v3078_v7 }
  0xda   : > { %2341 = vmatprep.subr.msk.bf16.mxu0 %vm218_vm1, %v2798_v11  ;;  %v2683_v11 = vld [vmem:[%s3122_s1 + $0x20] sm:$0xff]  }
  0xdd   : > { %2471 = vmatmul.mubr.msk.bf16.vlgmr.msra.gmra.mrb[0].mxu1 %vm214_vm2, %v2682_v9 }
  0xde   : > { %2475 = vmatpush3.bf16.msra.mxu1 %v1155_v14  ;;  %2476 = vmatprep.mubr.msk.bf16.mxu1 %vm2700_vm0, %v2699_v0  ;;  %v2093_v14 = vshrl.u32 %v3079_v8, 4 }
  0xdf   : > { %2480 = vmatprep.subr.bf16.mxu1 %v2699_v0 }
  0xe4   : > { %2331 = vmatmul.mubr.msk.bf16.vlgmr.msra.gmra.mrb[0].mxu0 %vm214_vm2, %v2682_v9 }
  0xe5   : > { %1158 = vmatpush1.bf16.msra.mxu0 %v1149_v20  ;;  %1189 = vmatprep.mubr.bf16.mxu0 %v2701_v1  ;;  %v2094_v20 = vmul.u32 17, %v2093_v14 }
  0xe6   : > { %2347 = vmatprep.subr.msk.bf16.mxu0 %vm218_vm1, %v1262_v21 }
  0xe7   : > { %v2095_v13 = vsub.s32 %v2084_v3, %v2094_v20 }
  0xe9   : > { %2477 = vmatmul.mubr.msk.bf16.vlgmr.msra.gmra.mrb[0].mxu1 %vm214_vm2, %v2683_v11  ;;  %vm2120_vm8 = vcmp.ne.s32.totalorder %v2095_v13, 0  ;;  %vm2123_vm9 = vcmp.lt.s32.totalorder %v2095_v13, 0  ;;  %v2129_v23 = vadd.s32 17, %v2095_v13 }
  0xea   : > { %2481 = vmatpush3.bf16.msra.mxu1 %v1273_v22  ;;  %2482 = vmatprep.mubr.msk.bf16.mxu1 %vm2700_vm0, %v2699_v0  ;;  %vm2126_vm14 = vmand %vm2123_vm9, %vm2120_vm8 }
  0xeb   : > { %2486 = vmatprep.subr.bf16.mxu1 %v2699_v0  ;;  %v2132_v28 = vsel %vm2126_vm14, %v2129_v23, %v2095_v13 }
  0xf0   : > { %2342 = vmatmul.mubr.msk.bf16.vlgmr.msra.gmra.mrb[0].mxu0 %vm214_vm2, %v2683_v11 }
  0xf1   : > { %1276 = vmatpush1.bf16.msra.mxu0 %v1267_v25  ;;  %1307 = vmatprep.mubr.bf16.mxu0 %v2701_v1 }
  0xf2   : > { %2353 = vmatprep.subr.msk.bf16.mxu0 %vm218_vm1, %v1380_v26 }
  0xf5   : > { %2483 = vmatmul.mubr.msk.bf16.vlgmr.msra.gmra.mrb[0].mxu1 %vm214_vm2, %v2684_v27 }
  0xf6   : > { %2487 = vmatpush3.bf16.msra.mxu1 %v1391_v29  ;;  %2488 = vmatprep.mubr.msk.bf16.mxu1 %vm2700_vm0, %v2699_v0 }
  0xf7   : > { %2492 = vmatprep.subr.bf16.mxu1 %v2699_v0 }
  0xfc   : > { %2348 = vmatmul.mubr.msk.bf16.vlgmr.msra.gmra.mrb[0].mxu0 %vm214_vm2, %v2684_v27 }
  0xfd   : > { %1394 = vmatpush1.bf16.msra.mxu0 %v1385_v33  ;;  %1425 = vmatprep.mubr.bf16.mxu0 %v2701_v1 }
  0xfe   : > { %2359 = vmatprep.subr.msk.bf16.mxu0 %vm218_vm1, %v1498_v34 }
 0x101   : > { %2489 = vmatmul.mubr.msk.bf16.vlgmr.msra.gmra.mrb[0].mxu1 %vm214_vm2, %v2685_v35 }
 0x102   : > { %2493 = vmatpush3.bf16.msra.mxu1 %v1509_v36  ;;  %2494 = vmatprep.mubr.msk.bf16.mxu1 %vm2700_vm0, %v2699_v0 }
 0x103   : > { %2498 = vmatprep.subr.bf16.mxu1 %v2699_v0 }
 0x108   : > { %2354 = vmatmul.mubr.msk.bf16.vlgmr.msra.gmra.mrb[0].mxu0 %vm214_vm2, %v2685_v35 }
 0x109   : > { %1512 = vmatpush1.bf16.msra.mxu0 %v1503_v38  ;;  %1543 = vmatprep.mubr.bf16.mxu0 %v2701_v1 }
 0x10a   : > { %2370 = vmatprep.subr.msk.bf16.mxu0 %vm218_vm1, %v2833_v17  ;;  %v1849_v17 = vpop.permute.xlu0 %1848 }
 0x10b   : > { %v1854_v54 = vsel %vm427_vm4, %v1849_v17, %v1851_v47 }
 0x10c   : > { %v1860_v57 = vsel %vm218_vm1, %v1854_v54, 0 }
 0x10d   : > { %2495 = vmatmul.mubr.msk.bf16.vlgmr.msra.gmra.mrb[0].mxu1 %vm214_vm2, %v2686_v39 }
 0x10e   : > { %2499 = vmatpush3.bf16.msra.mxu1 %v1630_v41  ;;  %2500 = vmatprep.mubr.msk.bf16.mxu1 %vm2700_vm0, %v2699_v0  ;;  %v1853_v48 = vpop.permute.xlu0 %1852 }
 0x10f   : > { %2504 = vmatprep.subr.bf16.mxu1 %v2699_v0  ;;  %v1855_v50 = vsel %vm427_vm4, %v1851_v47, %v1853_v48  ;;  %v1866_v53 = vsel %vm218_vm1, %v1853_v48, 0  ;;  %vm2179_vm4 = vcmask 15360  }
 0x112   : > { %v1969_v55 = vpop.permute.xlu0 %1968 }
 0x113   : > { %v1973_v58 = vsel %vm546_vm5, %v1969_v55, %v1971_v56  ;;  %v1972_v61 = vsel %vm546_vm5, %v1967_v52, %v1969_v55 }
 0x114   : > { %2360 = vmatmul.mubr.msk.bf16.vlgmr.msra.gmra.mrb[0].mxu0 %vm214_vm2, %v2686_v39  ;;  %v1978_v62 = vsel %vm218_vm1, %v1972_v61, 0 }
 0x115   : > { %1633 = vmatpush1.bf16.msra.mxu0 %v1624_v44  ;;  %1664 = vmatprep.mubr.bf16.mxu0 %v2701_v1 }
 0x116   : > { %2376 = vmatprep.subr.msk.bf16.mxu0 %vm218_vm1, %v1737_v45 }
 0x119   : > { %2501 = vmatmul.mubr.msk.bf16.vlgmr.msra.gmra.mrb[0].mxu1 %vm214_vm2, %v2687_v16 }
 0x11a   : > { %2505 = vmatpush3.bf16.msra.mxu1 %v1748_v46  ;;  %2506 = vmatprep.mubr.msk.bf16.mxu1 %vm2700_vm0, %v2699_v0 }
 0x11b   : > { %2510 = vmatprep.subr.bf16.mxu1 %v2699_v0 }
 0x120   : > { %2371 = vmatmul.mubr.msk.bf16.vlgmr.msra.gmra.mrb[0].mxu0 %vm214_vm2, %v2687_v16 }
 0x121   : > { %1751 = vmatpush1.bf16.msra.mxu0 %v1742_v49  ;;  %1782 = vmatprep.mubr.bf16.mxu0 %v2701_v1 }
 0x122   : > { %2382 = vmatprep.subr.msk.bf16.mxu0 %vm218_vm1, %v1855_v50 }
 0x125   : > { %2507 = vmatmul.mubr.msk.bf16.vlgmr.msra.gmra.mrb[0].mxu1 %vm214_vm2, %v2688_v51 }
 0x126   : > { %2511 = vmatpush3.bf16.msra.mxu1 %v1866_v53  ;;  %2512 = vmatprep.mubr.msk.bf16.mxu1 %vm2700_vm0, %v2699_v0 }
 0x127   : > { %2516 = vmatprep.subr.bf16.mxu1 %v2699_v0 }
 0x12c   : > { %2377 = vmatmul.mubr.msk.bf16.vlgmr.msra.gmra.mrb[0].mxu0 %vm214_vm2, %v2688_v51 }
 0x12d   : > { %1869 = vmatpush1.bf16.msra.mxu0 %v1860_v57  ;;  %1900 = vmatprep.mubr.bf16.mxu0 %v2701_v1 }
 0x12e   : > { %2388 = vmatprep.subr.msk.bf16.mxu0 %vm218_vm1, %v1973_v58  ;;  %vm2135_vm1 = vcmp.lt.s32.totalorder %v2132_v28, 16 }
 0x131   : > { %2513 = vmatmul.mubr.msk.bf16.vlgmr.msra.gmra.mrb[0].mxu1 %vm214_vm2, %v2689_v59 }
 0x132   : > { %2517 = vmatpush3.bf16.msra.mxu1 %v1984_v60  ;;  %2518 = vmatprep.mubr.msk.bf16.mxu1 %vm2700_vm0, %v2699_v0  ;;  %v3075_v0 = vmul.u32.u64.low 4042322161, %v2086_v4  ;;  %v3076_v6 = vmul.u32.u64.high 4042322161, %v2086_v4, %v3075_v0 }
 0x134   : > { %v2115_v10 = vshrl.u32 %v3076_v6, 4 }
 0x136   : > { %v2116_v19 = vmul.u32 17, %v2115_v10 }
 0x138   : > { %2383 = vmatmul.mubr.msk.bf16.vlgmr.msra.gmra.mrb[0].mxu0 %vm214_vm2, %v2689_v59  ;;  %v2117_v11 = vsub.s32 %v2086_v4, %v2116_v19 }
 0x139   : > { %1987 = vmatpush1.bf16.msra.mxu0 %v1978_v62  ;;  %2018 = vmatprep.mubr.bf16.mxu0 %v2701_v1  ;;  %v3081_v9 = vmul.u32.u64.low 4042322161, %v2085_v5  ;;  %v3082_v1 = vmul.u32.u64.high 4042322161, %v2085_v5, %v3081_v9 }
 0x13a   : > { %vm2122_vm6 = vcmp.ne.s32.totalorder %v2117_v11, 0  ;;  %vm2125_vm7 = vcmp.lt.s32.totalorder %v2117_v11, 0  ;;  %v2131_v12 = vadd.s32 17, %v2117_v11 }
 0x13b   : > { %v2104_v18 = vshrl.u32 %v3082_v1, 4  ;;  %vm2128_vm10 = vmand %vm2125_vm7, %vm2122_vm6 }
 0x13c   : > { %v2134_v25 = vsel %vm2128_vm10, %v2131_v12, %v2117_v11 }
 0x13d   : > { %2519 = vmatmul.mubr.msk.bf16.vlgmr.msra.gmra.mrb[0].mxu1 %vm214_vm2, %v2690_v63  ;;  %v2105_v21 = vmul.u32 17, %v2104_v18  ;;  %vm2137_vm0 = vcmp.lt.s32.totalorder %v2134_v25, 16 }
 0x13f   : > { %v2106_v22 = vsub.s32 %v2085_v5, %v2105_v21 }
 0x141   : > { %vm2121_vm11 = vcmp.ne.s32.totalorder %v2106_v22, 0  ;;  %vm2124_vm12 = vcmp.lt.s32.totalorder %v2106_v22, 0  ;;  %v2130_v24 = vadd.s32 17, %v2106_v22 }
 0x142   : > { %vm2127_vm15 = vmand %vm2124_vm12, %vm2121_vm11 }
 0x143   : > { %v2133_v30 = vsel %vm2127_vm15, %v2130_v24, %v2106_v22 }
 0x144   : > { %2389 = vmatmul.mubr.msk.bf16.vlgmr.msra.gmra.mrb[0].mxu0 %vm214_vm2, %v2690_v63  ;;  %vm3098_vm2 = vcmp.lt.s32.totalorder %v2133_v30, 16 }
 0x210   : > { %v2063_v26 = vpop.f32.mrb[0].mxu1 }
 0x211   : > { %2079 = vst.msk [vmem:[%s3092_s4 + $0x10] sm:$0xff] %vm2078_vm13, %v2063_v26  ;;  %v2520_v27 = vpop.f32.mrb[1].mxu1  ;;  %v2146_v32 = vsel %vm2137_vm0, %v2063_v26, 0.0 }
 0x212   : > { %v2066_v29 = vpop.f32.mrb[2].mxu1  ;;  %v2162_v38 = vmul.f32 %v2146_v32, %v2146_v32  ;;  %v2151_v15 = vsel %vm2078_vm13, %v2146_v32, 0.0 }
 0x213   : > { %2082 = vst.msk [vmem:[%s3092_s4 + $0x28] sm:$0xff] %vm2078_vm13, %v2066_v29  ;;  %v2521_v31 = vpop.f32.mrb[3].mxu1  ;;  %v2149_v35 = vsel %vm2137_vm0, %v2066_v29, 0.0 }
 0x214   : > { %v2165_v16 = vmul.f32 %v2149_v35, %v2149_v35  ;;  %v2156_v51 = vsel %vm2078_vm13, %v2149_v35, 0.0  ;;  %v2167_v52 = vsel %vm2078_vm13, %v2162_v38, 0.0 }
 0x216   : > { %v2172_v56 = vsel %vm2078_vm13, %v2165_v16, 0.0 }
 0x217   : > { %v2020_v34 = vpop.f32.mrb[0].mxu0 }
 0x218   : > { %2076 = vst [vmem:[%s3092_s4] sm:$0xff] %v2020_v34  ;;  %v2144_v36 = vsel %vm2135_vm1, %v2020_v34, 0.0  ;;  %v2022_v37 = vpop.f32.mrb[1].mxu0 }
 0x219   : > { %v2160_v39 = vmul.f32 %v2144_v36, %v2144_v36  ;;  %2077 = vst [vmem:[%s3092_s4 + $0x8] sm:$0xff] %v2022_v37  ;;  %v2024_v40 = vpop.f32.mrb[2].mxu0  ;;  %v2145_v41 = vsel %vm3098_vm2, %v2022_v37, 0.0 }
 0x21a   : > { %2080 = vst [vmem:[%s3092_s4 + $0x18] sm:$0xff] %v2024_v40  ;;  %v2147_v42 = vsel %vm2135_vm1, %v2024_v40, 0.0  ;;  %v2026_v43 = vpop.f32.mrb[3].mxu0  ;;  %v2161_v44 = vmul.f32 %v2145_v41, %v2145_v41  ;;  %v2150_v45 = vadd.f32 %v2145_v41, %v2144_v36 }
 0x21b   : > { %v2163_v17 = vmul.f32 %v2147_v42, %v2147_v42  ;;  %2081 = vst [vmem:[%s3092_s4 + $0x20] sm:$0xff] %v2026_v43  ;;  %v2148_v46 = vsel %vm3098_vm2, %v2026_v43, 0.0 }
 0x21c   : > { %v2155_v47 = vadd.f32 %v2148_v46, %v2147_v42  ;;  %v2164_v48 = vmul.f32 %v2148_v46, %v2148_v46  ;;  %v2152_v49 = vadd.f32 %v2151_v15, %v2150_v45  ;;  %v2166_v50 = vadd.f32 %v2161_v44, %v2160_v39 }
 0x21e   : > { %2153 = vadd.xlane.f32.xlu0 %v2152_v49  ;;  %v2157_v53 = vadd.f32 %v2156_v51, %v2155_v47  ;;  %v2168_v54 = vadd.f32 %v2167_v52, %v2166_v50  ;;  %v2171_v55 = vadd.f32 %v2164_v48, %v2163_v17 }
 0x220   : > { %2158 = vadd.xlane.f32.xlu1 %v2157_v53  ;;  %v2173_v57 = vadd.f32 %v2172_v56, %v2171_v55 }
 0x222   : > { %2169 = vadd.xlane.f32.xlu0 %v2168_v54 }
 0x226   : > { %2174 = vadd.xlane.f32.xlu0 %v2173_v57 }
 0x2ab   : > { %v2154_v58 = vpop.xlane.xlu0 %2153 }
 0x2ad   : > { %v2159_v61 = vpop.xlane.xlu1 %2158 }
 0x2af   : > { %v2170_v59 = vpop.xlane.xlu0 %2169 }
 0x2b0   : > { %v2177_v60 = vsel %vm2176_vm3, %v2154_v58, %v2170_v59 }
 0x2b1   : > { %2180 = vst.msk [vmem:[%s183_s7] sm:$0xff] %vm2179_vm4, %v2177_v60 }
 0x2b3   : > { %v2175_v62 = vpop.xlane.xlu0 %2174 }
 0x2b4   : > { %v2178_v63 = vsel %vm2176_vm3, %v2159_v61, %v2175_v62 }
 0x2b5   : > { %2181 = vst.msk [vmem:[%s183_s7 + $0x8] sm:$0xff] %vm2179_vm4, %v2178_v63 }
 0x2b6 PF: > { %s14_s12 = sadd.s32 1, %s2697_s12  }
 0x2b7   : > { %p11_p4 = scmp.ge.s32.totalorder %s14_s12, 6  }
 0x2b9   :  { %13 = sbr.rel (!%p11_p4) target bundleno = 1 (0x1), region = 88 }

// kernel: discriminator_forward.7
= control target key start
LH: loop header
LB: loop body
LE: loop exit
PB: predicated region body
PF: predicated region fallthrough
CT: control target
= control target key end

     0   :  { %s2022_s12 = smov 0   ;;  %s2203_s0 = inlined_call_operand.vmem [shape: bf16[4,4,16,90], index: 0, kind: input, shape index: {}]   ;;  %s2204_s1 = inlined_call_operand.vmem [shape: bf16[16,32,16], index: 1, kind: input, shape index: {}]   ;;  %s2205_s2 = inlined_call_operand.vmem [shape: f32[4,32,72], index: 2, kind: output, shape index: {0}]   ;;  %s2206_s3 = inlined_call_operand.vmem [shape: f32[4,32,2], index: 3, kind: output, shape index: {1}]  }
   0x1 LB: > { %s1588_s13 = sadd.s32 4294967295, %s1997_s12   ;;  %p1592_p0 = scmp.ge.s32.totalorder %s1997_s12, 1  ;;  %s1997_s12 = sphi %s2022_s12, %s14_s12  }
   0x2   : > { %p140_p1 = scmp.lt.s32.totalorder %s1997_s12, 5 }
   0x4   : > { %p141_p2 = pnand %p1592_p0, %p140_p1 }
   0x5   : > { %p169_p3 = scmp.lt.s32.totalorder (!%p141_p2), %s1588_s13, 3  ;;  %vm214_vm0 = vcmask (!%p141_p2), 130048   ;;  %v1959_v0 = vld [vmem:[%s2204_s1 + $0x40] sm:$0xff] (!%p141_p2)   ;;  %s1999_s22 = smov (!%p141_p2), 127   ;;  %v1960_v4 = vld [vmem:[%s2204_s1 + $0x48] sm:$0xff] (!%p141_p2)   ;;  %v1975_v25 = vld [vmem:[%s2204_s1 + $0x50] sm:$0xff] (!%p141_p2)   ;;  %v1437_v48 = vlaneseq (!%p141_p2) }
   0x6   : > { %144 = sbr.rel (%p141_p2) target bundleno = 596 (0x254), region = 28  ;;  %1836 = vmatprep.mubr.msk.bf16.mxu0 (!%p141_p2), %vm214_vm0, %v1959_v0  ;;  %v1961_v1 = vld [vmem:[%s2204_s1 + $0x20] sm:$0xff] (!%p141_p2)   ;;  %s2000_s23 = smov (!%p141_p2), 119   ;;  %v1962_v10 = vld [vmem:[%s2204_s1 + $0x28] sm:$0xff] (!%p141_p2)   ;;  %v1977_v28 = vld [vmem:[%s2204_s1 + $0x10] sm:$0xff] (!%p141_p2)   ;;  %vm1432_vm4 = vcmask (!%p141_p2), 588800  }
   0x7   : > { %1788 = vmatprep.mubr.msk.bf16.mxu1 (!%p141_p2), %vm214_vm0, %v1961_v1  ;;  %v1963_v5 = vld [vmem:[%s2204_s1 + $0x60] sm:$0xff] (!%p141_p2)   ;;  %s2001_s28 = smov (!%p141_p2), 118   ;;  %v1964_v14 = vld [vmem:[%s2204_s1 + $0x68] sm:$0xff] (!%p141_p2)   ;;  %v1976_v30 = vld [vmem:[%s2204_s1 + $0x58] sm:$0xff] (!%p141_p2)   ;;  %v1438_v49 = vand.u32 (!%p141_p2), 127, %v1437_v48  ;;  %vm1490_vm6 = vcmask (!%p141_p2), 7168  }
   0x8   : > { %v1965_v11 = vld [vmem:[%s2204_s1] sm:$0xff] (!%p141_p2)   ;;  %v1966_v17 = vld [vmem:[%s2204_s1 + $0x8] sm:$0xff] (!%p141_p2)   ;;  %v1979_v31 = vld [vmem:[%s2204_s1 + $0x70] sm:$0xff] (!%p141_p2)   ;;  %vm1495_vm7 = vcmask (!%p141_p2), 15360  }
   0x9   : > { %v1967_v15 = vld [vmem:[%s2204_s1 + $0xc0] sm:$0xff] (!%p141_p2)   ;;  %v1968_v20 = vld [vmem:[%s2204_s1 + $0xc8] sm:$0xff] (!%p141_p2)   ;;  %v1978_v33 = vld [vmem:[%s2204_s1 + $0x18] sm:$0xff] (!%p141_p2)   ;;  %v2164_v50 = vmul.u32.u64.low (!%p141_p2), 3817748708, %v1438_v49  ;;  %v2165_v51 = vmul.u32.u64.high 3817748708, %v1438_v49, %v2164_v50 }
   0xa   : > { %v1969_v18 = vld [vmem:[%s2204_s1 + $0x80] sm:$0xff] (!%p141_p2)   ;;  %v1970_v22 = vld [vmem:[%s2204_s1 + $0x88] sm:$0xff] (!%p141_p2)   ;;  %v1981_v34 = vld [vmem:[%s2204_s1 + $0x30] sm:$0xff] (!%p141_p2)  }
   0xb   : > { %v1971_v21 = vld [vmem:[%s2204_s1 + $0xe0] sm:$0xff] (!%p141_p2)   ;;  %v1972_v24 = vld [vmem:[%s2204_s1 + $0xe8] sm:$0xff] (!%p141_p2)   ;;  %v1980_v36 = vld [vmem:[%s2204_s1 + $0x78] sm:$0xff] (!%p141_p2)   ;;  %v1445_v52 = vshrl.u32 (!%p141_p2), %v2165_v51, 3 }
   0xc   : > { %v1973_v23 = vld [vmem:[%s2204_s1 + $0xa0] sm:$0xff] (!%p141_p2)   ;;  %v1974_v27 = vld [vmem:[%s2204_s1 + $0xa8] sm:$0xff] (!%p141_p2)   ;;  %v1983_v37 = vld [vmem:[%s2204_s1 + $0xd0] sm:$0xff] (!%p141_p2)  }
   0xd   : > { %s2210_s13 = smov (!%p169_p3, %s1588_s13), 3  ;;  %v1982_v39 = vld [vmem:[%s2204_s1 + $0x38] sm:$0xff]   ;;  %v1985_v40 = vld [vmem:[%s2204_s1 + $0x90] sm:$0xff]   ;;  %v1446_v53 = vmul.u32 9, %v1445_v52 }
   0xe   : > { %s2037_s18 = sshll.u32 %s2210_s13, 5  ;;  %v1984_v42 = vld [vmem:[%s2204_s1 + $0xd8] sm:$0xff]   ;;  %v1987_v43 = vld [vmem:[%s2204_s1 + $0xf0] sm:$0xff]  }
   0xf   : > { %s173_s21 = scalar_lea.vmem %s2203_s0, %s2037_s18  ;;  %v1986_v44 = vld [vmem:[%s2204_s1 + $0x98] sm:$0xff]   ;;  %v1989_v45 = vld [vmem:[%s2204_s1 + $0xb0] sm:$0xff]   ;;  %v1447_v54 = vsub.s32 %v1438_v49, %v1446_v53  ;;  %s178_s10 = scalar_lea.vmem %s2205_s2, %s2037_s18 }
  0x10   : > { %v1955_v2 = vld [vmem:[%s173_s21] sm:$0xff]   ;;  %v1956_v3 = vld [vmem:[%s173_s21 + $0x10] sm:$0xff]   ;;  %v1957_v6 = vld [vmem:[%s173_s21 + $0x18] sm:$0xff]   ;;  %s183_s14 = scalar_lea.vmem %s2206_s3, %s2037_s18 }
  0x11   : > { %211 = vrot.lane.b32.xlu0 %v1955_v2, %s1999_s22  ;;  %351 = vrot.lane.b32.xlu1 %v1955_v2, %s2000_s23  ;;  %v1958_v7 = vld [vmem:[%s173_s21 + $0x8] sm:$0xff]   ;;  %v1988_v46 = vld [vmem:[%s2204_s1 + $0xf8] sm:$0xff]   ;;  %vm1450_vm1 = vcmp.ne.s32.totalorder %v1447_v54, 0  ;;  %vm1451_vm2 = vcmp.lt.s32.totalorder %v1447_v54, 0  ;;  %v1453_v57 = vadd.s32 9, %v1447_v54 }
  0x12   : > { %1834 = vmatprep.subr.bf16.mxu0 %v1956_v3  ;;  %v1990_v47 = vld [vmem:[%s2204_s1 + $0xb8] sm:$0xff]   ;;  %vm1452_vm3 = vmand %vm1451_vm2, %vm1450_vm1 }
  0x13   : > { %1835 = vmatpush3.bf16.msra.mxu0 %v1956_v3  ;;  %v1454_v60 = vsel %vm1452_vm3, %v1453_v57, %v1447_v54 }
  0x14   : > { %vm2172_vm5 = vcmp.lt.s32.totalorder %v1454_v60, 8 }
  0x15   : > { %902 = vrot.lane.b32.xlu0 %v1956_v3, %s1999_s22  ;;  %979 = vrot.lane.b32.xlu1 %v1956_v3, %s2000_s23 }
  0x16   : > { %1837 = vmatmul.mubr.msk.bf16.vlgmr.msra.gmra.mrb[0].mxu0 %vm214_vm0, %v1960_v4 }
  0x17   : > { %1842 = vmatprep.mubr.msk.bf16.mxu0 %vm214_vm0, %v1963_v5 }
  0x19   : > { %1056 = vrot.lane.b32.xlu1 %v1956_v3, %s2001_s28  ;;  %428 = vrot.lane.b32.xlu0 %v1955_v2, %s2001_s28 }
  0x1d   : > { %1216 = vrot.lane.b32.xlu1 %v1957_v6, %s1999_s22  ;;  %588 = vrot.lane.b32.xlu0 %v1958_v7, %s1999_s22 }
  0x21   : > { %1293 = vrot.lane.b32.xlu1 %v1957_v6, %s2000_s23  ;;  %665 = vrot.lane.b32.xlu0 %v1958_v7, %s2000_s23 }
  0x25   : > { %1370 = vrot.lane.b32.xlu1 %v1957_v6, %s2001_s28  ;;  %742 = vrot.lane.b32.xlu0 %v1958_v7, %s2001_s28 }
  0x83   : > { %v212_v8 = vpop.permute.xlu0 %211  ;;  %v352_v9 = vpop.permute.xlu1 %351 }
  0x84   : > { %1786 = vmatprep.subr.bf16.mxu1 %v212_v8 }
  0x85   : > { %1787 = vmatpush3.bf16.msra.mxu1 %v212_v8 }
  0x86   : > { %1792 = vmatprep.subr.bf16.mxu1 %v1955_v2 }
  0x87   : > { %v903_v12 = vpop.permute.xlu0 %902  ;;  %v980_v13 = vpop.permute.xlu1 %979 }
  0x88   : > { %1789 = vmatmul.mubr.msk.bf16.vlgmr.msra.gmra.mrb[0].mxu1 %vm214_vm0, %v1962_v10  ;;  %1840 = vmatprep.subr.bf16.mxu0 %v903_v12 }
  0x89   : > { %1793 = vmatpush3.bf16.msra.mxu1 %v1955_v2  ;;  %1841 = vmatpush3.bf16.msra.mxu0 %v903_v12 }
  0x8a   : > { %1798 = vmatprep.subr.bf16.mxu1 %v352_v9  ;;  %1794 = vmatprep.mubr.msk.bf16.mxu1 %vm214_vm0, %v1965_v11 }
  0x8b   : > { %1846 = vmatprep.subr.bf16.mxu0 %v980_v13  ;;  %v1057_v16 = vpop.permute.xlu1 %1056  ;;  %v429_v19 = vpop.permute.xlu0 %428 }
  0x8c   : > { %1843 = vmatmul.mubr.msk.bf16.vlgmr.msra.gmra.mrb[0].mxu0 %vm214_vm0, %v1964_v14 }
  0x8d   : > { %1847 = vmatpush3.bf16.msra.mxu0 %v980_v13  ;;  %1848 = vmatprep.mubr.msk.bf16.mxu0 %vm214_vm0, %v1967_v15 }
  0x8e   : > { %1852 = vmatprep.subr.bf16.mxu0 %v1057_v16 }
  0x8f   : > { %v1217_v26 = vpop.permute.xlu1 %1216  ;;  %v589_v29 = vpop.permute.xlu0 %588 }
  0x93   : > { %v1294_v32 = vpop.permute.xlu1 %1293  ;;  %v666_v35 = vpop.permute.xlu0 %665 }
  0x94   : > { %1795 = vmatmul.mubr.msk.bf16.vlgmr.msra.gmra.mrb[0].mxu1 %vm214_vm0, %v1966_v17 }
  0x95   : > { %1799 = vmatpush3.bf16.msra.mxu1 %v352_v9  ;;  %1800 = vmatprep.mubr.msk.bf16.mxu1 %vm214_vm0, %v1969_v18 }
  0x96   : > { %1804 = vmatprep.subr.bf16.mxu1 %v429_v19 }
  0x97   : > { %v1371_v38 = vpop.permute.xlu1 %1370  ;;  %v743_v41 = vpop.permute.xlu0 %742 }
  0x98   : > { %1849 = vmatmul.mubr.msk.bf16.vlgmr.msra.gmra.mrb[0].mxu0 %vm214_vm0, %v1968_v20 }
  0x99   : > { %1853 = vmatpush3.bf16.msra.mxu0 %v1057_v16  ;;  %1854 = vmatprep.mubr.msk.bf16.mxu0 %vm214_vm0, %v1971_v21 }
  0x9a   : > { %1858 = vmatprep.subr.bf16.mxu0 %v1957_v6 }
  0xa0   : > { %1801 = vmatmul.mubr.msk.bf16.vlgmr.msra.gmra.mrb[0].mxu1 %vm214_vm0, %v1970_v22 }
  0xa1   : > { %1805 = vmatpush3.bf16.msra.mxu1 %v429_v19  ;;  %1806 = vmatprep.mubr.msk.bf16.mxu1 %vm214_vm0, %v1973_v23 }
  0xa2   : > { %1810 = vmatprep.subr.bf16.mxu1 %v1958_v7 }
  0xa4   : > { %1855 = vmatmul.mubr.msk.bf16.vlgmr.msra.gmra.mrb[0].mxu0 %vm214_vm0, %v1972_v24 }
  0xa5   : > { %1859 = vmatpush3.bf16.msra.mxu0 %v1957_v6  ;;  %1860 = vmatprep.mubr.msk.bf16.mxu0 %vm214_vm0, %v1975_v25 }
  0xa6   : > { %1864 = vmatprep.subr.bf16.mxu0 %v1217_v26 }
  0xac   : > { %1807 = vmatmul.mubr.msk.bf16.vlgmr.msra.gmra.mrb[0].mxu1 %vm214_vm0, %v1974_v27 }
  0xad   : > { %1811 = vmatpush3.bf16.msra.mxu1 %v1958_v7  ;;  %1812 = vmatprep.mubr.msk.bf16.mxu1 %vm214_vm0, %v1977_v28 }
  0xae   : > { %1816 = vmatprep.subr.bf16.mxu1 %v589_v29 }
  0xb0   : > { %1861 = vmatmul.mubr.msk.bf16.vlgmr.msra.gmra.mrb[0].mxu0 %vm214_vm0, %v1976_v30 }
  0xb1   : > { %1865 = vmatpush3.bf16.msra.mxu0 %v1217_v26  ;;  %1866 = vmatprep.mubr.msk.bf16.mxu0 %vm214_vm0, %v1979_v31 }
  0xb2   : > { %1870 = vmatprep.subr.bf16.mxu0 %v1294_v32 }
  0xb8   : > { %1813 = vmatmul.mubr.msk.bf16.vlgmr.msra.gmra.mrb[0].mxu1 %vm214_vm0, %v1978_v33 }
  0xb9   : > { %1817 = vmatpush3.bf16.msra.mxu1 %v589_v29  ;;  %1818 = vmatprep.mubr.msk.bf16.mxu1 %vm214_vm0, %v1981_v34 }
  0xba   : > { %1822 = vmatprep.subr.bf16.mxu1 %v666_v35 }
  0xbc   : > { %1867 = vmatmul.mubr.msk.bf16.vlgmr.msra.gmra.mrb[0].mxu0 %vm214_vm0, %v1980_v36 }
  0xbd   : > { %1871 = vmatpush3.bf16.msra.mxu0 %v1294_v32  ;;  %1872 = vmatprep.mubr.msk.bf16.mxu0 %vm214_vm0, %v1983_v37 }
  0xbe   : > { %1876 = vmatprep.subr.bf16.mxu0 %v1371_v38 }
  0xc4   : > { %1819 = vmatmul.mubr.msk.bf16.vlgmr.msra.gmra.mrb[0].mxu1 %vm214_vm0, %v1982_v39 }
  0xc5   : > { %1823 = vmatpush3.bf16.msra.mxu1 %v666_v35  ;;  %1824 = vmatprep.mubr.msk.bf16.mxu1 %vm214_vm0, %v1985_v40 }
  0xc6   : > { %1828 = vmatprep.subr.bf16.mxu1 %v743_v41 }
  0xc8   : > { %1873 = vmatmul.mubr.msk.bf16.vlgmr.msra.gmra.mrb[0].mxu0 %vm214_vm0, %v1984_v42 }
  0xc9   : > { %1877 = vmatpush3.bf16.msra.mxu0 %v1371_v38  ;;  %1878 = vmatprep.mubr.msk.bf16.mxu0 %vm214_vm0, %v1987_v43 }
  0xd0   : > { %1825 = vmatmul.mubr.msk.bf16.vlgmr.msra.gmra.mrb[0].mxu1 %vm214_vm0, %v1986_v44 }
  0xd1   : > { %1829 = vmatpush3.bf16.msra.mxu1 %v743_v41  ;;  %1830 = vmatprep.mubr.msk.bf16.mxu1 %vm214_vm0, %v1989_v45 }
  0xd4   : > { %1879 = vmatmul.mubr.msk.bf16.vlgmr.msra.gmra.mrb[0].mxu0 %vm214_vm0, %v1988_v46 }
  0xdc   : > { %1831 = vmatmul.mubr.msk.bf16.vlgmr.msra.gmra.mrb[0].mxu1 %vm214_vm0, %v1990_v47 }
 0x1a7   : > { %v1880_v55 = vpop.f32.mrb[0].mxu0 }
 0x1a8   : > { %v1413_v56 = vpop.f32.mrb[1].mxu0 }
 0x1a9   : > { %v1881_v58 = vpop.f32.mrb[2].mxu0 }
 0x1aa   : > { %v1416_v59 = vpop.f32.mrb[3].mxu0 }
 0x1af   : > { %v1832_v61 = vpop.f32.mrb[0].mxu1 }
 0x1b0   : > { %v1882_v63 = vadd.f32 %v1880_v55, %v1832_v61  ;;  %v785_v0 = vpop.f32.mrb[1].mxu1 }
 0x1b1   : > { %v1883_v1 = vadd.f32 %v1413_v56, %v785_v0  ;;  %v1833_v2 = vpop.f32.mrb[2].mxu1 }
 0x1b2   : > { %1435 = vst.msk [vmem:[%s178_s10 + $0x10] sm:$0xff] %vm1432_vm4, %v1882_v63  ;;  %v1884_v3 = vadd.f32 %v1881_v58, %v1833_v2  ;;  %v788_v4 = vpop.f32.mrb[3].mxu1  ;;  %v1460_v5 = vsel %vm2172_vm5, %v1882_v63, 0.0 }
 0x1b3   : > { %1433 = vst.msk [vmem:[%s178_s10] sm:$0xff] %vm1432_vm4, %v1883_v1  ;;  %v1885_v6 = vadd.f32 %v1416_v59, %v788_v4  ;;  %v1468_v7 = vsel %vm1432_vm4, %v1460_v5, 0.0  ;;  %v1458_v8 = vsel %vm2172_vm5, %v1883_v1, 0.0  ;;  %v1476_v15 = vmul.f32 %v1460_v5, %v1460_v5 }
 0x1b4   : > { %1436 = vst.msk [vmem:[%s178_s10 + $0x18] sm:$0xff] %vm1432_vm4, %v1884_v3  ;;  %1469 = vadd.xlane.f32.xlu0 %v1468_v7  ;;  %v1474_v11 = vmul.f32 %v1458_v8, %v1458_v8  ;;  %v1462_v12 = vsel %vm1432_vm4, %v1458_v8, 0.0  ;;  %v1461_v13 = vsel %vm2172_vm5, %v1884_v3, 0.0 }
 0x1b5   : > { %1434 = vst.msk [vmem:[%s178_s10 + $0x8] sm:$0xff] %vm1432_vm4, %v1885_v6  ;;  %v1459_v9 = vsel %vm2172_vm5, %v1885_v6, 0.0  ;;  %v1471_v16 = vsel %vm1432_vm4, %v1461_v13, 0.0  ;;  %v1484_v18 = vsel %vm1432_vm4, %v1476_v15, 0.0  ;;  %v1477_v20 = vmul.f32 %v1461_v13, %v1461_v13 }
 0x1b6   : > { %v1465_v10 = vsel %vm1432_vm4, %v1459_v9, 0.0  ;;  %v1478_v14 = vsel %vm1432_vm4, %v1474_v11, 0.0  ;;  %v1475_v17 = vmul.f32 %v1459_v9, %v1459_v9 }
 0x1b7   : > { %1466 = vadd.xlane.f32.xlu1 %v1465_v10  ;;  %v1487_v21 = vsel %vm1432_vm4, %v1477_v20, 0.0 }
 0x1b8   : > { %1463 = vadd.xlane.f32.xlu0 %v1462_v12  ;;  %v1481_v19 = vsel %vm1432_vm4, %v1475_v17, 0.0 }
 0x1bb   : > { %1479 = vadd.xlane.f32.xlu1 %v1478_v14 }
 0x1bc   : > { %1472 = vadd.xlane.f32.xlu0 %v1471_v16 }
 0x1bf   : > { %1485 = vadd.xlane.f32.xlu1 %v1484_v18 }
 0x1c0   : > { %1482 = vadd.xlane.f32.xlu0 %v1481_v19 }
 0x1c4   : > { %1488 = vadd.xlane.f32.xlu0 %v1487_v21 }
 0x241   : > { %v1470_v22 = vpop.xlane.xlu0 %1469 }
 0x244   : > { %v1467_v23 = vpop.xlane.xlu1 %1466 }
 0x245   : > { %v1464_v24 = vpop.xlane.xlu0 %1463 }
 0x248   : > { %v1480_v25 = vpop.xlane.xlu1 %1479 }
 0x249   : > { %v1491_v26 = vsel %vm1490_vm6, %v1464_v24, %v1480_v25  ;;  %v1473_v27 = vpop.xlane.xlu0 %1472 }
 0x24a   : > { %1496 = vst.msk [vmem:[%s183_s14] sm:$0xff] %vm1495_vm7, %v1491_v26 }
 0x24c   : > { %v1486_v28 = vpop.xlane.xlu1 %1485 }
 0x24d   : > { %v1493_v29 = vsel %vm1490_vm6, %v1470_v22, %v1486_v28  ;;  %v1483_v30 = vpop.xlane.xlu0 %1482 }
 0x24e   : > { %1498 = vst.msk [vmem:[%s183_s14 + $0x10] sm:$0xff] %vm1495_vm7, %v1493_v29  ;;  %v1492_v31 = vsel %vm1490_vm6, %v1467_v23, %v1483_v30 }
 0x24f   : > { %1497 = vst.msk [vmem:[%s183_s14 + $0x8] sm:$0xff] %vm1495_vm7, %v1492_v31 }
 0x251   : > { %v1489_v32 = vpop.xlane.xlu0 %1488 }
 0x252   : > { %v1494_v33 = vsel %vm1490_vm6, %v1473_v27, %v1489_v32 }
 0x253   : > { %1499 = vst.msk [vmem:[%s183_s14 + $0x18] sm:$0xff] %vm1495_vm7, %v1494_v33 }
 0x254 PF: > { %s14_s12 = sadd.s32 1, %s1997_s12  }
 0x255   : > { %p11_p4 = scmp.ge.s32.totalorder %s14_s12, 6  }
 0x257   :  { %13 = sbr.rel (!%p11_p4) target bundleno = 1 (0x1), region = 88 }

// kernel: discriminator_forward.8
= control target key start
LH: loop header
LB: loop body
LE: loop exit
PB: predicated region body
PF: predicated region fallthrough
CT: control target
= control target key end

     0   :  { %s3140_s12 = smov 0   ;;  %s3565_s0 = inlined_call_operand.vmem [shape: bf16[4,4,32,30], index: 0, kind: input, shape index: {}]   ;;  %s3566_s1 = inlined_call_operand.vmem [shape: bf16[16,64,32], index: 1, kind: input, shape index: {}]   ;;  %s3567_s2 = inlined_call_operand.vmem [shape: f32[4,64,20], index: 2, kind: output, shape index: {0}]   ;;  %s3568_s3 = inlined_call_operand.vmem [shape: f32[4,64,2], index: 3, kind: output, shape index: {1}]  }
   0x1 LB: > { %s2332_s13 = sadd.s32 4294967295, %s3115_s12   ;;  %p2336_p0 = scmp.ge.s32.totalorder %s3115_s12, 1  ;;  %s3115_s12 = sphi %s3140_s12, %s14_s12  }
   0x2   : > { %p140_p1 = scmp.lt.s32.totalorder %s3115_s12, 5 }
   0x4   : > { %p141_p2 = pnand %p2336_p0, %p140_p1 }
   0x5   : > { %p169_p3 = scmp.lt.s32.totalorder (!%p141_p2), %s2332_s13, 3  ;;  %vm242_vm0 = vcmask (!%p141_p2), 261120   ;;  %v3045_v0 = vld [vmem:[%s3566_s1 + $0x80] sm:$0xff] (!%p141_p2)   ;;  %s3117_s22 = smov (!%p141_p2), 127   ;;  %v3046_v6 = vld [vmem:[%s3566_s1 + $0x88] sm:$0xff] (!%p141_p2)   ;;  %v3047_v7 = vld [vmem:[%s3566_s1 + $0x90] sm:$0xff] (!%p141_p2)  }
   0x6   : > { %144 = sbr.rel (%p141_p2) target bundleno = 645 (0x285), region = 28  ;;  %2812 = vmatprep.mubr.msk.bf16.mxu0 (!%p141_p2), %vm242_vm0, %v3045_v0  ;;  %v3049_v1 = vld [vmem:[%s3566_s1 + $0x40] sm:$0xff] (!%p141_p2)   ;;  %s3118_s27 = smov (!%p141_p2), 123   ;;  %v3048_v8 = vld [vmem:[%s3566_s1 + $0x98] sm:$0xff] (!%p141_p2)   ;;  %v3052_v18 = vld [vmem:[%s3566_s1 + $0xc8] sm:$0xff] (!%p141_p2)   ;;  %vm2132_vm4 = vcmask (!%p141_p2), 162816  }
   0x7   : > { %2716 = vmatprep.mubr.msk.bf16.mxu1 (!%p141_p2), %vm242_vm0, %v3049_v1  ;;  %v3050_v9 = vld [vmem:[%s3566_s1 + $0xc0] sm:$0xff] (!%p141_p2)   ;;  %s3119_s5 = smov (!%p141_p2), 122   ;;  %v3051_v19 = vld [vmem:[%s3566_s1 + $0x48] sm:$0xff] (!%p141_p2)   ;;  %v3054_v20 = vld [vmem:[%s3566_s1 + $0xd0] sm:$0xff] (!%p141_p2)   ;;  %vm2226_vm6 = vcmask (!%p141_p2), 7168   ;;  %vm2235_vm7 = vcmask (!%p141_p2), 15360  }
   0x8   : > { %v3053_v21 = vld [vmem:[%s3566_s1 + $0x50] sm:$0xff] (!%p141_p2)   ;;  %v3056_v24 = vld [vmem:[%s3566_s1 + $0xd8] sm:$0xff] (!%p141_p2)   ;;  %v3058_v27 = vld [vmem:[%s3566_s1 + $0x180] sm:$0xff] (!%p141_p2)  }
   0x9   : > { %v3055_v26 = vld [vmem:[%s3566_s1 + $0x58] sm:$0xff] (!%p141_p2)   ;;  %v3057_v28 = vld [vmem:[%s3566_s1] sm:$0xff] (!%p141_p2)   ;;  %v3060_v30 = vld [vmem:[%s3566_s1 + $0x188] sm:$0xff] (!%p141_p2)  }
   0xa   : > { %v3059_v31 = vld [vmem:[%s3566_s1 + $0x8] sm:$0xff] (!%p141_p2)   ;;  %v3062_v32 = vld [vmem:[%s3566_s1 + $0x190] sm:$0xff] (!%p141_p2)   ;;  %v3064_v36 = vld [vmem:[%s3566_s1 + $0x198] sm:$0xff] (!%p141_p2)  }
   0xb   : > { %v3061_v33 = vld [vmem:[%s3566_s1 + $0x10] sm:$0xff] (!%p141_p2)   ;;  %v3063_v38 = vld [vmem:[%s3566_s1 + $0x18] sm:$0xff] (!%p141_p2)   ;;  %v3066_v39 = vld [vmem:[%s3566_s1 + $0x1c0] sm:$0xff] (!%p141_p2)  }
   0xc   : > { %v3065_v40 = vld [vmem:[%s3566_s1 + $0x100] sm:$0xff] (!%p141_p2)   ;;  %v3068_v41 = vld [vmem:[%s3566_s1 + $0x1c8] sm:$0xff] (!%p141_p2)   ;;  %v3070_v43 = vld [vmem:[%s3566_s1 + $0x1d0] sm:$0xff] (!%p141_p2)  }
   0xd   : > { %s3572_s13 = smov (!%p169_p3, %s2332_s13), 3  ;;  %v3067_v42 = vld [vmem:[%s3566_s1 + $0x108] sm:$0xff]   ;;  %v3069_v44 = vld [vmem:[%s3566_s1 + $0x110] sm:$0xff]   ;;  %v3072_v46 = vld [vmem:[%s3566_s1 + $0x1d8] sm:$0xff]  }
   0xe   : > { %s3152_s16 = sshll.u32 %s3572_s13, 6  ;;  %v3071_v47 = vld [vmem:[%s3566_s1 + $0x118] sm:$0xff]   ;;  %v3074_v48 = vld [vmem:[%s3566_s1 + $0xa0] sm:$0xff]   ;;  %v3076_v51 = vld [vmem:[%s3566_s1 + $0xa8] sm:$0xff]  }
   0xf   : > { %s3158_s19 = scalar_lea.vmem %s3565_s0, %s3152_s16  ;;  %v3073_v50 = vld [vmem:[%s3566_s1 + $0x140] sm:$0xff]   ;;  %v3075_v52 = vld [vmem:[%s3566_s1 + $0x148] sm:$0xff]   ;;  %v3078_v53 = vld [vmem:[%s3566_s1 + $0xb0] sm:$0xff]   ;;  %s3478_s26 = scalar_lea.vmem %s3567_s2, %s3152_s16 }
  0x10   : > { %v3037_v2 = vld [vmem:[%s3158_s19 + $0x20] sm:$0xff]   ;;  %v3039_v4 = vld [vmem:[%s3158_s19 + $0x28] sm:$0xff]   ;;  %v3198_v10 = vld [vmem:[%s3158_s19 + $0x30] sm:$0xff]   ;;  %s3536_s29 = scalar_lea.vmem %s3568_s3, %s3152_s16 }
  0x11   : > { %v3165_v3 = vld [vmem:[%s3158_s19] sm:$0xff]   ;;  %1310 = vrot.lane.b32.xlu1 %v3037_v2, %s3117_s22  ;;  %2808 = vmatprep.subr.bf16.mxu0 %v3037_v2  ;;  %v3173_v5 = vld [vmem:[%s3158_s19 + $0x8] sm:$0xff]   ;;  %v3202_v11 = vld [vmem:[%s3158_s19 + $0x10] sm:$0xff]  }
  0x12   : > { %236 = vrot.lane.b32.xlu0 %v3165_v3, %s3117_s22  ;;  %2809 = vmatpush3.bf16.msra.mxu0 %v3037_v2  ;;  %v3205_v12 = vld [vmem:[%s3158_s19 + $0x38] sm:$0xff]   ;;  %v3077_v54 = vld [vmem:[%s3566_s1 + $0x150] sm:$0xff]   ;;  %v3082_v59 = vld [vmem:[%s3566_s1 + $0xe0] sm:$0xff]  }
  0x13   : > { %2810 = vmatprep.subr.bf16.mxu0 %v3039_v4  ;;  %v3208_v13 = vld [vmem:[%s3158_s19 + $0x18] sm:$0xff]   ;;  %v3081_v61 = vld [vmem:[%s3566_s1 + $0x20] sm:$0xff]   ;;  %v3084_v62 = vld [vmem:[%s3566_s1 + $0xe8] sm:$0xff]  }
  0x14   : > { %v3080_v56 = vld [vmem:[%s3566_s1 + $0xb8] sm:$0xff]   ;;  %v3083_v63 = vld [vmem:[%s3566_s1 + $0x28] sm:$0xff]   ;;  %v3086_v0 = vld [vmem:[%s3566_s1 + $0xf0] sm:$0xff]  }
  0x15   : > { %1312 = vrot.lane.b32.xlu1 %v3039_v4, %s3117_s22  ;;  %v3079_v58 = vld [vmem:[%s3566_s1 + $0x158] sm:$0xff]   ;;  %v3085_v1 = vld [vmem:[%s3566_s1 + $0x30] sm:$0xff]  }
  0x16   : > { %238 = vrot.lane.b32.xlu0 %v3173_v5, %s3117_s22  ;;  %2811 = vmatpush3.bf16.msra.mxu0 %v3039_v4 }
  0x19   : > { %1430 = vrot.lane.b32.xlu1 %v3037_v2, %s3118_s27  ;;  %2813 = vmatmul.mubr.msk.bf16.vlgmr.msra.gmra.mrb[0].mxu0 %vm242_vm0, %v3046_v6  ;;  %v3087_v6 = vld [vmem:[%s3566_s1 + $0x38] sm:$0xff]  }
  0x1a   : > { %448 = vrot.lane.b32.xlu0 %v3165_v3, %s3118_s27  ;;  %2816 = vmatprep.mubr.msk.bf16.mxu0 %vm242_vm0, %v3047_v7  ;;  %v3090_v7 = vld [vmem:[%s3566_s1 + $0x1a0] sm:$0xff]  }
  0x1d   : > { %1432 = vrot.lane.b32.xlu1 %v3039_v4, %s3118_s27 }
  0x1e   : > { %450 = vrot.lane.b32.xlu0 %v3173_v5, %s3118_s27 }
  0x21   : > { %1550 = vrot.lane.b32.xlu1 %v3037_v2, %s3119_s5  ;;  %2817 = vmatmul.mubr.msk.bf16.gmra.mrb[4].mxu0 %vm242_vm0, %v3048_v8 }
  0x22   : > { %568 = vrot.lane.b32.xlu0 %v3165_v3, %s3119_s5  ;;  %2824 = vmatprep.mubr.msk.bf16.mxu0 %vm242_vm0, %v3050_v9  ;;  %v3089_v9 = vld [vmem:[%s3566_s1 + $0x60] sm:$0xff]  }
  0x25   : > { %1552 = vrot.lane.b32.xlu1 %v3039_v4, %s3119_s5  ;;  %v3088_v4 = vld [vmem:[%s3566_s1 + $0xf8] sm:$0xff]  }
  0x26   : > { %570 = vrot.lane.b32.xlu0 %v3173_v5, %s3119_s5 }
  0x29   : > { %1801 = vrot.lane.b32.xlu1 %v3198_v10, %s3117_s22 }
  0x2a   : > { %819 = vrot.lane.b32.xlu0 %v3202_v11, %s3117_s22 }
  0x2d   : > { %1803 = vrot.lane.b32.xlu1 %v3205_v12, %s3117_s22 }
  0x2e   : > { %821 = vrot.lane.b32.xlu0 %v3208_v13, %s3117_s22 }
  0x31   : > { %1921 = vrot.lane.b32.xlu1 %v3198_v10, %s3118_s27 }
  0x32   : > { %939 = vrot.lane.b32.xlu0 %v3202_v11, %s3118_s27 }
  0x35   : > { %1923 = vrot.lane.b32.xlu1 %v3205_v12, %s3118_s27 }
  0x36   : > { %941 = vrot.lane.b32.xlu0 %v3208_v13, %s3118_s27 }
  0x39   : > { %2041 = vrot.lane.b32.xlu1 %v3198_v10, %s3119_s5 }
  0x3a   : > { %1059 = vrot.lane.b32.xlu0 %v3202_v11, %s3119_s5 }
  0x3d   : > { %2043 = vrot.lane.b32.xlu1 %v3205_v12, %s3119_s5 }
  0x3e   : > { %1061 = vrot.lane.b32.xlu0 %v3208_v13, %s3119_s5 }
  0x83   : > { %v1311_v14 = vpop.permute.xlu1 %1310 }
  0x84   : > { %v237_v15 = vpop.permute.xlu0 %236  ;;  %2820 = vmatprep.subr.bf16.mxu0 %v1311_v14 }
  0x85   : > { %2712 = vmatprep.subr.bf16.mxu1 %v237_v15  ;;  %2821 = vmatpush3.bf16.msra.mxu0 %v1311_v14 }
  0x86   : > { %2713 = vmatpush3.bf16.msra.mxu1 %v237_v15 }
  0x87   : > { %v1313_v16 = vpop.permute.xlu1 %1312 }
  0x88   : > { %v239_v17 = vpop.permute.xlu0 %238  ;;  %2822 = vmatprep.subr.bf16.mxu0 %v1313_v16 }
  0x89   : > { %2714 = vmatprep.subr.bf16.mxu1 %v239_v17  ;;  %2823 = vmatpush3.bf16.msra.mxu0 %v1313_v16  ;;  %v3096_v16 = vld [vmem:[%s3566_s1 + $0x1b8] sm:$0xff]  }
  0x8a   : > { %2715 = vmatpush3.bf16.msra.mxu1 %v239_v17 }
  0x8b   : > { %2724 = vmatprep.subr.bf16.mxu1 %v3165_v3  ;;  %v1431_v22 = vpop.permute.xlu1 %1430 }
  0x8c   : > { %2825 = vmatmul.mubr.msk.bf16.vlgmr.msra.gmra.mrb[0].mxu0 %vm242_vm0, %v3052_v18  ;;  %2832 = vmatprep.subr.bf16.mxu0 %v1431_v22  ;;  %v449_v25 = vpop.permute.xlu0 %448  ;;  %v3095_v18 = vld [vmem:[%s3566_s1 + $0x78] sm:$0xff]  }
  0x8d   : > { %2717 = vmatmul.mubr.msk.bf16.vlgmr.msra.gmra.mrb[0].mxu1 %vm242_vm0, %v3051_v19  ;;  %2828 = vmatprep.mubr.msk.bf16.mxu0 %vm242_vm0, %v3054_v20  ;;  %v3098_v19 = vld [vmem:[%s3566_s1 + $0x1e0] sm:$0xff]  }
  0x8e   : > { %2725 = vmatpush3.bf16.msra.mxu1 %v3165_v3  ;;  %2720 = vmatprep.mubr.msk.bf16.mxu1 %vm242_vm0, %v3053_v21  ;;  %v3097_v20 = vld [vmem:[%s3566_s1 + $0x120] sm:$0xff]   ;;  %v3100_v21 = vld [vmem:[%s3566_s1 + $0x1e8] sm:$0xff]  }
  0x8f   : > { %2726 = vmatprep.subr.bf16.mxu1 %v3173_v5  ;;  %2833 = vmatpush3.bf16.msra.mxu0 %v1431_v22  ;;  %v1433_v23 = vpop.permute.xlu1 %1432  ;;  %v3099_v22 = vld [vmem:[%s3566_s1 + $0x128] sm:$0xff]  }
  0x90   : > { %2834 = vmatprep.subr.bf16.mxu0 %v1433_v23  ;;  %v451_v34 = vpop.permute.xlu0 %450 }
  0x92   : > { %2727 = vmatpush3.bf16.msra.mxu1 %v3173_v5 }
  0x93   : > { %2835 = vmatpush3.bf16.msra.mxu0 %v1433_v23  ;;  %2736 = vmatprep.subr.bf16.mxu1 %v449_v25  ;;  %v1551_v29 = vpop.permute.xlu1 %1550  ;;  %v3102_v23 = vld [vmem:[%s3566_s1 + $0x1f0] sm:$0xff]  }
  0x94   : > { %2829 = vmatmul.mubr.msk.bf16.gmra.mrb[4].mxu0 %vm242_vm0, %v3056_v24  ;;  %2844 = vmatprep.subr.bf16.mxu0 %v1551_v29  ;;  %v569_v37 = vpop.permute.xlu0 %568  ;;  %v3101_v24 = vld [vmem:[%s3566_s1 + $0x130] sm:$0xff]  }
  0x95   : > { %2721 = vmatmul.mubr.msk.bf16.gmra.mrb[4].mxu1 %vm242_vm0, %v3055_v26  ;;  %2836 = vmatprep.mubr.msk.bf16.mxu0 %vm242_vm0, %v3058_v27  ;;  %v3104_v26 = vld [vmem:[%s3566_s1 + $0x1f8] sm:$0xff]  }
  0x96   : > { %2728 = vmatprep.mubr.msk.bf16.mxu1 %vm242_vm0, %v3057_v28  ;;  %v3103_v27 = vld [vmem:[%s3566_s1 + $0x138] sm:$0xff]   ;;  %v3105_v28 = vld [vmem:[%s3566_s1 + $0x160] sm:$0xff]  }
  0x97   : > { %v1553_v35 = vpop.permute.xlu1 %1552 }
  0x98   : > { %v571_v45 = vpop.permute.xlu0 %570 }
  0x9b   : > { %v1802_v49 = vpop.permute.xlu1 %1801 }
  0x9c   : > { %2837 = vmatmul.mubr.msk.bf16.vlgmr.msra.gmra.mrb[0].mxu0 %vm242_vm0, %v3060_v30  ;;  %v820_v57 = vpop.permute.xlu0 %819  ;;  %v3107_v30 = vld [vmem:[%s3566_s1 + $0x170] sm:$0xff]  }
  0x9d   : > { %2729 = vmatmul.mubr.msk.bf16.vlgmr.msra.gmra.mrb[0].mxu1 %vm242_vm0, %v3059_v31  ;;  %2840 = vmatprep.mubr.msk.bf16.mxu0 %vm242_vm0, %v3062_v32  ;;  %v3108_v31 = vld [vmem:[%s3566_s1 + $0x178] sm:$0xff]   ;;  %v2141_v32 = vlaneseq }
  0x9e   : > { %2737 = vmatpush3.bf16.msra.mxu1 %v449_v25  ;;  %2732 = vmatprep.mubr.msk.bf16.mxu1 %vm242_vm0, %v3061_v33 }
  0x9f   : > { %2738 = vmatprep.subr.bf16.mxu1 %v451_v34  ;;  %2845 = vmatpush3.bf16.msra.mxu0 %v1551_v29  ;;  %v1804_v55 = vpop.permute.xlu1 %1803  ;;  %v3106_v29 = vld [vmem:[%s3566_s1 + $0x168] sm:$0xff]   ;;  %v2142_v33 = vand.u32 127, %v2141_v32 }
  0xa0   : > { %2846 = vmatprep.subr.bf16.mxu0 %v1553_v35  ;;  %v822_v2 = vpop.permute.xlu0 %821 }
  0xa2   : > { %2739 = vmatpush3.bf16.msra.mxu1 %v451_v34 }
  0xa3   : > { %2847 = vmatpush3.bf16.msra.mxu0 %v1553_v35  ;;  %2748 = vmatprep.subr.bf16.mxu1 %v569_v37  ;;  %v1922_v60 = vpop.permute.xlu1 %1921  ;;  %v3470_v34 = vmul.u32.u64.low 3435973837, %v2142_v33  ;;  %v3471_v35 = vmul.u32.u64.high 3435973837, %v2142_v33, %v3470_v34 }
  0xa4   : > { %2841 = vmatmul.mubr.msk.bf16.gmra.mrb[4].mxu0 %vm242_vm0, %v3064_v36  ;;  %2856 = vmatprep.subr.bf16.mxu0 %v3198_v10  ;;  %v940_v5 = vpop.permute.xlu0 %939 }
  0xa5   : > { %2733 = vmatmul.mubr.msk.bf16.gmra.mrb[4].mxu1 %vm242_vm0, %v3063_v38  ;;  %2848 = vmatprep.mubr.msk.bf16.mxu0 %vm242_vm0, %v3066_v39  ;;  %v2149_v36 = vshrl.u32 %v3471_v35, 2 }
  0xa6   : > { %2740 = vmatprep.mubr.msk.bf16.mxu1 %vm242_vm0, %v3065_v40 }
  0xa7   : > { %v1924_v3 = vpop.permute.xlu1 %1923  ;;  %v2150_v38 = vmul.u32 5, %v2149_v36 }
  0xa8   : > { %v942_v14 = vpop.permute.xlu0 %941 }
  0xab   : > { %v2042_v8 = vpop.permute.xlu1 %2041 }
  0xac   : > { %2849 = vmatmul.mubr.msk.bf16.vlgmr.msra.gmra.mrb[0].mxu0 %vm242_vm0, %v3068_v41  ;;  %v1060_v17 = vpop.permute.xlu0 %1059 }
  0xad   : > { %2741 = vmatmul.mubr.msk.bf16.vlgmr.msra.gmra.mrb[0].mxu1 %vm242_vm0, %v3067_v42  ;;  %2852 = vmatprep.mubr.msk.bf16.mxu0 %vm242_vm0, %v3070_v43  ;;  %v2151_v42 = vsub.s32 %v2142_v33, %v2150_v38 }
  0xae   : > { %2749 = vmatpush3.bf16.msra.mxu1 %v569_v37  ;;  %2744 = vmatprep.mubr.msk.bf16.mxu1 %vm242_vm0, %v3069_v44 }
  0xaf   : > { %2750 = vmatprep.subr.bf16.mxu1 %v571_v45  ;;  %2857 = vmatpush3.bf16.msra.mxu0 %v3198_v10  ;;  %v3092_v10 = vld [vmem:[%s3566_s1 + $0x1a8] sm:$0xff]   ;;  %v2044_v15 = vpop.permute.xlu1 %2043  ;;  %vm2154_vm1 = vcmp.ne.s32.totalorder %v2151_v42, 0  ;;  %vm2155_vm2 = vcmp.lt.s32.totalorder %v2151_v42, 0 }
  0xb0   : > { %2858 = vmatprep.subr.bf16.mxu0 %v3205_v12  ;;  %v1062_v25 = vpop.permute.xlu0 %1061  ;;  %vm2156_vm3 = vmand %vm2155_vm2, %vm2154_vm1 }
  0xb2   : > { %2751 = vmatpush3.bf16.msra.mxu1 %v571_v45 }
  0xb3   : > { %2859 = vmatpush3.bf16.msra.mxu0 %v3205_v12  ;;  %2760 = vmatprep.subr.bf16.mxu1 %v3202_v11  ;;  %v3094_v12 = vld [vmem:[%s3566_s1 + $0x1b0] sm:$0xff]  }
  0xb4   : > { %2853 = vmatmul.mubr.msk.bf16.gmra.mrb[4].mxu0 %vm242_vm0, %v3072_v46  ;;  %2868 = vmatprep.subr.bf16.mxu0 %v1802_v49  ;;  %v2157_v46 = vadd.s32 5, %v2151_v42 }
  0xb5   : > { %2745 = vmatmul.mubr.msk.bf16.gmra.mrb[4].mxu1 %vm242_vm0, %v3071_v47  ;;  %2860 = vmatprep.mubr.msk.bf16.mxu0 %vm242_vm0, %v3074_v48 }
  0xb6   : > { %2752 = vmatprep.mubr.msk.bf16.mxu1 %vm242_vm0, %v3073_v50  ;;  %v2158_v48 = vsel %vm2156_vm3, %v2157_v46, %v2151_v42 }
  0xb7   : > { %vm3480_vm5 = vcmp.lt.s32.totalorder %v2158_v48, 4 }
  0xbc   : > { %2861 = vmatmul.mubr.msk.bf16.vlgmr.msra.gmra.mrb[0].mxu0 %vm242_vm0, %v3076_v51 }
  0xbd   : > { %2753 = vmatmul.mubr.msk.bf16.vlgmr.msra.gmra.mrb[0].mxu1 %vm242_vm0, %v3075_v52  ;;  %2864 = vmatprep.mubr.msk.bf16.mxu0 %vm242_vm0, %v3078_v53 }
  0xbe   : > { %2761 = vmatpush3.bf16.msra.mxu1 %v3202_v11  ;;  %2756 = vmatprep.mubr.msk.bf16.mxu1 %vm242_vm0, %v3077_v54  ;;  %v3091_v11 = vld [vmem:[%s3566_s1 + $0x68] sm:$0xff]  }
  0xbf   : > { %2762 = vmatprep.subr.bf16.mxu1 %v3208_v13  ;;  %2869 = vmatpush3.bf16.msra.mxu0 %v1802_v49 }
  0xc0   : > { %2870 = vmatprep.subr.bf16.mxu0 %v1804_v55 }
  0xc2   : > { %2763 = vmatpush3.bf16.msra.mxu1 %v3208_v13  ;;  %v3093_v13 = vld [vmem:[%s3566_s1 + $0x70] sm:$0xff]  }
  0xc3   : > { %2871 = vmatpush3.bf16.msra.mxu0 %v1804_v55  ;;  %2772 = vmatprep.subr.bf16.mxu1 %v820_v57 }
  0xc4   : > { %2865 = vmatmul.mubr.msk.bf16.gmra.mrb[4].mxu0 %vm242_vm0, %v3080_v56  ;;  %2880 = vmatprep.subr.bf16.mxu0 %v1922_v60 }
  0xc5   : > { %2757 = vmatmul.mubr.msk.bf16.gmra.mrb[4].mxu1 %vm242_vm0, %v3079_v58  ;;  %2872 = vmatprep.mubr.msk.bf16.mxu0 %vm242_vm0, %v3082_v59 }
  0xc6   : > { %2764 = vmatprep.mubr.msk.bf16.mxu1 %vm242_vm0, %v3081_v61 }
  0xcc   : > { %2873 = vmatmul.mubr.msk.bf16.vlgmr.msra.gmra.mrb[0].mxu0 %vm242_vm0, %v3084_v62 }
  0xcd   : > { %2765 = vmatmul.mubr.msk.bf16.vlgmr.msra.gmra.mrb[0].mxu1 %vm242_vm0, %v3083_v63  ;;  %2876 = vmatprep.mubr.msk.bf16.mxu0 %vm242_vm0, %v3086_v0 }
  0xce   : > { %2773 = vmatpush3.bf16.msra.mxu1 %v820_v57  ;;  %2768 = vmatprep.mubr.msk.bf16.mxu1 %vm242_vm0, %v3085_v1 }
  0xcf   : > { %2774 = vmatprep.subr.bf16.mxu1 %v822_v2  ;;  %2881 = vmatpush3.bf16.msra.mxu0 %v1922_v60 }
  0xd0   : > { %2882 = vmatprep.subr.bf16.mxu0 %v1924_v3 }
  0xd2   : > { %2775 = vmatpush3.bf16.msra.mxu1 %v822_v2 }
  0xd3   : > { %2883 = vmatpush3.bf16.msra.mxu0 %v1924_v3  ;;  %2784 = vmatprep.subr.bf16.mxu1 %v940_v5 }
  0xd4   : > { %2877 = vmatmul.mubr.msk.bf16.gmra.mrb[4].mxu0 %vm242_vm0, %v3088_v4  ;;  %2892 = vmatprep.subr.bf16.mxu0 %v2042_v8 }
  0xd5   : > { %2769 = vmatmul.mubr.msk.bf16.gmra.mrb[4].mxu1 %vm242_vm0, %v3087_v6  ;;  %2884 = vmatprep.mubr.msk.bf16.mxu0 %vm242_vm0, %v3090_v7 }
  0xd6   : > { %2776 = vmatprep.mubr.msk.bf16.mxu1 %vm242_vm0, %v3089_v9 }
  0xdc   : > { %2885 = vmatmul.mubr.msk.bf16.vlgmr.msra.gmra.mrb[0].mxu0 %vm242_vm0, %v3092_v10 }
  0xdd   : > { %2777 = vmatmul.mubr.msk.bf16.vlgmr.msra.gmra.mrb[0].mxu1 %vm242_vm0, %v3091_v11  ;;  %2888 = vmatprep.mubr.msk.bf16.mxu0 %vm242_vm0, %v3094_v12 }
  0xde   : > { %2785 = vmatpush3.bf16.msra.mxu1 %v940_v5  ;;  %2780 = vmatprep.mubr.msk.bf16.mxu1 %vm242_vm0, %v3093_v13 }
  0xdf   : > { %2786 = vmatprep.subr.bf16.mxu1 %v942_v14  ;;  %2893 = vmatpush3.bf16.msra.mxu0 %v2042_v8 }
  0xe0   : > { %2894 = vmatprep.subr.bf16.mxu0 %v2044_v15 }
  0xe2   : > { %2787 = vmatpush3.bf16.msra.mxu1 %v942_v14 }
  0xe3   : > { %2895 = vmatpush3.bf16.msra.mxu0 %v2044_v15  ;;  %2796 = vmatprep.subr.bf16.mxu1 %v1060_v17 }
  0xe4   : > { %2889 = vmatmul.mubr.msk.bf16.gmra.mrb[4].mxu0 %vm242_vm0, %v3096_v16 }
  0xe5   : > { %2781 = vmatmul.mubr.msk.bf16.gmra.mrb[4].mxu1 %vm242_vm0, %v3095_v18  ;;  %2896 = vmatprep.mubr.msk.bf16.mxu0 %vm242_vm0, %v3098_v19 }
  0xe6   : > { %2788 = vmatprep.mubr.msk.bf16.mxu1 %vm242_vm0, %v3097_v20 }
  0xec   : > { %2897 = vmatmul.mubr.msk.bf16.vlgmr.msra.gmra.mrb[0].mxu0 %vm242_vm0, %v3100_v21 }
  0xed   : > { %2789 = vmatmul.mubr.msk.bf16.vlgmr.msra.gmra.mrb[0].mxu1 %vm242_vm0, %v3099_v22  ;;  %2900 = vmatprep.mubr.msk.bf16.mxu0 %vm242_vm0, %v3102_v23 }
  0xee   : > { %2797 = vmatpush3.bf16.msra.mxu1 %v1060_v17  ;;  %2792 = vmatprep.mubr.msk.bf16.mxu1 %vm242_vm0, %v3101_v24 }
  0xef   : > { %2798 = vmatprep.subr.bf16.mxu1 %v1062_v25 }
  0xf2   : > { %2799 = vmatpush3.bf16.msra.mxu1 %v1062_v25 }
  0xf4   : > { %2901 = vmatmul.mubr.msk.bf16.gmra.mrb[4].mxu0 %vm242_vm0, %v3104_v26 }
  0xf5   : > { %2793 = vmatmul.mubr.msk.bf16.gmra.mrb[4].mxu1 %vm242_vm0, %v3103_v27 }
  0xf6   : > { %2800 = vmatprep.mubr.msk.bf16.mxu1 %vm242_vm0, %v3105_v28 }
  0xfd   : > { %2801 = vmatmul.mubr.msk.bf16.vlgmr.msra.gmra.mrb[0].mxu1 %vm242_vm0, %v3106_v29 }
  0xfe   : > { %2804 = vmatprep.mubr.msk.bf16.mxu1 %vm242_vm0, %v3107_v30 }
 0x105   : > { %2805 = vmatmul.mubr.msk.bf16.gmra.mrb[4].mxu1 %vm242_vm0, %v3108_v31 }
 0x1bf   : > { %v2898_v37 = vpop.f32.mrb[0].mxu0 }
 0x1c0   : > { %v2093_v39 = vpop.f32.mrb[1].mxu0 }
 0x1c1   : > { %v2899_v40 = vpop.f32.mrb[2].mxu0 }
 0x1c2   : > { %v2096_v41 = vpop.f32.mrb[3].mxu0 }
 0x1c7   : > { %v2902_v43 = vpop.f32.mrb[4].mxu0 }
 0x1c8   : > { %v2109_v44 = vpop.f32.mrb[5].mxu0 }
 0x1c9   : > { %v2903_v45 = vpop.f32.mrb[6].mxu0 }
 0x1ca   : > { %v2112_v47 = vpop.f32.mrb[7].mxu0 }
 0x1d0   : > { %v2802_v49 = vpop.f32.mrb[0].mxu1 }
 0x1d1   : > { %v2904_v51 = vadd.f32 %v2898_v37, %v2802_v49  ;;  %v1111_v52 = vpop.f32.mrb[1].mxu1 }
 0x1d2   : > { %v2905_v53 = vadd.f32 %v2093_v39, %v1111_v52  ;;  %v2803_v54 = vpop.f32.mrb[2].mxu1 }
 0x1d3   : > { %2135 = vst.msk [vmem:[%s3478_s26 + $0x10] sm:$0xff] %vm2132_vm4, %v2904_v51  ;;  %v2906_v55 = vadd.f32 %v2899_v40, %v2803_v54  ;;  %v1114_v56 = vpop.f32.mrb[3].mxu1  ;;  %v2164_v57 = vsel %vm3480_vm5, %v2904_v51, 0.0 }
 0x1d4   : > { %2133 = vst.msk [vmem:[%s3478_s26] sm:$0xff] %vm2132_vm4, %v2905_v53  ;;  %v2907_v58 = vadd.f32 %v2096_v41, %v1114_v56  ;;  %v2176_v59 = vsel %vm2132_vm4, %v2164_v57, 0.0  ;;  %v2196_v60 = vmul.f32 %v2164_v57, %v2164_v57  ;;  %v2162_v61 = vsel %vm3480_vm5, %v2905_v53, 0.0 }
 0x1d5   : > { %2136 = vst.msk [vmem:[%s3478_s26 + $0x18] sm:$0xff] %vm2132_vm4, %v2906_v55  ;;  %2177 = vadd.xlane.f32.xlu0 %v2176_v59  ;;  %v2170_v1 = vsel %vm2132_vm4, %v2162_v61, 0.0  ;;  %v2165_v4 = vsel %vm3480_vm5, %v2906_v55, 0.0  ;;  %v2194_v8 = vmul.f32 %v2162_v61, %v2162_v61 }
 0x1d6   : > { %2134 = vst.msk [vmem:[%s3478_s26 + $0x8] sm:$0xff] %vm2132_vm4, %v2907_v58  ;;  %v2208_v62 = vsel %vm2132_vm4, %v2196_v60, 0.0  ;;  %v2163_v63 = vsel %vm3480_vm5, %v2907_v58, 0.0  ;;  %v2179_v12 = vsel %vm2132_vm4, %v2165_v4, 0.0  ;;  %v2197_v13 = vmul.f32 %v2165_v4, %v2165_v4 }
 0x1d7   : > { %2209 = vadd.xlane.f32.xlu1 %v2208_v62  ;;  %v2173_v7 = vsel %vm2132_vm4, %v2163_v63, 0.0  ;;  %v2202_v14 = vsel %vm2132_vm4, %v2194_v8, 0.0  ;;  %v2195_v17 = vmul.f32 %v2163_v63, %v2163_v63 }
 0x1d8   : > { %v2806_v0 = vpop.f32.mrb[4].mxu1  ;;  %v2211_v16 = vsel %vm2132_vm4, %v2197_v13, 0.0 }
 0x1d9   : > { %v2908_v2 = vadd.f32 %v2902_v43, %v2806_v0  ;;  %2171 = vadd.xlane.f32.xlu0 %v2170_v1  ;;  %v1127_v3 = vpop.f32.mrb[5].mxu1  ;;  %v2205_v20 = vsel %vm2132_vm4, %v2195_v17, 0.0 }
 0x1da   : > { %v2909_v5 = vadd.f32 %v2109_v44, %v1127_v3  ;;  %v2807_v6 = vpop.f32.mrb[6].mxu1 }
 0x1db   : > { %2139 = vst.msk [vmem:[%s3478_s26 + $0x30] sm:$0xff] %vm2132_vm4, %v2908_v2  ;;  %v2910_v9 = vadd.f32 %v2903_v45, %v2807_v6  ;;  %2174 = vadd.xlane.f32.xlu1 %v2173_v7  ;;  %v1130_v10 = vpop.f32.mrb[7].mxu1  ;;  %v2168_v15 = vsel %vm3480_vm5, %v2908_v2, 0.0 }
 0x1dc   : > { %2137 = vst.msk [vmem:[%s3478_s26 + $0x20] sm:$0xff] %vm2132_vm4, %v2909_v5  ;;  %v2911_v11 = vadd.f32 %v2112_v47, %v1130_v10  ;;  %v2188_v18 = vsel %vm2132_vm4, %v2168_v15, 0.0  ;;  %v2166_v19 = vsel %vm3480_vm5, %v2909_v5, 0.0  ;;  %v2200_v27 = vmul.f32 %v2168_v15, %v2168_v15 }
 0x1dd   : > { %2140 = vst.msk [vmem:[%s3478_s26 + $0x38] sm:$0xff] %vm2132_vm4, %v2910_v9  ;;  %2180 = vadd.xlane.f32.xlu0 %v2179_v12  ;;  %v2169_v21 = vsel %vm3480_vm5, %v2910_v9, 0.0  ;;  %v2182_v22 = vsel %vm2132_vm4, %v2166_v19, 0.0  ;;  %v2198_v23 = vmul.f32 %v2166_v19, %v2166_v19 }
 0x1de   : > { %2138 = vst.msk [vmem:[%s3478_s26 + $0x28] sm:$0xff] %vm2132_vm4, %v2911_v11  ;;  %v2191_v24 = vsel %vm2132_vm4, %v2169_v21, 0.0  ;;  %v2167_v25 = vsel %vm3480_vm5, %v2911_v11, 0.0  ;;  %v2220_v30 = vsel %vm2132_vm4, %v2200_v27, 0.0  ;;  %v2201_v32 = vmul.f32 %v2169_v21, %v2169_v21 }
 0x1df   : > { %2203 = vadd.xlane.f32.xlu1 %v2202_v14  ;;  %v2214_v26 = vsel %vm2132_vm4, %v2198_v23, 0.0  ;;  %v2185_v28 = vsel %vm2132_vm4, %v2167_v25, 0.0  ;;  %v2199_v29 = vmul.f32 %v2167_v25, %v2167_v25 }
 0x1e0   : > { %v2223_v33 = vsel %vm2132_vm4, %v2201_v32, 0.0 }
 0x1e1   : > { %2212 = vadd.xlane.f32.xlu0 %v2211_v16  ;;  %v2217_v31 = vsel %vm2132_vm4, %v2199_v29, 0.0 }
 0x1e3   : > { %2189 = vadd.xlane.f32.xlu1 %v2188_v18 }
 0x1e5   : > { %2206 = vadd.xlane.f32.xlu0 %v2205_v20 }
 0x1e7   : > { %2183 = vadd.xlane.f32.xlu1 %v2182_v22 }
 0x1e9   : > { %2192 = vadd.xlane.f32.xlu0 %v2191_v24 }
 0x1eb   : > { %2215 = vadd.xlane.f32.xlu1 %v2214_v26 }
 0x1ed   : > { %2186 = vadd.xlane.f32.xlu0 %v2185_v28 }
 0x1ef   : > { %2221 = vadd.xlane.f32.xlu1 %v2220_v30 }
 0x1f1   : > { %2218 = vadd.xlane.f32.xlu0 %v2217_v31 }
 0x1f5   : > { %2224 = vadd.xlane.f32.xlu0 %v2223_v33 }
 0x262   : > { %v2178_v34 = vpop.xlane.xlu0 %2177 }
 0x264   : > { %v2210_v35 = vpop.xlane.xlu1 %2209 }
 0x265   : > { %v2229_v36 = vsel %vm2226_vm6, %v2178_v34, %v2210_v35 }
 0x266   : > { %2238 = vst.msk [vmem:[%s3536_s29 + $0x10] sm:$0xff] %vm2235_vm7, %v2229_v36  ;;  %v2172_v37 = vpop.xlane.xlu0 %2171 }
 0x268   : > { %v2175_v38 = vpop.xlane.xlu1 %2174 }
 0x26a   : > { %v2181_v39 = vpop.xlane.xlu0 %2180 }
 0x26c   : > { %v2204_v40 = vpop.xlane.xlu1 %2203 }
 0x26d   : > { %v2227_v41 = vsel %vm2226_vm6, %v2172_v37, %v2204_v40 }
 0x26e   : > { %2236 = vst.msk [vmem:[%s3536_s29] sm:$0xff] %vm2235_vm7, %v2227_v41  ;;  %v2213_v42 = vpop.xlane.xlu0 %2212 }
 0x26f   : > { %v2230_v43 = vsel %vm2226_vm6, %v2181_v39, %v2213_v42 }
 0x270   : > { %2239 = vst.msk [vmem:[%s3536_s29 + $0x18] sm:$0xff] %vm2235_vm7, %v2230_v43  ;;  %v2190_v44 = vpop.xlane.xlu1 %2189 }
 0x272   : > { %v2207_v45 = vpop.xlane.xlu0 %2206 }
 0x273   : > { %v2228_v46 = vsel %vm2226_vm6, %v2175_v38, %v2207_v45 }
 0x274   : > { %2237 = vst.msk [vmem:[%s3536_s29 + $0x8] sm:$0xff] %vm2235_vm7, %v2228_v46  ;;  %v2184_v47 = vpop.xlane.xlu1 %2183 }
 0x276   : > { %v2193_v48 = vpop.xlane.xlu0 %2192 }
 0x278   : > { %v2216_v49 = vpop.xlane.xlu1 %2215 }
 0x279   : > { %v2231_v50 = vsel %vm2226_vm6, %v2184_v47, %v2216_v49 }
 0x27a   : > { %2240 = vst.msk [vmem:[%s3536_s29 + $0x20] sm:$0xff] %vm2235_vm7, %v2231_v50  ;;  %v2187_v51 = vpop.xlane.xlu0 %2186 }
 0x27c   : > { %v2222_v52 = vpop.xlane.xlu1 %2221 }
 0x27d   : > { %v2233_v53 = vsel %vm2226_vm6, %v2190_v44, %v2222_v52 }
 0x27e   : > { %2242 = vst.msk [vmem:[%s3536_s29 + $0x30] sm:$0xff] %vm2235_vm7, %v2233_v53  ;;  %v2219_v54 = vpop.xlane.xlu0 %2218 }
 0x27f   : > { %v2232_v55 = vsel %vm2226_vm6, %v2187_v51, %v2219_v54 }
 0x280   : > { %2241 = vst.msk [vmem:[%s3536_s29 + $0x28] sm:$0xff] %vm2235_vm7, %v2232_v55 }
 0x282   : > { %v2225_v56 = vpop.xlane.xlu0 %2224 }
 0x283   : > { %v2234_v57 = vsel %vm2226_vm6, %v2193_v48, %v2225_v56 }
 0x284   : > { %2243 = vst.msk [vmem:[%s3536_s29 + $0x38] sm:$0xff] %vm2235_vm7, %v2234_v57 }
 0x285 PF: > { %s14_s12 = sadd.s32 1, %s3115_s12  }
 0x286   : > { %p11_p4 = scmp.ge.s32.totalorder %s14_s12, 6  }
 0x288   :  { %13 = sbr.rel (!%p11_p4) target bundleno = 1 (0x1), region = 88 }

// kernel: discriminator_forward.9
= control target key start
LH: loop header
LB: loop body
LE: loop exit
PB: predicated region body
PF: predicated region fallthrough
CT: control target
= control target key end

     0   :  { %v964_v22 = vmov 1983009808   ;;  %v148_v24 = vlaneseq  ;;  %s1191_s1 = inlined_call_operand.vmem [shape: bf16[1024,128], index: 1, kind: input, shape index: {}]   ;;  %s1192_s0 = inlined_call_operand.vmem [shape: bf16[4,1024], index: 0, kind: input, shape index: {}]   ;;  %s1193_s2 = inlined_call_operand.vmem [shape: f32[4,128], index: 2, kind: output, shape index: {}]  }
   0x1   :  { %v894_v0 = vld [vmem:[%s1191_s1 + $0x40] sm:$0xff]   ;;  %v898_v4 = vld [vmem:[%s1191_s1 + $0x48] sm:$0xff]   ;;  %v902_v8 = vld [vmem:[%s1191_s1 + $0x50] sm:$0xff]   ;;  %v146_v23 = vunpack.c.l.s4 %v964_v22 }
   0x2   :  { %v895_v1 = vld [vmem:[%s1191_s1 + $0xc0] sm:$0xff]   ;;  %805 = vmatprep.subr.bf16.mxu0 %v894_v0  ;;  %v899_v5 = vld [vmem:[%s1191_s1 + $0xc8] sm:$0xff]   ;;  %v903_v9 = vld [vmem:[%s1191_s1 + $0xd0] sm:$0xff]   ;;  %v149_v30 = vshrl.u32 %v148_v24, 7 }
   0x3   :  { %v896_v2 = vld [vmem:[%s1191_s1] sm:$0xff]   ;;  %827 = vmatprep.subr.bf16.mxu1 %v895_v1  ;;  %v900_v6 = vld [vmem:[%s1191_s1 + $0x8] sm:$0xff]   ;;  %v904_v10 = vld [vmem:[%s1191_s1 + $0x10] sm:$0xff]   ;;  %v147_v29 = vunpack.c.0.s8 %v146_v23 }
   0x4   :  { %v897_v3 = vld [vmem:[%s1191_s1 + $0x80] sm:$0xff]   ;;  %806 = vmatpush3.bf16.msra.mxu0 %v896_v2  ;;  %v901_v7 = vld [vmem:[%s1191_s1 + $0x88] sm:$0xff]   ;;  %v905_v11 = vld [vmem:[%s1191_s1 + $0x90] sm:$0xff]  }
   0x5   :  { %828 = vmatpush3.bf16.msra.mxu1 %v897_v3  ;;  %807 = vmatprep.subr.bf16.mxu0 %v898_v4  ;;  %v906_v12 = vld [vmem:[%s1191_s1 + $0x58] sm:$0xff]   ;;  %v910_v16 = vld [vmem:[%s1191_s1 + $0x60] sm:$0xff]   ;;  %v914_v20 = vld [vmem:[%s1191_s1 + $0x68] sm:$0xff]   ;;  %v150_v35 = vsub.s32 %v147_v29, %v149_v30 }
   0x6   :  { %829 = vmatprep.subr.bf16.mxu1 %v899_v5  ;;  %v907_v13 = vld [vmem:[%s1191_s1 + $0xd8] sm:$0xff]   ;;  %v911_v17 = vld [vmem:[%s1191_s1 + $0xe0] sm:$0xff]   ;;  %v915_v21 = vld [vmem:[%s1191_s1 + $0xe8] sm:$0xff]  }
   0x7   :  { %v908_v14 = vld [vmem:[%s1191_s1 + $0x18] sm:$0xff]   ;;  %v912_v18 = vld [vmem:[%s1191_s1 + $0x20] sm:$0xff]   ;;  %v916_v25 = vld [vmem:[%s1191_s1 + $0x28] sm:$0xff]  }
   0x8   :  { %808 = vmatpush3.bf16.msra.mxu0 %v900_v6  ;;  %v909_v15 = vld [vmem:[%s1191_s1 + $0x98] sm:$0xff]   ;;  %v913_v19 = vld [vmem:[%s1191_s1 + $0xa0] sm:$0xff]   ;;  %v917_v26 = vld [vmem:[%s1191_s1 + $0xa8] sm:$0xff]  }
   0x9   :  { %830 = vmatpush3.bf16.msra.mxu1 %v901_v7  ;;  %809 = vmatprep.subr.bf16.mxu0 %v902_v8  ;;  %v918_v27 = vld [vmem:[%s1191_s1 + $0x70] sm:$0xff]   ;;  %v922_v33 = vld [vmem:[%s1191_s1 + $0x78] sm:$0xff]   ;;  %v12_v38 = vld [vmem:[%s1192_s0] sm:$0xff] }
   0xa   :  { %831 = vmatprep.subr.bf16.mxu1 %v903_v9  ;;  %v919_v28 = vld [vmem:[%s1191_s1 + $0xf0] sm:$0xff]   ;;  %v923_v34 = vld [vmem:[%s1191_s1 + $0xf8] sm:$0xff]   ;;  %v13_v39 = vld [vmem:[%s1192_s0 + $0x8] sm:$0xff]  ;;  %v151_v40 = vrot.slane %v12_v38, %v150_v35  ;;  %v144_v42 = vcombine.high %v12_v38, %v12_v38 }
   0xb   :  { %v920_v31 = vld [vmem:[%s1191_s1 + $0x30] sm:$0xff]   ;;  %v924_v36 = vld [vmem:[%s1191_s1 + $0x38] sm:$0xff]   ;;  %v161_v41 = vcombine.high %v13_v39, %v13_v39  ;;  %v928_v43 = vld [vmem:[%s1191_s1 + $0x140] sm:$0xff]   ;;  %v1085_v44 = vrot.slane %v13_v39, %v150_v35 }
   0xc   :  { %810 = vmatpush3.bf16.msra.mxu0 %v904_v10  ;;  %v921_v32 = vld [vmem:[%s1191_s1 + $0xb0] sm:$0xff]   ;;  %v925_v37 = vld [vmem:[%s1191_s1 + $0xb8] sm:$0xff]   ;;  %v929_v45 = vld [vmem:[%s1191_s1 + $0x1c0] sm:$0xff]   ;;  %v159_v46 = vcombine.high %v151_v40, %v151_v40  ;;  %v158_v47 = vrot.slane %v144_v42, %v150_v35 }
   0xd   :  { %832 = vmatpush3.bf16.msra.mxu1 %v905_v11  ;;  %811 = vmatprep.subr.bf16.mxu0 %v906_v12  ;;  %v930_v48 = vld [vmem:[%s1191_s1 + $0x100] sm:$0xff]   ;;  %v1093_v49 = vrot.slane %v161_v41, %v150_v35  ;;  %v932_v52 = vld [vmem:[%s1191_s1 + $0x148] sm:$0xff]   ;;  %v176_v53 = vcombine.high %v1085_v44, %v1085_v44  ;;  %v936_v58 = vld [vmem:[%s1191_s1 + $0x150] sm:$0xff]  }
   0xe   :  { %833 = vmatprep.subr.bf16.mxu1 %v907_v13  ;;  %v931_v50 = vld [vmem:[%s1191_s1 + $0x180] sm:$0xff]   ;;  %602 = vmatprep.mubr.bf16.mxu0 %v159_v46  ;;  %v160_v51 = vcombine.high %v158_v47, %v158_v47  ;;  %v933_v54 = vld [vmem:[%s1191_s1 + $0x1c8] sm:$0xff]   ;;  %v937_v59 = vld [vmem:[%s1191_s1 + $0x1d0] sm:$0xff]  }
   0xf   :  { %v177_v55 = vcombine.high %v1093_v49, %v1093_v49  ;;  %v934_v56 = vld [vmem:[%s1191_s1 + $0x108] sm:$0xff]   ;;  %v938_v60 = vld [vmem:[%s1191_s1 + $0x110] sm:$0xff]   ;;  %v940_v62 = vld [vmem:[%s1191_s1 + $0x158] sm:$0xff]  }
  0x10   :  { %812 = vmatpush3.bf16.msra.mxu0 %v908_v14  ;;  %642 = vmatprep.mubr.bf16.mxu1 %v160_v51  ;;  %v935_v57 = vld [vmem:[%s1191_s1 + $0x188] sm:$0xff]   ;;  %v939_v61 = vld [vmem:[%s1191_s1 + $0x190] sm:$0xff]   ;;  %v941_v63 = vld [vmem:[%s1191_s1 + $0x1d8] sm:$0xff]  }
  0x11   :  { %834 = vmatpush3.bf16.msra.mxu1 %v909_v15  ;;  %813 = vmatprep.subr.bf16.mxu0 %v910_v16  ;;  %v942_v0 = vld [vmem:[%s1191_s1 + $0x118] sm:$0xff]   ;;  %v944_v2 = vld [vmem:[%s1191_s1 + $0x160] sm:$0xff]   ;;  %v948_v6 = vld [vmem:[%s1191_s1 + $0x168] sm:$0xff]  }
  0x12   :  { %835 = vmatprep.subr.bf16.mxu1 %v911_v17  ;;  %v943_v1 = vld [vmem:[%s1191_s1 + $0x198] sm:$0xff]   ;;  %v945_v3 = vld [vmem:[%s1191_s1 + $0x1e0] sm:$0xff]   ;;  %v949_v7 = vld [vmem:[%s1191_s1 + $0x1e8] sm:$0xff]  }
  0x13   :  { %v946_v4 = vld [vmem:[%s1191_s1 + $0x120] sm:$0xff]   ;;  %v950_v8 = vld [vmem:[%s1191_s1 + $0x128] sm:$0xff]   ;;  %v952_v10 = vld [vmem:[%s1191_s1 + $0x170] sm:$0xff]  }
  0x14   :  { %814 = vmatpush3.bf16.msra.mxu0 %v912_v18  ;;  %v947_v5 = vld [vmem:[%s1191_s1 + $0x1a0] sm:$0xff]   ;;  %v951_v9 = vld [vmem:[%s1191_s1 + $0x1a8] sm:$0xff]   ;;  %v953_v11 = vld [vmem:[%s1191_s1 + $0x1f0] sm:$0xff]  }
  0x15   :  { %836 = vmatpush3.bf16.msra.mxu1 %v913_v19  ;;  %815 = vmatprep.subr.bf16.mxu0 %v914_v20  ;;  %v954_v12 = vld [vmem:[%s1191_s1 + $0x130] sm:$0xff]   ;;  %v956_v14 = vld [vmem:[%s1191_s1 + $0x178] sm:$0xff]  }
  0x16   :  { %837 = vmatprep.subr.bf16.mxu1 %v915_v21  ;;  %v955_v13 = vld [vmem:[%s1191_s1 + $0x1b0] sm:$0xff]   ;;  %v957_v15 = vld [vmem:[%s1191_s1 + $0x1f8] sm:$0xff]  }
  0x17   :  { %v958_v16 = vld [vmem:[%s1191_s1 + $0x138] sm:$0xff]  }
  0x18   :  { %816 = vmatpush3.bf16.msra.mxu0 %v916_v25  ;;  %v959_v17 = vld [vmem:[%s1191_s1 + $0x1b8] sm:$0xff]  }
  0x19   :  { %838 = vmatpush3.bf16.msra.mxu1 %v917_v26  ;;  %817 = vmatprep.subr.bf16.mxu0 %v918_v27 }
  0x1a   :  { %839 = vmatprep.subr.bf16.mxu1 %v919_v28 }
  0x1c   :  { %818 = vmatpush3.bf16.msra.mxu0 %v920_v31 }
  0x1d   :  { %840 = vmatpush3.bf16.msra.mxu1 %v921_v32  ;;  %819 = vmatprep.subr.bf16.mxu0 %v922_v33 }
  0x1e   :  { %841 = vmatprep.subr.bf16.mxu1 %v923_v34 }
  0x20   :  { %820 = vmatpush3.bf16.msra.mxu0 %v924_v36 }
  0x21   :  { %842 = vmatpush3.bf16.msra.mxu1 %v925_v37  ;;  %849 = vmatprep.subr.bf16.mxu0 %v928_v43 }
  0x22   :  { %871 = vmatprep.subr.bf16.mxu1 %v929_v45 }
  0x23   :  { %603 = vmatmul.mubr.bf16.vlgmr.msra.gmra.mrb[0].mxu0 %v151_v40 }
  0x24   :  { %850 = vmatpush3.bf16.msra.mxu0 %v930_v48  ;;  %643 = vmatmul.mubr.bf16.vlgmr.msra.gmra.mrb[0].mxu1 %v158_v47 }
  0x25   :  { %851 = vmatprep.subr.bf16.mxu0 %v932_v52  ;;  %872 = vmatpush3.bf16.msra.mxu1 %v931_v50 }
  0x26   :  { %682 = vmatprep.mubr.bf16.mxu0 %v176_v53  ;;  %873 = vmatprep.subr.bf16.mxu1 %v933_v54 }
  0x27   :  { %722 = vmatprep.mubr.bf16.mxu1 %v177_v55 }
  0x28   :  { %852 = vmatpush3.bf16.msra.mxu0 %v934_v56 }
  0x29   :  { %853 = vmatprep.subr.bf16.mxu0 %v936_v58  ;;  %874 = vmatpush3.bf16.msra.mxu1 %v935_v57 }
  0x2a   :  { %875 = vmatprep.subr.bf16.mxu1 %v937_v59 }
  0x2c   :  { %854 = vmatpush3.bf16.msra.mxu0 %v938_v60 }
  0x2d   :  { %855 = vmatprep.subr.bf16.mxu0 %v940_v62  ;;  %876 = vmatpush3.bf16.msra.mxu1 %v939_v61 }
  0x2e   :  { %877 = vmatprep.subr.bf16.mxu1 %v941_v63 }
  0x30   :  { %856 = vmatpush3.bf16.msra.mxu0 %v942_v0 }
  0x31   :  { %857 = vmatprep.subr.bf16.mxu0 %v944_v2  ;;  %878 = vmatpush3.bf16.msra.mxu1 %v943_v1 }
  0x32   :  { %879 = vmatprep.subr.bf16.mxu1 %v945_v3 }
  0x34   :  { %858 = vmatpush3.bf16.msra.mxu0 %v946_v4 }
  0x35   :  { %859 = vmatprep.subr.bf16.mxu0 %v948_v6  ;;  %880 = vmatpush3.bf16.msra.mxu1 %v947_v5 }
  0x36   :  { %881 = vmatprep.subr.bf16.mxu1 %v949_v7 }
  0x38   :  { %860 = vmatpush3.bf16.msra.mxu0 %v950_v8 }
  0x39   :  { %861 = vmatprep.subr.bf16.mxu0 %v952_v10  ;;  %882 = vmatpush3.bf16.msra.mxu1 %v951_v9 }
  0x3a   :  { %883 = vmatprep.subr.bf16.mxu1 %v953_v11 }
  0x3c   :  { %862 = vmatpush3.bf16.msra.mxu0 %v954_v12 }
  0x3d   :  { %863 = vmatprep.subr.bf16.mxu0 %v956_v14  ;;  %884 = vmatpush3.bf16.msra.mxu1 %v955_v13 }
  0x3e   :  { %885 = vmatprep.subr.bf16.mxu1 %v957_v15 }
  0x40   :  { %864 = vmatpush3.bf16.msra.mxu0 %v958_v16 }
  0x41   :  { %886 = vmatpush3.bf16.msra.mxu1 %v959_v17 }
  0x43   :  { %683 = vmatmul.mubr.bf16.vlgmr.msra.gmra.mrb[4].mxu0 %v1085_v44 }
  0x44   :  { %723 = vmatmul.mubr.bf16.vlgmr.msra.gmra.mrb[4].mxu1 %v1093_v49 }
  0xf6   :  { %v821_v18 = vpop.f32.mrb[0].mxu0 }
  0xf7   :  { %v822_v19 = vpop.f32.mrb[1].mxu0  ;;  %v843_v20 = vpop.f32.mrb[0].mxu1 }
  0xf8   :  { %v823_v21 = vadd.f32 %v822_v19, %v821_v18  ;;  %v824_v22 = vpop.f32.mrb[2].mxu0  ;;  %v844_v23 = vpop.f32.mrb[1].mxu1 }
  0xf9   :  { %v825_v24 = vpop.f32.mrb[3].mxu0  ;;  %v845_v25 = vadd.f32 %v844_v23, %v843_v20  ;;  %v846_v26 = vpop.f32.mrb[2].mxu1 }
  0xfa   :  { %v847_v27 = vpop.f32.mrb[3].mxu1 }
  0xfb   :  { %v645_v28 = vadd.f32 %v845_v25, %v823_v21 }
 0x116   :  { %v865_v29 = vpop.f32.mrb[4].mxu0 }
 0x117   :  { %v866_v30 = vpop.f32.mrb[5].mxu0  ;;  %v887_v31 = vpop.f32.mrb[4].mxu1 }
 0x118   :  { %v867_v32 = vadd.f32 %v866_v30, %v865_v29  ;;  %v868_v33 = vpop.f32.mrb[6].mxu0  ;;  %v888_v34 = vpop.f32.mrb[5].mxu1 }
 0x119   :  { %v869_v35 = vpop.f32.mrb[7].mxu0  ;;  %v889_v37 = vadd.f32 %v888_v34, %v887_v31  ;;  %v890_v38 = vpop.f32.mrb[6].mxu1 }
 0x11a   :  { %v685_v36 = vadd.f32 %v867_v32, %v645_v28  ;;  %v891_v39 = vpop.f32.mrb[7].mxu1 }
 0x11c   :  { %v725_v40 = vadd.f32 %v889_v37, %v685_v36 }
 0x11e   :  { %v730_v41 = vsub.f32 0.0, %v725_v40 }
 0x120   :  { %v731_v42 = vmul.f32 1.442695, %v730_v41 }
 0x122   :  { %960 = vpow2.f32 %v731_v42 }
 0x12c   :  { %v961_v43 = vpop.eup %960 }
 0x12d   :  { %v733_v44 = vadd.f32 1.0, %v961_v43 }
 0x12f   :  { %962 = vrcp.f32 %v733_v44 }
 0x139   :  { %v963_v45 = vpop.eup %962 }
 0x13a   :  { %736 = vst [vmem:[%s1193_s2] sm:$0xf] %v963_v45 }

</bundles_post_ra>
